<compile_context>
chip_gen: v7x
topology: tpu7x:2x2x1
jax: 0.10.0
libtpu: 0.0.40
codegen_flags: <defaults>
</compile_context>

<pallas_src>
import math
from functools import partial

import jax
import jax.numpy as jnp
from jax import lax
from jax.experimental import pallas as pl
from jax.experimental.pallas import tpu as pltpu

BN_EPS = 1e-5
NEG_INF = -1e30  # f32-safe mask fill (all kernel math stays in f32)


def _full_spec(shape):
    """Whole-array block for a grid=(1,) kernel."""
    return pl.BlockSpec(shape, lambda i, _n=len(shape): (0,) * _n)


# --------------------------- embedding kernel -------------------------------

def _embed_kernel(x_ref, wn_ref, e_ref, we_ref, xo_ref, eo_ref):
    xo_ref[...] = jnp.dot(x_ref[...], wn_ref[...],
                          preferred_element_type=jnp.float32)
    eo_ref[...] = jnp.dot(e_ref[...], we_ref[...],
                          preferred_element_type=jnp.float32)


def embed(x, w_node, edge_attr, w_edge):
    N = x.shape[0]
    Ne = edge_attr.shape[0]
    hidden = w_node.shape[1]
    args = (x, w_node, edge_attr, w_edge)
    return pl.pallas_call(
        _embed_kernel,
        out_shape=(jax.ShapeDtypeStruct((N, hidden), jnp.float32),
                   jax.ShapeDtypeStruct((Ne, hidden), jnp.float32)),
        grid=(1,),
        in_specs=[_full_spec(a.shape) for a in args],
        out_specs=(_full_spec((N, hidden)), _full_spec((Ne, hidden))),
        compiler_params=pltpu.CompilerParams(dimension_semantics=("arbitrary",)),
    )(*args)


# ------------------------ fused GTConv layer kernel --------------------------

def _gtconv_kernel(x_ref, e_ref, mask_ref, dst_oh_ref, src_oh_ref,
                   wqkv_ref, wo_ref, w1_ref, w2_ref,
                   we_ref, woe_ref, we1_ref, we2_ref,
                   bias_ref, bn_scale_ref, bn_shift_ref,
                   h_out_ref, e_out_ref,
                   *, num_heads, hidden):
    d = hidden // num_heads
    scale = jnp.float32(1.0 / math.sqrt(d))

    x = x_ref[...]              # (N, hidden)
    e_in = e_ref[...]           # (Ne, hidden)
    mask = mask_ref[...]        # (N_dst, N_src) 0/1

    biases = bias_ref[...]      # (8, hidden), rows packed at init
    wo_b, b1, b2 = biases[0:1, :], biases[1:2, :], biases[2:3, :]
    we_b, woe_b = biases[3:4, :], biases[4:5, :]
    be1, be2 = biases[5:6, :], biases[6:7, :]

    bn_s = bn_scale_ref[...]    # (4, hidden): [norm1, norm2, norm1e, norm2e]
    bn_b = bn_shift_ref[...]

    # -------- fused QKV projection: one (N, hidden) @ (hidden, 3*hidden) -----
    qkv = jnp.dot(x, wqkv_ref[...], preferred_element_type=jnp.float32)
    q = qkv[:, :hidden]
    k = qkv[:, hidden:2 * hidden]
    v = qkv[:, 2 * hidden:]

    # -------- per-head masked softmax over incoming edges (dense mask) -------
    head_outs = []
    for h in range(num_heads):
        qh = q[:, h * d:(h + 1) * d]
        kh = k[:, h * d:(h + 1) * d]
        vh = v[:, h * d:(h + 1) * d]
        # s[i, j] = <Q_i, K_j> / sqrt(d)   (contraction on last dim of both)
        s = lax.dot_general(qh, kh, (((1,), (1,)), ((), ())),
                            preferred_element_type=jnp.float32) * scale
        s = jnp.where(mask > 0, s, NEG_INF)
        s_max = jnp.max(s, axis=-1, keepdims=True)
        p = jnp.exp(s - s_max) * mask
        denom = jnp.sum(p, axis=-1, keepdims=True)
        inv = pl.reciprocal(jnp.maximum(denom, 1e-30), approx=True)
        alpha = p * inv                                   # rows w/o edges -> 0
        head_outs.append(jnp.dot(alpha, vh, preferred_element_type=jnp.float32))
    attn = jnp.concatenate(head_outs, axis=-1)            # (N, hidden), lane-dense

    # -------- node update: WO + residual + BN1 ; FFN + residual + BN2 --------
    h1 = jnp.dot(attn, wo_ref[...], preferred_element_type=jnp.float32) + wo_b + x
    h1 = h1 * bn_s[0:1, :] + bn_b[0:1, :]
    f = jnp.maximum(
        jnp.dot(h1, w1_ref[...], preferred_element_type=jnp.float32) + b1, 0.0)
    f = jnp.dot(f, w2_ref[...], preferred_element_type=jnp.float32) + b2
    h_out_ref[...] = (h1 + f) * bn_s[1:2, :] + bn_b[1:2, :]

    # -------- edge messages: gathers as one-hot matmuls (in-kernel) ----------
    qi = jnp.dot(dst_oh_ref[...], q, preferred_element_type=jnp.float32)  # Q_i
    kj = jnp.dot(src_oh_ref[...], k, preferred_element_type=jnp.float32)  # K_j
    E = jnp.dot(e_in, we_ref[...], preferred_element_type=jnp.float32) + we_b
    eij = E * (qi * kj) * scale                             # stored _eij

    # -------- edge update: WOe + residual + BN1e ; FFN_e + residual + BN2e ---
    e1 = jnp.dot(eij, woe_ref[...], preferred_element_type=jnp.float32) + woe_b + e_in
    e1 = e1 * bn_s[2:3, :] + bn_b[2:3, :]
    fe = jnp.maximum(
        jnp.dot(e1, we1_ref[...], preferred_element_type=jnp.float32) + be1, 0.0)
    fe = jnp.dot(fe, we2_ref[...], preferred_element_type=jnp.float32) + be2
    e_out_ref[...] = (e1 + fe) * bn_s[3:4, :] + bn_b[3:4, :]


def gtconv_layer(layer, x, edge_attr, adj_mask, dst_oh, src_oh, num_heads):
    N, hidden = x.shape
    Ne = edge_attr.shape[0]
    args = (x, edge_attr, adj_mask, dst_oh, src_oh,
            layer["Wqkv"], layer["WO"], layer["ffn_w1"], layer["ffn_w2"],
            layer["WE"], layer["WOe"], layer["ffn_e_w1"], layer["ffn_e_w2"],
            layer["biases"], layer["bn_scale"], layer["bn_shift"])
    return pl.pallas_call(
        partial(_gtconv_kernel, num_heads=num_heads, hidden=hidden),
        out_shape=(jax.ShapeDtypeStruct((N, hidden), jnp.float32),
                   jax.ShapeDtypeStruct((Ne, hidden), jnp.float32)),
        grid=(1,),
        in_specs=[_full_spec(a.shape) for a in args],
        out_specs=(_full_spec((N, hidden)), _full_spec((Ne, hidden))),
        compiler_params=pltpu.CompilerParams(dimension_semantics=("arbitrary",)),
    )(*args)


# --------------------- global sum-pool + mu MLP kernel -----------------------

def _pool_mu_kernel(oh_ref, x_ref, w1_ref, b1_ref, w2_ref, b2_ref, mu_ref):
    pooled = jnp.dot(oh_ref[...], x_ref[...], preferred_element_type=jnp.float32)
    h = jnp.maximum(
        jnp.dot(pooled, w1_ref[...], preferred_element_type=jnp.float32)
        + b1_ref[...], 0.0)
    mu_ref[...] = (jnp.dot(h, w2_ref[...], preferred_element_type=jnp.float32)
                   + b2_ref[...])


def pool_and_mu(batch_onehot, x, w1, b1, w2, b2):
    G = batch_onehot.shape[0]
    out_dim = w2.shape[1]
    args = (batch_onehot, x, w1, b1, w2, b2)
    return pl.pallas_call(
        _pool_mu_kernel,
        out_shape=jax.ShapeDtypeStruct((G, out_dim), jnp.float32),
        grid=(1,),
        in_specs=[_full_spec(a.shape) for a in args],
        out_specs=_full_spec((G, out_dim)),
        compiler_params=pltpu.CompilerParams(dimension_semantics=("arbitrary",)),
    )(*args)


# ------------------------------- parameters ----------------------------------

def xavier(key, shape):
    fan_in, fan_out = shape
    a = math.sqrt(6.0 / (fan_in + fan_out))
    return jax.random.uniform(key, shape, jnp.float32, -a, a)


def init_params(key, node_dim_in, edge_dim_in, hidden, out_dim, num_layers):
    keys = jax.random.split(key, 3 + num_layers)
    p = {
        "node_emb": xavier(keys[0], (node_dim_in, hidden)),   # bias=False
        "edge_emb": xavier(keys[1], (edge_dim_in, hidden)),   # bias=False
        "layers": [],
    }
    # BatchNorm1d eval with default running stats: y = x * 1/sqrt(1+eps).
    bn_scale_row = jnp.full((1, hidden), 1.0 / math.sqrt(1.0 + BN_EPS), jnp.float32)
    bn_shift_row = jnp.zeros((1, hidden), jnp.float32)
    for l in range(num_layers):
        lk = jax.random.split(keys[2 + l], 10)
        wq = xavier(lk[0], (hidden, hidden))                  # qkv_bias=False
        wk = xavier(lk[1], (hidden, hidden))
        wv = xavier(lk[2], (hidden, hidden))
        p["layers"].append({
            "Wqkv": jnp.concatenate([wq, wk, wv], axis=1),    # (hidden, 3*hidden)
            "WO": xavier(lk[3], (hidden, hidden)),
            "WE": xavier(lk[4], (hidden, hidden)),
            "WOe": xavier(lk[5], (hidden, hidden)),
            "ffn_w1": xavier(lk[6], (hidden, hidden)),
            "ffn_w2": xavier(lk[7], (hidden, hidden)),
            "ffn_e_w1": xavier(lk[8], (hidden, hidden)),
            "ffn_e_w2": xavier(lk[9], (hidden, hidden)),
            # packed biases (all zero at init):
            # rows = [WO_b, ffn_b1, ffn_b2, WE_b, WOe_b, ffn_e_b1, ffn_e_b2, pad]
            "biases": jnp.zeros((8, hidden), jnp.float32),
            # separate eval-mode affine per norm: [norm1, norm2, norm1e, norm2e]
            "bn_scale": jnp.tile(bn_scale_row, (4, 1)),
            "bn_shift": jnp.tile(bn_shift_row, (4, 1)),
        })
    mk = jax.random.split(keys[2 + num_layers], 2)
    p["mu_w1"] = xavier(mk[0], (hidden, hidden))
    p["mu_b1"] = jnp.zeros((1, hidden), jnp.float32)
    p["mu_w2"] = xavier(mk[1], (hidden, out_dim))
    p["mu_b2"] = jnp.zeros((1, out_dim), jnp.float32)
    # Eval path (training=False, return_std=False) returns mu only, so the
    # log-var MLP is never evaluated and is omitted here.
    return p


# --------------------------------- forward -----------------------------------

def graph_transformer_forward(params, x, edge_attr, adj_mask, dst_oh, src_oh,
                              batch_onehot, num_heads):
    x, e = embed(x, params["node_emb"], edge_attr, params["edge_emb"])
    for layer in params["layers"]:
        x, e = gtconv_layer(layer, x, e, adj_mask, dst_oh, src_oh, num_heads)
    mu = pool_and_mu(batch_onehot, x, params["mu_w1"], params["mu_b1"],
                     params["mu_w2"], params["mu_b2"])
    # TODO(synk): training-mode reparameterization (mu + std*eps) / return_std
    #             branch not emitted (eval path returns mu only).
    return mu


# ----------------------------------- main -------------------------------------

if __name__ == "__main__":
    key = jax.random.PRNGKey(0)

    node_dim_in, edge_dim_in = 8, 4
    hidden, num_heads, num_layers, out_dim = 32, 4, 2, 1
    n_per_graph, num_graphs = 8, 2
    N = n_per_graph * num_graphs

    # small graph: ring + skip edges inside each graph (unique edges, every node
    # has incoming edges -> matches PyG scatter softmax exactly)
    src_list, dst_list = [], []
    for g in range(num_graphs):
        off = g * n_per_graph
        for i in range(n_per_graph):
            for kk in (1, 2):
                src_list.append(off + i)
                dst_list.append(off + (i + kk) % n_per_graph)
    src = jnp.array(src_list, jnp.int32)
    dst = jnp.array(dst_list, jnp.int32)
    Ne = int(src.shape[0])

    adj_mask = jnp.zeros((N, N), jnp.float32).at[dst, src].set(1.0)  # [dst, src]
    node_ids = jnp.arange(N)
    dst_oh = (dst[:, None] == node_ids[None, :]).astype(jnp.float32)  # (Ne, N)
    src_oh = (src[:, None] == node_ids[None, :]).astype(jnp.float32)  # (Ne, N)
    batch = jnp.repeat(jnp.arange(num_graphs), n_per_graph)
    batch_onehot = (batch[None, :] == jnp.arange(num_graphs)[:, None]).astype(jnp.float32)

    kx, ke, kp = jax.random.split(key, 3)
    x = jax.random.normal(kx, (N, node_dim_in), jnp.float32)
    edge_attr = jax.random.normal(ke, (Ne, edge_dim_in), jnp.float32)

    params = init_params(kp, node_dim_in, edge_dim_in, hidden, out_dim, num_layers)

    fwd = jax.jit(partial(graph_transformer_forward, num_heads=num_heads))
    mu = fwd(params, x, edge_attr, adj_mask, dst_oh, src_oh, batch_onehot)
    jax.block_until_ready(mu)
    assert mu.shape == (num_graphs, out_dim)
    print("KERNEL_OK")
</pallas_src>

<mosaic_0001>
module attributes {stable_mosaic.version = 11 : i64} {
  func.func @_embed_kernel(%arg0: i32, %arg1: memref<16x8xf32, #tpu.memory_space<vmem>>, %arg2: memref<8x32xf32, #tpu.memory_space<vmem>>, %arg3: memref<32x4xf32, #tpu.memory_space<vmem>>, %arg4: memref<4x32xf32, #tpu.memory_space<vmem>>, %arg5: memref<16x32xf32, #tpu.memory_space<vmem>>, %arg6: memref<32x32xf32, #tpu.memory_space<vmem>>) attributes {dimension_semantics = [#tpu.dimension_semantics<arbitrary>], iteration_bounds = array<i64: 1>, scalar_prefetch = 0 : i64, scratch_operands = 0 : i64, tpu.core_type = #tpu.core_type<tc>, window_params = [{pipeline_mode = #tpu.pipeline_mode<synchronous>, transform_indices = @transform_0, window_bounds = array<i64: 16, 8>}, {pipeline_mode = #tpu.pipeline_mode<synchronous>, transform_indices = @transform_1, window_bounds = array<i64: 8, 32>}, {pipeline_mode = #tpu.pipeline_mode<synchronous>, transform_indices = @transform_2, window_bounds = array<i64: 32, 4>}, {pipeline_mode = #tpu.pipeline_mode<synchronous>, transform_indices = @transform_3, window_bounds = array<i64: 4, 32>}, {pipeline_mode = #tpu.pipeline_mode<synchronous>, transform_indices = @transform_4, window_bounds = array<i64: 16, 32>}, {pipeline_mode = #tpu.pipeline_mode<synchronous>, transform_indices = @transform_5, window_bounds = array<i64: 32, 32>}]} {
    %c0 = arith.constant 0 : index
    %c0_0 = arith.constant 0 : index
    %0 = vector.load %arg1[%c0, %c0_0] : memref<16x8xf32, #tpu.memory_space<vmem>>, vector<16x8xf32>
    %c0_1 = arith.constant 0 : index
    %c0_2 = arith.constant 0 : index
    %1 = vector.load %arg2[%c0_1, %c0_2] : memref<8x32xf32, #tpu.memory_space<vmem>>, vector<8x32xf32>
    %cst = arith.constant dense<0.000000e+00> : vector<16x32xf32>
    %2 = tpu.matmul %0, %1, %cst {dimension_numbers = #tpu.dot_dimension_numbers<[1], [0], [0], [1], [0, 0, 1, 1], [], []>} : vector<16x8xf32>, vector<8x32xf32>, vector<16x32xf32> -> vector<16x32xf32>
    %c0_3 = arith.constant 0 : index
    %c0_4 = arith.constant 0 : index
    %3 = vector.load %arg5[%c0_3, %c0_4] : memref<16x32xf32, #tpu.memory_space<vmem>>, vector<16x32xf32>
    tpu.vector_store %arg5[%c0_3, %c0_4], %2 {strides = array<i32>} : memref<16x32xf32, #tpu.memory_space<vmem>>, vector<16x32xf32>,
    %c0_5 = arith.constant 0 : index
    %c0_6 = arith.constant 0 : index
    %4 = vector.load %arg3[%c0_5, %c0_6] : memref<32x4xf32, #tpu.memory_space<vmem>>, vector<32x4xf32>
    %c0_7 = arith.constant 0 : index
    %c0_8 = arith.constant 0 : index
    %5 = vector.load %arg4[%c0_7, %c0_8] : memref<4x32xf32, #tpu.memory_space<vmem>>, vector<4x32xf32>
    %cst_9 = arith.constant dense<0.000000e+00> : vector<32x32xf32>
    %6 = tpu.matmul %4, %5, %cst_9 {dimension_numbers = #tpu.dot_dimension_numbers<[1], [0], [0], [1], [0, 0, 1, 1], [], []>} : vector<32x4xf32>, vector<4x32xf32>, vector<32x32xf32> -> vector<32x32xf32>
    %c0_10 = arith.constant 0 : index
    %c0_11 = arith.constant 0 : index
    %7 = vector.load %arg6[%c0_10, %c0_11] : memref<32x32xf32, #tpu.memory_space<vmem>>, vector<32x32xf32>
    tpu.vector_store %arg6[%c0_10, %c0_11], %6 {strides = array<i32>} : memref<32x32xf32, #tpu.memory_space<vmem>>, vector<32x32xf32>,
    return
  }
  func.func @transform_0(%arg0: i32) -> (i32, i32) {
    %c0_i32 = arith.constant 0 : i32
    %c0_i32_0 = arith.constant 0 : i32
    %c0_i32_1 = arith.constant 0 : i32
    return %c0_i32, %c0_i32_0 : i32, i32
  }
  func.func @transform_1(%arg0: i32) -> (i32, i32) {
    %c0_i32 = arith.constant 0 : i32
    %c0_i32_0 = arith.constant 0 : i32
    %c0_i32_1 = arith.constant 0 : i32
    return %c0_i32, %c0_i32_0 : i32, i32
  }
  func.func @transform_2(%arg0: i32) -> (i32, i32) {
    %c0_i32 = arith.constant 0 : i32
    %c0_i32_0 = arith.constant 0 : i32
    %c0_i32_1 = arith.constant 0 : i32
    return %c0_i32, %c0_i32_0 : i32, i32
  }
  func.func @transform_3(%arg0: i32) -> (i32, i32) {
    %c0_i32 = arith.constant 0 : i32
    %c0_i32_0 = arith.constant 0 : i32
    %c0_i32_1 = arith.constant 0 : i32
    return %c0_i32, %c0_i32_0 : i32, i32
  }
  func.func @transform_4(%arg0: i32) -> (i32, i32) {
    %c0_i32 = arith.constant 0 : i32
    %c0_i32_0 = arith.constant 0 : i32
    %c0_i32_1 = arith.constant 0 : i32
    return %c0_i32, %c0_i32_0 : i32, i32
  }
  func.func @transform_5(%arg0: i32) -> (i32, i32) {
    %c0_i32 = arith.constant 0 : i32
    %c0_i32_0 = arith.constant 0 : i32
    %c0_i32_1 = arith.constant 0 : i32
    return %c0_i32, %c0_i32_0 : i32, i32
  }
}

module attributes {stable_mosaic.version = 11 : i64} {
  func.func @_gtconv_kernel(%arg0: i32, %arg1: memref<16x32xf32, #tpu.memory_space<vmem>>, %arg2: memref<32x32xf32, #tpu.memory_space<vmem>>, %arg3: memref<16x16xf32, #tpu.memory_space<vmem>>, %arg4: memref<32x16xf32, #tpu.memory_space<vmem>>, %arg5: memref<32x16xf32, #tpu.memory_space<vmem>>, %arg6: memref<32x96xf32, #tpu.memory_space<vmem>>, %arg7: memref<32x32xf32, #tpu.memory_space<vmem>>, %arg8: memref<32x32xf32, #tpu.memory_space<vmem>>, %arg9: memref<32x32xf32, #tpu.memory_space<vmem>>, %arg10: memref<32x32xf32, #tpu.memory_space<vmem>>, %arg11: memref<32x32xf32, #tpu.memory_space<vmem>>, %arg12: memref<32x32xf32, #tpu.memory_space<vmem>>, %arg13: memref<32x32xf32, #tpu.memory_space<vmem>>, %arg14: memref<8x32xf32, #tpu.memory_space<vmem>>, %arg15: memref<4x32xf32, #tpu.memory_space<vmem>>, %arg16: memref<4x32xf32, #tpu.memory_space<vmem>>, %arg17: memref<16x32xf32, #tpu.memory_space<vmem>>, %arg18: memref<32x32xf32, #tpu.memory_space<vmem>>) attributes {dimension_semantics = [#tpu.dimension_semantics<arbitrary>], iteration_bounds = array<i64: 1>, scalar_prefetch = 0 : i64, scratch_operands = 0 : i64, tpu.core_type = #tpu.core_type<tc>, window_params = [{pipeline_mode = #tpu.pipeline_mode<synchronous>, transform_indices = @transform_0, window_bounds = array<i64: 16, 32>}, {pipeline_mode = #tpu.pipeline_mode<synchronous>, transform_indices = @transform_1, window_bounds = array<i64: 32, 32>}, {pipeline_mode = #tpu.pipeline_mode<synchronous>, transform_indices = @transform_2, window_bounds = array<i64: 16, 16>}, {pipeline_mode = #tpu.pipeline_mode<synchronous>, transform_indices = @transform_3, window_bounds = array<i64: 32, 16>}, {pipeline_mode = #tpu.pipeline_mode<synchronous>, transform_indices = @transform_4, window_bounds = array<i64: 32, 16>}, {pipeline_mode = #tpu.pipeline_mode<synchronous>, transform_indices = @transform_5, window_bounds = array<i64: 32, 96>}, {pipeline_mode = #tpu.pipeline_mode<synchronous>, transform_indices = @transform_6, window_bounds = array<i64: 32, 32>}, {pipeline_mode = #tpu.pipeline_mode<synchronous>, transform_indices = @transform_7, window_bounds = array<i64: 32, 32>}, {pipeline_mode = #tpu.pipeline_mode<synchronous>, transform_indices = @transform_8, window_bounds = array<i64: 32, 32>}, {pipeline_mode = #tpu.pipeline_mode<synchronous>, transform_indices = @transform_9, window_bounds = array<i64: 32, 32>}, {pipeline_mode = #tpu.pipeline_mode<synchronous>, transform_indices = @transform_10, window_bounds = array<i64: 32, 32>}, {pipeline_mode = #tpu.pipeline_mode<synchronous>, transform_indices = @transform_11, window_bounds = array<i64: 32, 32>}, {pipeline_mode = #tpu.pipeline_mode<synchronous>, transform_indices = @transform_12, window_bounds = array<i64: 32, 32>}, {pipeline_mode = #tpu.pipeline_mode<synchronous>, transform_indices = @transform_13, window_bounds = array<i64: 8, 32>}, {pipeline_mode = #tpu.pipeline_mode<synchronous>, transform_indices = @transform_14, window_bounds = array<i64: 4, 32>}, {pipeline_mode = #tpu.pipeline_mode<synchronous>, transform_indices = @transform_15, window_bounds = array<i64: 4, 32>}, {pipeline_mode = #tpu.pipeline_mode<synchronous>, transform_indices = @transform_16, window_bounds = array<i64: 16, 32>}, {pipeline_mode = #tpu.pipeline_mode<synchronous>, transform_indices = @transform_17, window_bounds = array<i64: 32, 32>}]} {
    %c0 = arith.constant 0 : index
    %c0_0 = arith.constant 0 : index
    %0 = vector.load %arg1[%c0, %c0_0] : memref<16x32xf32, #tpu.memory_space<vmem>>, vector<16x32xf32>
    %c0_1 = arith.constant 0 : index
    %c0_2 = arith.constant 0 : index
    %1 = vector.load %arg2[%c0_1, %c0_2] : memref<32x32xf32, #tpu.memory_space<vmem>>, vector<32x32xf32>
    %c0_3 = arith.constant 0 : index
    %c0_4 = arith.constant 0 : index
    %2 = vector.load %arg3[%c0_3, %c0_4] : memref<16x16xf32, #tpu.memory_space<vmem>>, vector<16x16xf32>
    %c0_5 = arith.constant 0 : index
    %c0_6 = arith.constant 0 : index
    %3 = vector.load %arg14[%c0_5, %c0_6] : memref<8x32xf32, #tpu.memory_space<vmem>>, vector<8x32xf32>
    %4 = vector.extract_strided_slice %3 {offsets = [0, 0], sizes = [1, 32], strides = [1, 1]} : vector<8x32xf32> to vector<1x32xf32>
    %5 = vector.extract_strided_slice %3 {offsets = [1, 0], sizes = [1, 32], strides = [1, 1]} : vector<8x32xf32> to vector<1x32xf32>
    %6 = vector.extract_strided_slice %3 {offsets = [2, 0], sizes = [1, 32], strides = [1, 1]} : vector<8x32xf32> to vector<1x32xf32>
    %7 = vector.extract_strided_slice %3 {offsets = [3, 0], sizes = [1, 32], strides = [1, 1]} : vector<8x32xf32> to vector<1x32xf32>
    %8 = vector.extract_strided_slice %3 {offsets = [4, 0], sizes = [1, 32], strides = [1, 1]} : vector<8x32xf32> to vector<1x32xf32>
    %9 = vector.extract_strided_slice %3 {offsets = [5, 0], sizes = [1, 32], strides = [1, 1]} : vector<8x32xf32> to vector<1x32xf32>
    %10 = vector.extract_strided_slice %3 {offsets = [6, 0], sizes = [1, 32], strides = [1, 1]} : vector<8x32xf32> to vector<1x32xf32>
    %c0_7 = arith.constant 0 : index
    %c0_8 = arith.constant 0 : index
    %11 = vector.load %arg15[%c0_7, %c0_8] : memref<4x32xf32, #tpu.memory_space<vmem>>, vector<4x32xf32>
    %c0_9 = arith.constant 0 : index
    %c0_10 = arith.constant 0 : index
    %12 = vector.load %arg16[%c0_9, %c0_10] : memref<4x32xf32, #tpu.memory_space<vmem>>, vector<4x32xf32>
    %c0_11 = arith.constant 0 : index
    %c0_12 = arith.constant 0 : index
    %13 = vector.load %arg6[%c0_11, %c0_12] : memref<32x96xf32, #tpu.memory_space<vmem>>, vector<32x96xf32>
    %cst = arith.constant dense<0.000000e+00> : vector<16x96xf32>
    %14 = tpu.matmul %0, %13, %cst {dimension_numbers = #tpu.dot_dimension_numbers<[1], [0], [0], [1], [0, 0, 1, 1], [], []>} : vector<16x32xf32>, vector<32x96xf32>, vector<16x96xf32> -> vector<16x96xf32>
    %15 = vector.extract_strided_slice %14 {offsets = [0, 0], sizes = [16, 32], strides = [1, 1]} : vector<16x96xf32> to vector<16x32xf32>
    %16 = vector.extract_strided_slice %14 {offsets = [0, 32], sizes = [16, 32], strides = [1, 1]} : vector<16x96xf32> to vector<16x32xf32>
    %17 = vector.extract_strided_slice %14 {offsets = [0, 64], sizes = [16, 32], strides = [1, 1]} : vector<16x96xf32> to vector<16x32xf32>
    %18 = vector.extract_strided_slice %15 {offsets = [0, 0], sizes = [16, 8], strides = [1, 1]} : vector<16x32xf32> to vector<16x8xf32>
    %19 = vector.extract_strided_slice %16 {offsets = [0, 0], sizes = [16, 8], strides = [1, 1]} : vector<16x32xf32> to vector<16x8xf32>
    %20 = vector.extract_strided_slice %17 {offsets = [0, 0], sizes = [16, 8], strides = [1, 1]} : vector<16x32xf32> to vector<16x8xf32>
    %cst_13 = arith.constant dense<0.000000e+00> : vector<16x16xf32>
    %21 = tpu.matmul %18, %19, %cst_13 {dimension_numbers = #tpu.dot_dimension_numbers<[1], [1], [0], [0], [0, 0, 1, 0], [], []>} : vector<16x8xf32>, vector<16x8xf32>, vector<16x16xf32> -> vector<16x16xf32>
    %cst_14 = arith.constant 0.353553385 : f32
    %22 = vector.broadcast %cst_14 : f32 to vector<16x16xf32>
    %23 = arith.mulf %21, %22 : vector<16x16xf32>
    %cst_15 = arith.constant 0.000000e+00 : f32
    %24 = vector.broadcast %cst_15 : f32 to vector<16x16xf32>
    %25 = arith.cmpf ogt, %2, %24 : vector<16x16xf32>
    %cst_16 = arith.constant -1.000000e+30 : f32
    %26 = vector.broadcast %cst_16 : f32 to vector<16x16xf32>
    %27 = arith.select %25, %23, %26 : vector<16x16xi1>, vector<16x16xf32>
    %cst_17 = arith.constant dense<0xFF800000> : vector<16xf32>
    %28 = vector.multi_reduction <maximumf>, %27, %cst_17 [1] : vector<16x16xf32> to vector<16xf32>
    %29 = vector.shape_cast %28 : vector<16xf32> to vector<16x1xf32>
    %30 = vector.broadcast %29 : vector<16x1xf32> to vector<16x16xf32>
    %31 = arith.subf %27, %30 : vector<16x16xf32>
    %32 = math.exp %31 : vector<16x16xf32>
    %33 = arith.mulf %32, %2 : vector<16x16xf32>
    %cst_18 = arith.constant dense<0.000000e+00> : vector<16xf32>
    %34 = vector.multi_reduction <add>, %33, %cst_18 [1] : vector<16x16xf32> to vector<16xf32>
    %35 = vector.shape_cast %34 : vector<16xf32> to vector<16x1xf32>
    %cst_19 = arith.constant 1.000000e-30 : f32
    %36 = vector.broadcast %cst_19 : f32 to vector<16x1xf32>
    %37 = arith.maximumf %35, %36 : vector<16x1xf32>
    %38 = tpu.reciprocal %37 {approx = true} : vector<16x1xf32> -> vector<16x1xf32>
    %39 = vector.broadcast %38 : vector<16x1xf32> to vector<16x16xf32>
    %40 = arith.mulf %33, %39 : vector<16x16xf32>
    %cst_20 = arith.constant dense<0.000000e+00> : vector<16x8xf32>
    %41 = tpu.matmul %40, %20, %cst_20 {dimension_numbers = #tpu.dot_dimension_numbers<[1], [0], [0], [1], [0, 0, 1, 1], [], []>} : vector<16x16xf32>, vector<16x8xf32>, vector<16x8xf32> -> vector<16x8xf32>
    %42 = vector.extract_strided_slice %15 {offsets = [0, 8], sizes = [16, 8], strides = [1, 1]} : vector<16x32xf32> to vector<16x8xf32>
    %43 = vector.extract_strided_slice %16 {offsets = [0, 8], sizes = [16, 8], strides = [1, 1]} : vector<16x32xf32> to vector<16x8xf32>
    %44 = vector.extract_strided_slice %17 {offsets = [0, 8], sizes = [16, 8], strides = [1, 1]} : vector<16x32xf32> to vector<16x8xf32>
    %cst_21 = arith.constant dense<0.000000e+00> : vector<16x16xf32>
    %45 = tpu.matmul %42, %43, %cst_21 {dimension_numbers = #tpu.dot_dimension_numbers<[1], [1], [0], [0], [0, 0, 1, 0], [], []>} : vector<16x8xf32>, vector<16x8xf32>, vector<16x16xf32> -> vector<16x16xf32>
    %cst_22 = arith.constant 0.353553385 : f32
    %46 = vector.broadcast %cst_22 : f32 to vector<16x16xf32>
    %47 = arith.mulf %45, %46 : vector<16x16xf32>
    %cst_23 = arith.constant 0.000000e+00 : f32
    %48 = vector.broadcast %cst_23 : f32 to vector<16x16xf32>
    %49 = arith.cmpf ogt, %2, %48 : vector<16x16xf32>
    %cst_24 = arith.constant -1.000000e+30 : f32
    %50 = vector.broadcast %cst_24 : f32 to vector<16x16xf32>
    %51 = arith.select %49, %47, %50 : vector<16x16xi1>, vector<16x16xf32>
    %cst_25 = arith.constant dense<0xFF800000> : vector<16xf32>
    %52 = vector.multi_reduction <maximumf>, %51, %cst_25 [1] : vector<16x16xf32> to vector<16xf32>
    %53 = vector.shape_cast %52 : vector<16xf32> to vector<16x1xf32>
    %54 = vector.broadcast %53 : vector<16x1xf32> to vector<16x16xf32>
    %55 = arith.subf %51, %54 : vector<16x16xf32>
    %56 = math.exp %55 : vector<16x16xf32>
    %57 = arith.mulf %56, %2 : vector<16x16xf32>
    %cst_26 = arith.constant dense<0.000000e+00> : vector<16xf32>
    %58 = vector.multi_reduction <add>, %57, %cst_26 [1] : vector<16x16xf32> to vector<16xf32>
    %59 = vector.shape_cast %58 : vector<16xf32> to vector<16x1xf32>
    %cst_27 = arith.constant 1.000000e-30 : f32
    %60 = vector.broadcast %cst_27 : f32 to vector<16x1xf32>
    %61 = arith.maximumf %59, %60 : vector<16x1xf32>
    %62 = tpu.reciprocal %61 {approx = true} : vector<16x1xf32> -> vector<16x1xf32>
    %63 = vector.broadcast %62 : vector<16x1xf32> to vector<16x16xf32>
    %64 = arith.mulf %57, %63 : vector<16x16xf32>
    %cst_28 = arith.constant dense<0.000000e+00> : vector<16x8xf32>
    %65 = tpu.matmul %64, %44, %cst_28 {dimension_numbers = #tpu.dot_dimension_numbers<[1], [0], [0], [1], [0, 0, 1, 1], [], []>} : vector<16x16xf32>, vector<16x8xf32>, vector<16x8xf32> -> vector<16x8xf32>
    %66 = vector.extract_strided_slice %15 {offsets = [0, 16], sizes = [16, 8], strides = [1, 1]} : vector<16x32xf32> to vector<16x8xf32>
    %67 = vector.extract_strided_slice %16 {offsets = [0, 16], sizes = [16, 8], strides = [1, 1]} : vector<16x32xf32> to vector<16x8xf32>
    %68 = vector.extract_strided_slice %17 {offsets = [0, 16], sizes = [16, 8], strides = [1, 1]} : vector<16x32xf32> to vector<16x8xf32>
    %cst_29 = arith.constant dense<0.000000e+00> : vector<16x16xf32>
    %69 = tpu.matmul %66, %67, %cst_29 {dimension_numbers = #tpu.dot_dimension_numbers<[1], [1], [0], [0], [0, 0, 1, 0], [], []>} : vector<16x8xf32>, vector<16x8xf32>, vector<16x16xf32> -> vector<16x16xf32>
    %cst_30 = arith.constant 0.353553385 : f32
    %70 = vector.broadcast %cst_30 : f32 to vector<16x16xf32>
    %71 = arith.mulf %69, %70 : vector<16x16xf32>
    %cst_31 = arith.constant 0.000000e+00 : f32
    %72 = vector.broadcast %cst_31 : f32 to vector<16x16xf32>
    %73 = arith.cmpf ogt, %2, %72 : vector<16x16xf32>
    %cst_32 = arith.constant -1.000000e+30 : f32
    %74 = vector.broadcast %cst_32 : f32 to vector<16x16xf32>
    %75 = arith.select %73, %71, %74 : vector<16x16xi1>, vector<16x16xf32>
    %cst_33 = arith.constant dense<0xFF800000> : vector<16xf32>
    %76 = vector.multi_reduction <maximumf>, %75, %cst_33 [1] : vector<16x16xf32> to vector<16xf32>
    %77 = vector.shape_cast %76 : vector<16xf32> to vector<16x1xf32>
    %78 = vector.broadcast %77 : vector<16x1xf32> to vector<16x16xf32>
    %79 = arith.subf %75, %78 : vector<16x16xf32>
    %80 = math.exp %79 : vector<16x16xf32>
    %81 = arith.mulf %80, %2 : vector<16x16xf32>
    %cst_34 = arith.constant dense<0.000000e+00> : vector<16xf32>
    %82 = vector.multi_reduction <add>, %81, %cst_34 [1] : vector<16x16xf32> to vector<16xf32>
    %83 = vector.shape_cast %82 : vector<16xf32> to vector<16x1xf32>
    %cst_35 = arith.constant 1.000000e-30 : f32
    %84 = vector.broadcast %cst_35 : f32 to vector<16x1xf32>
    %85 = arith.maximumf %83, %84 : vector<16x1xf32>
    %86 = tpu.reciprocal %85 {approx = true} : vector<16x1xf32> -> vector<16x1xf32>
    %87 = vector.broadcast %86 : vector<16x1xf32> to vector<16x16xf32>
    %88 = arith.mulf %81, %87 : vector<16x16xf32>
    %cst_36 = arith.constant dense<0.000000e+00> : vector<16x8xf32>
    %89 = tpu.matmul %88, %68, %cst_36 {dimension_numbers = #tpu.dot_dimension_numbers<[1], [0], [0], [1], [0, 0, 1, 1], [], []>} : vector<16x16xf32>, vector<16x8xf32>, vector<16x8xf32> -> vector<16x8xf32>
    %90 = vector.extract_strided_slice %15 {offsets = [0, 24], sizes = [16, 8], strides = [1, 1]} : vector<16x32xf32> to vector<16x8xf32>
    %91 = vector.extract_strided_slice %16 {offsets = [0, 24], sizes = [16, 8], strides = [1, 1]} : vector<16x32xf32> to vector<16x8xf32>
    %92 = vector.extract_strided_slice %17 {offsets = [0, 24], sizes = [16, 8], strides = [1, 1]} : vector<16x32xf32> to vector<16x8xf32>
    %cst_37 = arith.constant dense<0.000000e+00> : vector<16x16xf32>
    %93 = tpu.matmul %90, %91, %cst_37 {dimension_numbers = #tpu.dot_dimension_numbers<[1], [1], [0], [0], [0, 0, 1, 0], [], []>} : vector<16x8xf32>, vector<16x8xf32>, vector<16x16xf32> -> vector<16x16xf32>
    %cst_38 = arith.constant 0.353553385 : f32
    %94 = vector.broadcast %cst_38 : f32 to vector<16x16xf32>
    %95 = arith.mulf %93, %94 : vector<16x16xf32>
    %cst_39 = arith.constant 0.000000e+00 : f32
    %96 = vector.broadcast %cst_39 : f32 to vector<16x16xf32>
    %97 = arith.cmpf ogt, %2, %96 : vector<16x16xf32>
    %cst_40 = arith.constant -1.000000e+30 : f32
    %98 = vector.broadcast %cst_40 : f32 to vector<16x16xf32>
    %99 = arith.select %97, %95, %98 : vector<16x16xi1>, vector<16x16xf32>
    %cst_41 = arith.constant dense<0xFF800000> : vector<16xf32>
    %100 = vector.multi_reduction <maximumf>, %99, %cst_41 [1] : vector<16x16xf32> to vector<16xf32>
    %101 = vector.shape_cast %100 : vector<16xf32> to vector<16x1xf32>
    %102 = vector.broadcast %101 : vector<16x1xf32> to vector<16x16xf32>
    %103 = arith.subf %99, %102 : vector<16x16xf32>
    %104 = math.exp %103 : vector<16x16xf32>
    %105 = arith.mulf %104, %2 : vector<16x16xf32>
    %cst_42 = arith.constant dense<0.000000e+00> : vector<16xf32>
    %106 = vector.multi_reduction <add>, %105, %cst_42 [1] : vector<16x16xf32> to vector<16xf32>
    %107 = vector.shape_cast %106 : vector<16xf32> to vector<16x1xf32>
    %cst_43 = arith.constant 1.000000e-30 : f32
    %108 = vector.broadcast %cst_43 : f32 to vector<16x1xf32>
    %109 = arith.maximumf %107, %108 : vector<16x1xf32>
    %110 = tpu.reciprocal %109 {approx = true} : vector<16x1xf32> -> vector<16x1xf32>
    %111 = vector.broadcast %110 : vector<16x1xf32> to vector<16x16xf32>
    %112 = arith.mulf %105, %111 : vector<16x16xf32>
    %cst_44 = arith.constant dense<0.000000e+00> : vector<16x8xf32>
    %113 = tpu.matmul %112, %92, %cst_44 {dimension_numbers = #tpu.dot_dimension_numbers<[1], [0], [0], [1], [0, 0, 1, 1], [], []>} : vector<16x16xf32>, vector<16x8xf32>, vector<16x8xf32> -> vector<16x8xf32>
    %114 = tpu.concatenate %41, %65, %89, %113 in 1 : vector<16x8xf32>, vector<16x8xf32>, vector<16x8xf32>, vector<16x8xf32> -> vector<16x32xf32>
    %c0_45 = arith.constant 0 : index
    %c0_46 = arith.constant 0 : index
    %115 = vector.load %arg7[%c0_45, %c0_46] : memref<32x32xf32, #tpu.memory_space<vmem>>, vector<32x32xf32>
    %cst_47 = arith.constant dense<0.000000e+00> : vector<16x32xf32>
    %116 = tpu.matmul %114, %115, %cst_47 {dimension_numbers = #tpu.dot_dimension_numbers<[1], [0], [0], [1], [0, 0, 1, 1], [], []>} : vector<16x32xf32>, vector<32x32xf32>, vector<16x32xf32> -> vector<16x32xf32>
    %117 = vector.broadcast %4 : vector<1x32xf32> to vector<16x32xf32>
    %118 = arith.addf %116, %117 : vector<16x32xf32>
    %119 = arith.addf %118, %0 : vector<16x32xf32>
    %120 = vector.extract_strided_slice %11 {offsets = [0, 0], sizes = [1, 32], strides = [1, 1]} : vector<4x32xf32> to vector<1x32xf32>
    %121 = vector.broadcast %120 : vector<1x32xf32> to vector<16x32xf32>
    %122 = arith.mulf %119, %121 : vector<16x32xf32>
    %123 = vector.extract_strided_slice %12 {offsets = [0, 0], sizes = [1, 32], strides = [1, 1]} : vector<4x32xf32> to vector<1x32xf32>
    %124 = vector.broadcast %123 : vector<1x32xf32> to vector<16x32xf32>
    %125 = arith.addf %122, %124 : vector<16x32xf32>
    %c0_48 = arith.constant 0 : index
    %c0_49 = arith.constant 0 : index
    %126 = vector.load %arg8[%c0_48, %c0_49] : memref<32x32xf32, #tpu.memory_space<vmem>>, vector<32x32xf32>
    %cst_50 = arith.constant dense<0.000000e+00> : vector<16x32xf32>
    %127 = tpu.matmul %125, %126, %cst_50 {dimension_numbers = #tpu.dot_dimension_numbers<[1], [0], [0], [1], [0, 0, 1, 1], [], []>} : vector<16x32xf32>, vector<32x32xf32>, vector<16x32xf32> -> vector<16x32xf32>
    %128 = vector.broadcast %5 : vector<1x32xf32> to vector<16x32xf32>
    %129 = arith.addf %127, %128 : vector<16x32xf32>
    %cst_51 = arith.constant 0.000000e+00 : f32
    %130 = vector.broadcast %cst_51 : f32 to vector<16x32xf32>
    %131 = arith.maximumf %129, %130 : vector<16x32xf32>
    %c0_52 = arith.constant 0 : index
    %c0_53 = arith.constant 0 : index
    %132 = vector.load %arg9[%c0_52, %c0_53] : memref<32x32xf32, #tpu.memory_space<vmem>>, vector<32x32xf32>
    %cst_54 = arith.constant dense<0.000000e+00> : vector<16x32xf32>
    %133 = tpu.matmul %131, %132, %cst_54 {dimension_numbers = #tpu.dot_dimension_numbers<[1], [0], [0], [1], [0, 0, 1, 1], [], []>} : vector<16x32xf32>, vector<32x32xf32>, vector<16x32xf32> -> vector<16x32xf32>
    %134 = vector.broadcast %6 : vector<1x32xf32> to vector<16x32xf32>
    %135 = arith.addf %133, %134 : vector<16x32xf32>
    %136 = arith.addf %125, %135 : vector<16x32xf32>
    %137 = vector.extract_strided_slice %11 {offsets = [1, 0], sizes = [1, 32], strides = [1, 1]} : vector<4x32xf32> to vector<1x32xf32>
    %138 = vector.broadcast %137 : vector<1x32xf32> to vector<16x32xf32>
    %139 = arith.mulf %136, %138 : vector<16x32xf32>
    %140 = vector.extract_strided_slice %12 {offsets = [1, 0], sizes = [1, 32], strides = [1, 1]} : vector<4x32xf32> to vector<1x32xf32>
    %141 = vector.broadcast %140 : vector<1x32xf32> to vector<16x32xf32>
    %142 = arith.addf %139, %141 : vector<16x32xf32>
    %c0_55 = arith.constant 0 : index
    %c0_56 = arith.constant 0 : index
    %143 = vector.load %arg17[%c0_55, %c0_56] : memref<16x32xf32, #tpu.memory_space<vmem>>, vector<16x32xf32>
    tpu.vector_store %arg17[%c0_55, %c0_56], %142 {strides = array<i32>} : memref<16x32xf32, #tpu.memory_space<vmem>>, vector<16x32xf32>,
    %c0_57 = arith.constant 0 : index
    %c0_58 = arith.constant 0 : index
    %144 = vector.load %arg4[%c0_57, %c0_58] : memref<32x16xf32, #tpu.memory_space<vmem>>, vector<32x16xf32>
    %cst_59 = arith.constant dense<0.000000e+00> : vector<32x32xf32>
    %145 = tpu.matmul %144, %15, %cst_59 {dimension_numbers = #tpu.dot_dimension_numbers<[1], [0], [0], [1], [0, 0, 1, 1], [], []>} : vector<32x16xf32>, vector<16x32xf32>, vector<32x32xf32> -> vector<32x32xf32>
    %c0_60 = arith.constant 0 : index
    %c0_61 = arith.constant 0 : index
    %146 = vector.load %arg5[%c0_60, %c0_61] : memref<32x16xf32, #tpu.memory_space<vmem>>, vector<32x16xf32>
    %cst_62 = arith.constant dense<0.000000e+00> : vector<32x32xf32>
    %147 = tpu.matmul %146, %16, %cst_62 {dimension_numbers = #tpu.dot_dimension_numbers<[1], [0], [0], [1], [0, 0, 1, 1], [], []>} : vector<32x16xf32>, vector<16x32xf32>, vector<32x32xf32> -> vector<32x32xf32>
    %c0_63 = arith.constant 0 : index
    %c0_64 = arith.constant 0 : index
    %148 = vector.load %arg10[%c0_63, %c0_64] : memref<32x32xf32, #tpu.memory_space<vmem>>, vector<32x32xf32>
    %cst_65 = arith.constant dense<0.000000e+00> : vector<32x32xf32>
    %149 = tpu.matmul %1, %148, %cst_65 {dimension_numbers = #tpu.dot_dimension_numbers<[1], [0], [0], [1], [0, 0, 1, 1], [], []>} : vector<32x32xf32>, vector<32x32xf32>, vector<32x32xf32> -> vector<32x32xf32>
    %150 = vector.broadcast %7 : vector<1x32xf32> to vector<32x32xf32>
    %151 = arith.addf %149, %150 : vector<32x32xf32>
    %152 = arith.mulf %145, %147 : vector<32x32xf32>
    %153 = arith.mulf %151, %152 : vector<32x32xf32>
    %cst_66 = arith.constant 0.353553385 : f32
    %154 = vector.broadcast %cst_66 : f32 to vector<32x32xf32>
    %155 = arith.mulf %153, %154 : vector<32x32xf32>
    %c0_67 = arith.constant 0 : index
    %c0_68 = arith.constant 0 : index
    %156 = vector.load %arg11[%c0_67, %c0_68] : memref<32x32xf32, #tpu.memory_space<vmem>>, vector<32x32xf32>
    %cst_69 = arith.constant dense<0.000000e+00> : vector<32x32xf32>
    %157 = tpu.matmul %155, %156, %cst_69 {dimension_numbers = #tpu.dot_dimension_numbers<[1], [0], [0], [1], [0, 0, 1, 1], [], []>} : vector<32x32xf32>, vector<32x32xf32>, vector<32x32xf32> -> vector<32x32xf32>
    %158 = vector.broadcast %8 : vector<1x32xf32> to vector<32x32xf32>
    %159 = arith.addf %157, %158 : vector<32x32xf32>
    %160 = arith.addf %159, %1 : vector<32x32xf32>
    %161 = vector.extract_strided_slice %11 {offsets = [2, 0], sizes = [1, 32], strides = [1, 1]} : vector<4x32xf32> to vector<1x32xf32>
    %162 = vector.broadcast %161 : vector<1x32xf32> to vector<32x32xf32>
    %163 = arith.mulf %160, %162 : vector<32x32xf32>
    %164 = vector.extract_strided_slice %12 {offsets = [2, 0], sizes = [1, 32], strides = [1, 1]} : vector<4x32xf32> to vector<1x32xf32>
    %165 = vector.broadcast %164 : vector<1x32xf32> to vector<32x32xf32>
    %166 = arith.addf %163, %165 : vector<32x32xf32>
    %c0_70 = arith.constant 0 : index
    %c0_71 = arith.constant 0 : index
    %167 = vector.load %arg12[%c0_70, %c0_71] : memref<32x32xf32, #tpu.memory_space<vmem>>, vector<32x32xf32>
    %cst_72 = arith.constant dense<0.000000e+00> : vector<32x32xf32>
    %168 = tpu.matmul %166, %167, %cst_72 {dimension_numbers = #tpu.dot_dimension_numbers<[1], [0], [0], [1], [0, 0, 1, 1], [], []>} : vector<32x32xf32>, vector<32x32xf32>, vector<32x32xf32> -> vector<32x32xf32>
    %169 = vector.broadcast %9 : vector<1x32xf32> to vector<32x32xf32>
    %170 = arith.addf %168, %169 : vector<32x32xf32>
    %cst_73 = arith.constant 0.000000e+00 : f32
    %171 = vector.broadcast %cst_73 : f32 to vector<32x32xf32>
    %172 = arith.maximumf %170, %171 : vector<32x32xf32>
    %c0_74 = arith.constant 0 : index
    %c0_75 = arith.constant 0 : index
    %173 = vector.load %arg13[%c0_74, %c0_75] : memref<32x32xf32, #tpu.memory_space<vmem>>, vector<32x32xf32>
    %cst_76 = arith.constant dense<0.000000e+00> : vector<32x32xf32>
    %174 = tpu.matmul %172, %173, %cst_76 {dimension_numbers = #tpu.dot_dimension_numbers<[1], [0], [0], [1], [0, 0, 1, 1], [], []>} : vector<32x32xf32>, vector<32x32xf32>, vector<32x32xf32> -> vector<32x32xf32>
    %175 = vector.broadcast %10 : vector<1x32xf32> to vector<32x32xf32>
    %176 = arith.addf %174, %175 : vector<32x32xf32>
    %177 = arith.addf %166, %176 : vector<32x32xf32>
    %178 = vector.extract_strided_slice %11 {offsets = [3, 0], sizes = [1, 32], strides = [1, 1]} : vector<4x32xf32> to vector<1x32xf32>
    %179 = vector.broadcast %178 : vector<1x32xf32> to vector<32x32xf32>
    %180 = arith.mulf %177, %179 : vector<32x32xf32>
    %181 = vector.extract_strided_slice %12 {offsets = [3, 0], sizes = [1, 32], strides = [1, 1]} : vector<4x32xf32> to vector<1x32xf32>
    %182 = vector.broadcast %181 : vector<1x32xf32> to vector<32x32xf32>
    %183 = arith.addf %180, %182 : vector<32x32xf32>
    %c0_77 = arith.constant 0 : index
    %c0_78 = arith.constant 0 : index
    %184 = vector.load %arg18[%c0_77, %c0_78] : memref<32x32xf32, #tpu.memory_space<vmem>>, vector<32x32xf32>
    tpu.vector_store %arg18[%c0_77, %c0_78], %183 {strides = array<i32>} : memref<32x32xf32, #tpu.memory_space<vmem>>, vector<32x32xf32>,
    return
  }
  func.func @transform_0(%arg0: i32) -> (i32, i32) {
    %c0_i32 = arith.constant 0 : i32
    %c0_i32_0 = arith.constant 0 : i32
    %c0_i32_1 = arith.constant 0 : i32
    return %c0_i32, %c0_i32_0 : i32, i32
  }
  func.func @transform_1(%arg0: i32) -> (i32, i32) {
    %c0_i32 = arith.constant 0 : i32
    %c0_i32_0 = arith.constant 0 : i32
    %c0_i32_1 = arith.constant 0 : i32
    return %c0_i32, %c0_i32_0 : i32, i32
  }
  func.func @transform_2(%arg0: i32) -> (i32, i32) {
    %c0_i32 = arith.constant 0 : i32
    %c0_i32_0 = arith.constant 0 : i32
    %c0_i32_1 = arith.constant 0 : i32
    return %c0_i32, %c0_i32_0 : i32, i32
  }
  func.func @transform_3(%arg0: i32) -> (i32, i32) {
    %c0_i32 = arith.constant 0 : i32
    %c0_i32_0 = arith.constant 0 : i32
    %c0_i32_1 = arith.constant 0 : i32
    return %c0_i32, %c0_i32_0 : i32, i32
  }
  func.func @transform_4(%arg0: i32) -> (i32, i32) {
    %c0_i32 = arith.constant 0 : i32
    %c0_i32_0 = arith.constant 0 : i32
    %c0_i32_1 = arith.constant 0 : i32
    return %c0_i32, %c0_i32_0 : i32, i32
  }
  func.func @transform_5(%arg0: i32) -> (i32, i32) {
    %c0_i32 = arith.constant 0 : i32
    %c0_i32_0 = arith.constant 0 : i32
    %c0_i32_1 = arith.constant 0 : i32
    return %c0_i32, %c0_i32_0 : i32, i32
  }
  func.func @transform_6(%arg0: i32) -> (i32, i32) {
    %c0_i32 = arith.constant 0 : i32
    %c0_i32_0 = arith.constant 0 : i32
    %c0_i32_1 = arith.constant 0 : i32
    return %c0_i32, %c0_i32_0 : i32, i32
  }
  func.func @transform_7(%arg0: i32) -> (i32, i32) {
    %c0_i32 = arith.constant 0 : i32
    %c0_i32_0 = arith.constant 0 : i32
    %c0_i32_1 = arith.constant 0 : i32
    return %c0_i32, %c0_i32_0 : i32, i32
  }
  func.func @transform_8(%arg0: i32) -> (i32, i32) {
    %c0_i32 = arith.constant 0 : i32
    %c0_i32_0 = arith.constant 0 : i32
    %c0_i32_1 = arith.constant 0 : i32
    return %c0_i32, %c0_i32_0 : i32, i32
  }
  func.func @transform_9(%arg0: i32) -> (i32, i32) {
    %c0_i32 = arith.constant 0 : i32
    %c0_i32_0 = arith.constant 0 : i32
    %c0_i32_1 = arith.constant 0 : i32
    return %c0_i32, %c0_i32_0 : i32, i32
  }
  func.func @transform_10(%arg0: i32) -> (i32, i32) {
    %c0_i32 = arith.constant 0 : i32
    %c0_i32_0 = arith.constant 0 : i32
    %c0_i32_1 = arith.constant 0 : i32
    return %c0_i32, %c0_i32_0 : i32, i32
  }
  func.func @transform_11(%arg0: i32) -> (i32, i32) {
    %c0_i32 = arith.constant 0 : i32
    %c0_i32_0 = arith.constant 0 : i32
    %c0_i32_1 = arith.constant 0 : i32
    return %c0_i32, %c0_i32_0 : i32, i32
  }
  func.func @transform_12(%arg0: i32) -> (i32, i32) {
    %c0_i32 = arith.constant 0 : i32
    %c0_i32_0 = arith.constant 0 : i32
    %c0_i32_1 = arith.constant 0 : i32
    return %c0_i32, %c0_i32_0 : i32, i32
  }
  func.func @transform_13(%arg0: i32) -> (i32, i32) {
    %c0_i32 = arith.constant 0 : i32
    %c0_i32_0 = arith.constant 0 : i32
    %c0_i32_1 = arith.constant 0 : i32
    return %c0_i32, %c0_i32_0 : i32, i32
  }
  func.func @transform_14(%arg0: i32) -> (i32, i32) {
    %c0_i32 = arith.constant 0 : i32
    %c0_i32_0 = arith.constant 0 : i32
    %c0_i32_1 = arith.constant 0 : i32
    return %c0_i32, %c0_i32_0 : i32, i32
  }
  func.func @transform_15(%arg0: i32) -> (i32, i32) {
    %c0_i32 = arith.constant 0 : i32
    %c0_i32_0 = arith.constant 0 : i32
    %c0_i32_1 = arith.constant 0 : i32
    return %c0_i32, %c0_i32_0 : i32, i32
  }
  func.func @transform_16(%arg0: i32) -> (i32, i32) {
    %c0_i32 = arith.constant 0 : i32
    %c0_i32_0 = arith.constant 0 : i32
    %c0_i32_1 = arith.constant 0 : i32
    return %c0_i32, %c0_i32_0 : i32, i32
  }
  func.func @transform_17(%arg0: i32) -> (i32, i32) {
    %c0_i32 = arith.constant 0 : i32
    %c0_i32_0 = arith.constant 0 : i32
    %c0_i32_1 = arith.constant 0 : i32
    return %c0_i32, %c0_i32_0 : i32, i32
  }
}

module attributes {stable_mosaic.version = 11 : i64} {
  func.func @_pool_mu_kernel(%arg0: i32, %arg1: memref<2x16xf32, #tpu.memory_space<vmem>>, %arg2: memref<16x32xf32, #tpu.memory_space<vmem>>, %arg3: memref<32x32xf32, #tpu.memory_space<vmem>>, %arg4: memref<1x32xf32, #tpu.memory_space<vmem>>, %arg5: memref<32x1xf32, #tpu.memory_space<vmem>>, %arg6: memref<1x1xf32, #tpu.memory_space<vmem>>, %arg7: memref<2x1xf32, #tpu.memory_space<vmem>>) attributes {dimension_semantics = [#tpu.dimension_semantics<arbitrary>], iteration_bounds = array<i64: 1>, scalar_prefetch = 0 : i64, scratch_operands = 0 : i64, tpu.core_type = #tpu.core_type<tc>, window_params = [{pipeline_mode = #tpu.pipeline_mode<synchronous>, transform_indices = @transform_0, window_bounds = array<i64: 2, 16>}, {pipeline_mode = #tpu.pipeline_mode<synchronous>, transform_indices = @transform_1, window_bounds = array<i64: 16, 32>}, {pipeline_mode = #tpu.pipeline_mode<synchronous>, transform_indices = @transform_2, window_bounds = array<i64: 32, 32>}, {pipeline_mode = #tpu.pipeline_mode<synchronous>, transform_indices = @transform_3, window_bounds = array<i64: 1, 32>}, {pipeline_mode = #tpu.pipeline_mode<synchronous>, transform_indices = @transform_4, window_bounds = array<i64: 32, 1>}, {pipeline_mode = #tpu.pipeline_mode<synchronous>, transform_indices = @transform_5, window_bounds = array<i64: 1, 1>}, {pipeline_mode = #tpu.pipeline_mode<synchronous>, transform_indices = @transform_6, window_bounds = array<i64: 2, 1>}]} {
    %c0 = arith.constant 0 : index
    %c0_0 = arith.constant 0 : index
    %0 = vector.load %arg1[%c0, %c0_0] : memref<2x16xf32, #tpu.memory_space<vmem>>, vector<2x16xf32>
    %c0_1 = arith.constant 0 : index
    %c0_2 = arith.constant 0 : index
    %1 = vector.load %arg2[%c0_1, %c0_2] : memref<16x32xf32, #tpu.memory_space<vmem>>, vector<16x32xf32>
    %cst = arith.constant dense<0.000000e+00> : vector<2x32xf32>
    %2 = tpu.matmul %0, %1, %cst {dimension_numbers = #tpu.dot_dimension_numbers<[1], [0], [0], [1], [0, 0, 1, 1], [], []>} : vector<2x16xf32>, vector<16x32xf32>, vector<2x32xf32> -> vector<2x32xf32>
    %c0_3 = arith.constant 0 : index
    %c0_4 = arith.constant 0 : index
    %3 = vector.load %arg3[%c0_3, %c0_4] : memref<32x32xf32, #tpu.memory_space<vmem>>, vector<32x32xf32>
    %cst_5 = arith.constant dense<0.000000e+00> : vector<2x32xf32>
    %4 = tpu.matmul %2, %3, %cst_5 {dimension_numbers = #tpu.dot_dimension_numbers<[1], [0], [0], [1], [0, 0, 1, 1], [], []>} : vector<2x32xf32>, vector<32x32xf32>, vector<2x32xf32> -> vector<2x32xf32>
    %c0_6 = arith.constant 0 : index
    %c0_7 = arith.constant 0 : index
    %5 = vector.load %arg4[%c0_6, %c0_7] : memref<1x32xf32, #tpu.memory_space<vmem>>, vector<1x32xf32>
    %6 = vector.broadcast %5 : vector<1x32xf32> to vector<2x32xf32>
    %7 = arith.addf %4, %6 : vector<2x32xf32>
    %cst_8 = arith.constant 0.000000e+00 : f32
    %8 = vector.broadcast %cst_8 : f32 to vector<2x32xf32>
    %9 = arith.maximumf %7, %8 : vector<2x32xf32>
    %c0_9 = arith.constant 0 : index
    %c0_10 = arith.constant 0 : index
    %10 = vector.load %arg5[%c0_9, %c0_10] : memref<32x1xf32, #tpu.memory_space<vmem>>, vector<32x1xf32>
    %cst_11 = arith.constant dense<0.000000e+00> : vector<2x1xf32>
    %11 = tpu.matmul %9, %10, %cst_11 {dimension_numbers = #tpu.dot_dimension_numbers<[1], [0], [0], [1], [0, 0, 1, 1], [], []>} : vector<2x32xf32>, vector<32x1xf32>, vector<2x1xf32> -> vector<2x1xf32>
    %c0_12 = arith.constant 0 : index
    %c0_13 = arith.constant 0 : index
    %12 = vector.load %arg6[%c0_12, %c0_13] : memref<1x1xf32, #tpu.memory_space<vmem>>, vector<1x1xf32>
    %13 = vector.broadcast %12 : vector<1x1xf32> to vector<2x1xf32>
    %14 = arith.addf %11, %13 : vector<2x1xf32>
    %c0_14 = arith.constant 0 : index
    %c0_15 = arith.constant 0 : index
    %15 = vector.load %arg7[%c0_14, %c0_15] : memref<2x1xf32, #tpu.memory_space<vmem>>, vector<2x1xf32>
    tpu.vector_store %arg7[%c0_14, %c0_15], %14 {strides = array<i32>} : memref<2x1xf32, #tpu.memory_space<vmem>>, vector<2x1xf32>,
    return
  }
  func.func @transform_0(%arg0: i32) -> (i32, i32) {
    %c0_i32 = arith.constant 0 : i32
    %c0_i32_0 = arith.constant 0 : i32
    %c0_i32_1 = arith.constant 0 : i32
    return %c0_i32, %c0_i32_0 : i32, i32
  }
  func.func @transform_1(%arg0: i32) -> (i32, i32) {
    %c0_i32 = arith.constant 0 : i32
    %c0_i32_0 = arith.constant 0 : i32
    %c0_i32_1 = arith.constant 0 : i32
    return %c0_i32, %c0_i32_0 : i32, i32
  }
  func.func @transform_2(%arg0: i32) -> (i32, i32) {
    %c0_i32 = arith.constant 0 : i32
    %c0_i32_0 = arith.constant 0 : i32
    %c0_i32_1 = arith.constant 0 : i32
    return %c0_i32, %c0_i32_0 : i32, i32
  }
  func.func @transform_3(%arg0: i32) -> (i32, i32) {
    %c0_i32 = arith.constant 0 : i32
    %c0_i32_0 = arith.constant 0 : i32
    %c0_i32_1 = arith.constant 0 : i32
    return %c0_i32, %c0_i32_0 : i32, i32
  }
  func.func @transform_4(%arg0: i32) -> (i32, i32) {
    %c0_i32 = arith.constant 0 : i32
    %c0_i32_0 = arith.constant 0 : i32
    %c0_i32_1 = arith.constant 0 : i32
    return %c0_i32, %c0_i32_0 : i32, i32
  }
  func.func @transform_5(%arg0: i32) -> (i32, i32) {
    %c0_i32 = arith.constant 0 : i32
    %c0_i32_0 = arith.constant 0 : i32
    %c0_i32_1 = arith.constant 0 : i32
    return %c0_i32, %c0_i32_0 : i32, i32
  }
  func.func @transform_6(%arg0: i32) -> (i32, i32) {
    %c0_i32 = arith.constant 0 : i32
    %c0_i32_0 = arith.constant 0 : i32
    %c0_i32_1 = arith.constant 0 : i32
    return %c0_i32, %c0_i32_0 : i32, i32
  }
}

module attributes {stable_mosaic.version = 11 : i64} {
  func.func @_gtconv_kernel(%arg0: i32, %arg1: memref<16x32xf32, #tpu.memory_space<vmem>>, %arg2: memref<32x32xf32, #tpu.memory_space<vmem>>, %arg3: memref<16x16xf32, #tpu.memory_space<vmem>>, %arg4: memref<32x16xf32, #tpu.memory_space<vmem>>, %arg5: memref<32x16xf32, #tpu.memory_space<vmem>>, %arg6: memref<32x96xf32, #tpu.memory_space<vmem>>, %arg7: memref<32x32xf32, #tpu.memory_space<vmem>>, %arg8: memref<32x32xf32, #tpu.memory_space<vmem>>, %arg9: memref<32x32xf32, #tpu.memory_space<vmem>>, %arg10: memref<32x32xf32, #tpu.memory_space<vmem>>, %arg11: memref<32x32xf32, #tpu.memory_space<vmem>>, %arg12: memref<32x32xf32, #tpu.memory_space<vmem>>, %arg13: memref<32x32xf32, #tpu.memory_space<vmem>>, %arg14: memref<8x32xf32, #tpu.memory_space<vmem>>, %arg15: memref<4x32xf32, #tpu.memory_space<vmem>>, %arg16: memref<4x32xf32, #tpu.memory_space<vmem>>, %arg17: memref<16x32xf32, #tpu.memory_space<vmem>>, %arg18: memref<32x32xf32, #tpu.memory_space<vmem>>) attributes {dimension_semantics = [#tpu.dimension_semantics<arbitrary>], iteration_bounds = array<i64: 1>, scalar_prefetch = 0 : i64, scratch_operands = 0 : i64, tpu.core_type = #tpu.core_type<tc>, window_params = [{pipeline_mode = #tpu.pipeline_mode<synchronous>, transform_indices = @transform_0, window_bounds = array<i64: 16, 32>}, {pipeline_mode = #tpu.pipeline_mode<synchronous>, transform_indices = @transform_1, window_bounds = array<i64: 32, 32>}, {pipeline_mode = #tpu.pipeline_mode<synchronous>, transform_indices = @transform_2, window_bounds = array<i64: 16, 16>}, {pipeline_mode = #tpu.pipeline_mode<synchronous>, transform_indices = @transform_3, window_bounds = array<i64: 32, 16>}, {pipeline_mode = #tpu.pipeline_mode<synchronous>, transform_indices = @transform_4, window_bounds = array<i64: 32, 16>}, {pipeline_mode = #tpu.pipeline_mode<synchronous>, transform_indices = @transform_5, window_bounds = array<i64: 32, 96>}, {pipeline_mode = #tpu.pipeline_mode<synchronous>, transform_indices = @transform_6, window_bounds = array<i64: 32, 32>}, {pipeline_mode = #tpu.pipeline_mode<synchronous>, transform_indices = @transform_7, window_bounds = array<i64: 32, 32>}, {pipeline_mode = #tpu.pipeline_mode<synchronous>, transform_indices = @transform_8, window_bounds = array<i64: 32, 32>}, {pipeline_mode = #tpu.pipeline_mode<synchronous>, transform_indices = @transform_9, window_bounds = array<i64: 32, 32>}, {pipeline_mode = #tpu.pipeline_mode<synchronous>, transform_indices = @transform_10, window_bounds = array<i64: 32, 32>}, {pipeline_mode = #tpu.pipeline_mode<synchronous>, transform_indices = @transform_11, window_bounds = array<i64: 32, 32>}, {pipeline_mode = #tpu.pipeline_mode<synchronous>, transform_indices = @transform_12, window_bounds = array<i64: 32, 32>}, {pipeline_mode = #tpu.pipeline_mode<synchronous>, transform_indices = @transform_13, window_bounds = array<i64: 8, 32>}, {pipeline_mode = #tpu.pipeline_mode<synchronous>, transform_indices = @transform_14, window_bounds = array<i64: 4, 32>}, {pipeline_mode = #tpu.pipeline_mode<synchronous>, transform_indices = @transform_15, window_bounds = array<i64: 4, 32>}, {pipeline_mode = #tpu.pipeline_mode<synchronous>, transform_indices = @transform_16, window_bounds = array<i64: 16, 32>}, {pipeline_mode = #tpu.pipeline_mode<synchronous>, transform_indices = @transform_17, window_bounds = array<i64: 32, 32>}]} {
    %c0 = arith.constant 0 : index
    %c0_0 = arith.constant 0 : index
    %0 = vector.load %arg1[%c0, %c0_0] : memref<16x32xf32, #tpu.memory_space<vmem>>, vector<16x32xf32>
    %c0_1 = arith.constant 0 : index
    %c0_2 = arith.constant 0 : index
    %1 = vector.load %arg2[%c0_1, %c0_2] : memref<32x32xf32, #tpu.memory_space<vmem>>, vector<32x32xf32>
    %c0_3 = arith.constant 0 : index
    %c0_4 = arith.constant 0 : index
    %2 = vector.load %arg3[%c0_3, %c0_4] : memref<16x16xf32, #tpu.memory_space<vmem>>, vector<16x16xf32>
    %c0_5 = arith.constant 0 : index
    %c0_6 = arith.constant 0 : index
    %3 = vector.load %arg14[%c0_5, %c0_6] : memref<8x32xf32, #tpu.memory_space<vmem>>, vector<8x32xf32>
    %4 = vector.extract_strided_slice %3 {offsets = [0, 0], sizes = [1, 32], strides = [1, 1]} : vector<8x32xf32> to vector<1x32xf32>
    %5 = vector.extract_strided_slice %3 {offsets = [1, 0], sizes = [1, 32], strides = [1, 1]} : vector<8x32xf32> to vector<1x32xf32>
    %6 = vector.extract_strided_slice %3 {offsets = [2, 0], sizes = [1, 32], strides = [1, 1]} : vector<8x32xf32> to vector<1x32xf32>
    %7 = vector.extract_strided_slice %3 {offsets = [3, 0], sizes = [1, 32], strides = [1, 1]} : vector<8x32xf32> to vector<1x32xf32>
    %8 = vector.extract_strided_slice %3 {offsets = [4, 0], sizes = [1, 32], strides = [1, 1]} : vector<8x32xf32> to vector<1x32xf32>
    %9 = vector.extract_strided_slice %3 {offsets = [5, 0], sizes = [1, 32], strides = [1, 1]} : vector<8x32xf32> to vector<1x32xf32>
    %10 = vector.extract_strided_slice %3 {offsets = [6, 0], sizes = [1, 32], strides = [1, 1]} : vector<8x32xf32> to vector<1x32xf32>
    %c0_7 = arith.constant 0 : index
    %c0_8 = arith.constant 0 : index
    %11 = vector.load %arg15[%c0_7, %c0_8] : memref<4x32xf32, #tpu.memory_space<vmem>>, vector<4x32xf32>
    %c0_9 = arith.constant 0 : index
    %c0_10 = arith.constant 0 : index
    %12 = vector.load %arg16[%c0_9, %c0_10] : memref<4x32xf32, #tpu.memory_space<vmem>>, vector<4x32xf32>
    %c0_11 = arith.constant 0 : index
    %c0_12 = arith.constant 0 : index
    %13 = vector.load %arg6[%c0_11, %c0_12] : memref<32x96xf32, #tpu.memory_space<vmem>>, vector<32x96xf32>
    %cst = arith.constant dense<0.000000e+00> : vector<16x96xf32>
    %14 = tpu.matmul %0, %13, %cst {dimension_numbers = #tpu.dot_dimension_numbers<[1], [0], [0], [1], [0, 0, 1, 1], [], []>} : vector<16x32xf32>, vector<32x96xf32>, vector<16x96xf32> -> vector<16x96xf32>
    %15 = vector.extract_strided_slice %14 {offsets = [0, 0], sizes = [16, 32], strides = [1, 1]} : vector<16x96xf32> to vector<16x32xf32>
    %16 = vector.extract_strided_slice %14 {offsets = [0, 32], sizes = [16, 32], strides = [1, 1]} : vector<16x96xf32> to vector<16x32xf32>
    %17 = vector.extract_strided_slice %14 {offsets = [0, 64], sizes = [16, 32], strides = [1, 1]} : vector<16x96xf32> to vector<16x32xf32>
    %18 = vector.extract_strided_slice %15 {offsets = [0, 0], sizes = [16, 8], strides = [1, 1]} : vector<16x32xf32> to vector<16x8xf32>
    %19 = vector.extract_strided_slice %16 {offsets = [0, 0], sizes = [16, 8], strides = [1, 1]} : vector<16x32xf32> to vector<16x8xf32>
    %20 = vector.extract_strided_slice %17 {offsets = [0, 0], sizes = [16, 8], strides = [1, 1]} : vector<16x32xf32> to vector<16x8xf32>
    %cst_13 = arith.constant dense<0.000000e+00> : vector<16x16xf32>
    %21 = tpu.matmul %18, %19, %cst_13 {dimension_numbers = #tpu.dot_dimension_numbers<[1], [1], [0], [0], [0, 0, 1, 0], [], []>} : vector<16x8xf32>, vector<16x8xf32>, vector<16x16xf32> -> vector<16x16xf32>
    %cst_14 = arith.constant 0.353553385 : f32
    %22 = vector.broadcast %cst_14 : f32 to vector<16x16xf32>
    %23 = arith.mulf %21, %22 : vector<16x16xf32>
    %cst_15 = arith.constant 0.000000e+00 : f32
    %24 = vector.broadcast %cst_15 : f32 to vector<16x16xf32>
    %25 = arith.cmpf ogt, %2, %24 : vector<16x16xf32>
    %cst_16 = arith.constant -1.000000e+30 : f32
    %26 = vector.broadcast %cst_16 : f32 to vector<16x16xf32>
    %27 = arith.select %25, %23, %26 : vector<16x16xi1>, vector<16x16xf32>
    %cst_17 = arith.constant dense<0xFF800000> : vector<16xf32>
    %28 = vector.multi_reduction <maximumf>, %27, %cst_17 [1] : vector<16x16xf32> to vector<16xf32>
    %29 = vector.shape_cast %28 : vector<16xf32> to vector<16x1xf32>
    %30 = vector.broadcast %29 : vector<16x1xf32> to vector<16x16xf32>
    %31 = arith.subf %27, %30 : vector<16x16xf32>
    %32 = math.exp %31 : vector<16x16xf32>
    %33 = arith.mulf %32, %2 : vector<16x16xf32>
    %cst_18 = arith.constant dense<0.000000e+00> : vector<16xf32>
    %34 = vector.multi_reduction <add>, %33, %cst_18 [1] : vector<16x16xf32> to vector<16xf32>
    %35 = vector.shape_cast %34 : vector<16xf32> to vector<16x1xf32>
    %cst_19 = arith.constant 1.000000e-30 : f32
    %36 = vector.broadcast %cst_19 : f32 to vector<16x1xf32>
    %37 = arith.maximumf %35, %36 : vector<16x1xf32>
    %38 = tpu.reciprocal %37 {approx = true} : vector<16x1xf32> -> vector<16x1xf32>
    %39 = vector.broadcast %38 : vector<16x1xf32> to vector<16x16xf32>
    %40 = arith.mulf %33, %39 : vector<16x16xf32>
    %cst_20 = arith.constant dense<0.000000e+00> : vector<16x8xf32>
    %41 = tpu.matmul %40, %20, %cst_20 {dimension_numbers = #tpu.dot_dimension_numbers<[1], [0], [0], [1], [0, 0, 1, 1], [], []>} : vector<16x16xf32>, vector<16x8xf32>, vector<16x8xf32> -> vector<16x8xf32>
    %42 = vector.extract_strided_slice %15 {offsets = [0, 8], sizes = [16, 8], strides = [1, 1]} : vector<16x32xf32> to vector<16x8xf32>
    %43 = vector.extract_strided_slice %16 {offsets = [0, 8], sizes = [16, 8], strides = [1, 1]} : vector<16x32xf32> to vector<16x8xf32>
    %44 = vector.extract_strided_slice %17 {offsets = [0, 8], sizes = [16, 8], strides = [1, 1]} : vector<16x32xf32> to vector<16x8xf32>
    %cst_21 = arith.constant dense<0.000000e+00> : vector<16x16xf32>
    %45 = tpu.matmul %42, %43, %cst_21 {dimension_numbers = #tpu.dot_dimension_numbers<[1], [1], [0], [0], [0, 0, 1, 0], [], []>} : vector<16x8xf32>, vector<16x8xf32>, vector<16x16xf32> -> vector<16x16xf32>
    %cst_22 = arith.constant 0.353553385 : f32
    %46 = vector.broadcast %cst_22 : f32 to vector<16x16xf32>
    %47 = arith.mulf %45, %46 : vector<16x16xf32>
    %cst_23 = arith.constant 0.000000e+00 : f32
    %48 = vector.broadcast %cst_23 : f32 to vector<16x16xf32>
    %49 = arith.cmpf ogt, %2, %48 : vector<16x16xf32>
    %cst_24 = arith.constant -1.000000e+30 : f32
    %50 = vector.broadcast %cst_24 : f32 to vector<16x16xf32>
    %51 = arith.select %49, %47, %50 : vector<16x16xi1>, vector<16x16xf32>
    %cst_25 = arith.constant dense<0xFF800000> : vector<16xf32>
    %52 = vector.multi_reduction <maximumf>, %51, %cst_25 [1] : vector<16x16xf32> to vector<16xf32>
    %53 = vector.shape_cast %52 : vector<16xf32> to vector<16x1xf32>
    %54 = vector.broadcast %53 : vector<16x1xf32> to vector<16x16xf32>
    %55 = arith.subf %51, %54 : vector<16x16xf32>
    %56 = math.exp %55 : vector<16x16xf32>
    %57 = arith.mulf %56, %2 : vector<16x16xf32>
    %cst_26 = arith.constant dense<0.000000e+00> : vector<16xf32>
    %58 = vector.multi_reduction <add>, %57, %cst_26 [1] : vector<16x16xf32> to vector<16xf32>
    %59 = vector.shape_cast %58 : vector<16xf32> to vector<16x1xf32>
    %cst_27 = arith.constant 1.000000e-30 : f32
    %60 = vector.broadcast %cst_27 : f32 to vector<16x1xf32>
    %61 = arith.maximumf %59, %60 : vector<16x1xf32>
    %62 = tpu.reciprocal %61 {approx = true} : vector<16x1xf32> -> vector<16x1xf32>
    %63 = vector.broadcast %62 : vector<16x1xf32> to vector<16x16xf32>
    %64 = arith.mulf %57, %63 : vector<16x16xf32>
    %cst_28 = arith.constant dense<0.000000e+00> : vector<16x8xf32>
    %65 = tpu.matmul %64, %44, %cst_28 {dimension_numbers = #tpu.dot_dimension_numbers<[1], [0], [0], [1], [0, 0, 1, 1], [], []>} : vector<16x16xf32>, vector<16x8xf32>, vector<16x8xf32> -> vector<16x8xf32>
    %66 = vector.extract_strided_slice %15 {offsets = [0, 16], sizes = [16, 8], strides = [1, 1]} : vector<16x32xf32> to vector<16x8xf32>
    %67 = vector.extract_strided_slice %16 {offsets = [0, 16], sizes = [16, 8], strides = [1, 1]} : vector<16x32xf32> to vector<16x8xf32>
    %68 = vector.extract_strided_slice %17 {offsets = [0, 16], sizes = [16, 8], strides = [1, 1]} : vector<16x32xf32> to vector<16x8xf32>
    %cst_29 = arith.constant dense<0.000000e+00> : vector<16x16xf32>
    %69 = tpu.matmul %66, %67, %cst_29 {dimension_numbers = #tpu.dot_dimension_numbers<[1], [1], [0], [0], [0, 0, 1, 0], [], []>} : vector<16x8xf32>, vector<16x8xf32>, vector<16x16xf32> -> vector<16x16xf32>
    %cst_30 = arith.constant 0.353553385 : f32
    %70 = vector.broadcast %cst_30 : f32 to vector<16x16xf32>
    %71 = arith.mulf %69, %70 : vector<16x16xf32>
    %cst_31 = arith.constant 0.000000e+00 : f32
    %72 = vector.broadcast %cst_31 : f32 to vector<16x16xf32>
    %73 = arith.cmpf ogt, %2, %72 : vector<16x16xf32>
    %cst_32 = arith.constant -1.000000e+30 : f32
    %74 = vector.broadcast %cst_32 : f32 to vector<16x16xf32>
    %75 = arith.select %73, %71, %74 : vector<16x16xi1>, vector<16x16xf32>
    %cst_33 = arith.constant dense<0xFF800000> : vector<16xf32>
    %76 = vector.multi_reduction <maximumf>, %75, %cst_33 [1] : vector<16x16xf32> to vector<16xf32>
    %77 = vector.shape_cast %76 : vector<16xf32> to vector<16x1xf32>
    %78 = vector.broadcast %77 : vector<16x1xf32> to vector<16x16xf32>
    %79 = arith.subf %75, %78 : vector<16x16xf32>
    %80 = math.exp %79 : vector<16x16xf32>
    %81 = arith.mulf %80, %2 : vector<16x16xf32>
    %cst_34 = arith.constant dense<0.000000e+00> : vector<16xf32>
    %82 = vector.multi_reduction <add>, %81, %cst_34 [1] : vector<16x16xf32> to vector<16xf32>
    %83 = vector.shape_cast %82 : vector<16xf32> to vector<16x1xf32>
    %cst_35 = arith.constant 1.000000e-30 : f32
    %84 = vector.broadcast %cst_35 : f32 to vector<16x1xf32>
    %85 = arith.maximumf %83, %84 : vector<16x1xf32>
    %86 = tpu.reciprocal %85 {approx = true} : vector<16x1xf32> -> vector<16x1xf32>
    %87 = vector.broadcast %86 : vector<16x1xf32> to vector<16x16xf32>
    %88 = arith.mulf %81, %87 : vector<16x16xf32>
    %cst_36 = arith.constant dense<0.000000e+00> : vector<16x8xf32>
    %89 = tpu.matmul %88, %68, %cst_36 {dimension_numbers = #tpu.dot_dimension_numbers<[1], [0], [0], [1], [0, 0, 1, 1], [], []>} : vector<16x16xf32>, vector<16x8xf32>, vector<16x8xf32> -> vector<16x8xf32>
    %90 = vector.extract_strided_slice %15 {offsets = [0, 24], sizes = [16, 8], strides = [1, 1]} : vector<16x32xf32> to vector<16x8xf32>
    %91 = vector.extract_strided_slice %16 {offsets = [0, 24], sizes = [16, 8], strides = [1, 1]} : vector<16x32xf32> to vector<16x8xf32>
    %92 = vector.extract_strided_slice %17 {offsets = [0, 24], sizes = [16, 8], strides = [1, 1]} : vector<16x32xf32> to vector<16x8xf32>
    %cst_37 = arith.constant dense<0.000000e+00> : vector<16x16xf32>
    %93 = tpu.matmul %90, %91, %cst_37 {dimension_numbers = #tpu.dot_dimension_numbers<[1], [1], [0], [0], [0, 0, 1, 0], [], []>} : vector<16x8xf32>, vector<16x8xf32>, vector<16x16xf32> -> vector<16x16xf32>
    %cst_38 = arith.constant 0.353553385 : f32
    %94 = vector.broadcast %cst_38 : f32 to vector<16x16xf32>
    %95 = arith.mulf %93, %94 : vector<16x16xf32>
    %cst_39 = arith.constant 0.000000e+00 : f32
    %96 = vector.broadcast %cst_39 : f32 to vector<16x16xf32>
    %97 = arith.cmpf ogt, %2, %96 : vector<16x16xf32>
    %cst_40 = arith.constant -1.000000e+30 : f32
    %98 = vector.broadcast %cst_40 : f32 to vector<16x16xf32>
    %99 = arith.select %97, %95, %98 : vector<16x16xi1>, vector<16x16xf32>
    %cst_41 = arith.constant dense<0xFF800000> : vector<16xf32>
    %100 = vector.multi_reduction <maximumf>, %99, %cst_41 [1] : vector<16x16xf32> to vector<16xf32>
    %101 = vector.shape_cast %100 : vector<16xf32> to vector<16x1xf32>
    %102 = vector.broadcast %101 : vector<16x1xf32> to vector<16x16xf32>
    %103 = arith.subf %99, %102 : vector<16x16xf32>
    %104 = math.exp %103 : vector<16x16xf32>
    %105 = arith.mulf %104, %2 : vector<16x16xf32>
    %cst_42 = arith.constant dense<0.000000e+00> : vector<16xf32>
    %106 = vector.multi_reduction <add>, %105, %cst_42 [1] : vector<16x16xf32> to vector<16xf32>
    %107 = vector.shape_cast %106 : vector<16xf32> to vector<16x1xf32>
    %cst_43 = arith.constant 1.000000e-30 : f32
    %108 = vector.broadcast %cst_43 : f32 to vector<16x1xf32>
    %109 = arith.maximumf %107, %108 : vector<16x1xf32>
    %110 = tpu.reciprocal %109 {approx = true} : vector<16x1xf32> -> vector<16x1xf32>
    %111 = vector.broadcast %110 : vector<16x1xf32> to vector<16x16xf32>
    %112 = arith.mulf %105, %111 : vector<16x16xf32>
    %cst_44 = arith.constant dense<0.000000e+00> : vector<16x8xf32>
    %113 = tpu.matmul %112, %92, %cst_44 {dimension_numbers = #tpu.dot_dimension_numbers<[1], [0], [0], [1], [0, 0, 1, 1], [], []>} : vector<16x16xf32>, vector<16x8xf32>, vector<16x8xf32> -> vector<16x8xf32>
    %114 = tpu.concatenate %41, %65, %89, %113 in 1 : vector<16x8xf32>, vector<16x8xf32>, vector<16x8xf32>, vector<16x8xf32> -> vector<16x32xf32>
    %c0_45 = arith.constant 0 : index
    %c0_46 = arith.constant 0 : index
    %115 = vector.load %arg7[%c0_45, %c0_46] : memref<32x32xf32, #tpu.memory_space<vmem>>, vector<32x32xf32>
    %cst_47 = arith.constant dense<0.000000e+00> : vector<16x32xf32>
    %116 = tpu.matmul %114, %115, %cst_47 {dimension_numbers = #tpu.dot_dimension_numbers<[1], [0], [0], [1], [0, 0, 1, 1], [], []>} : vector<16x32xf32>, vector<32x32xf32>, vector<16x32xf32> -> vector<16x32xf32>
    %117 = vector.broadcast %4 : vector<1x32xf32> to vector<16x32xf32>
    %118 = arith.addf %116, %117 : vector<16x32xf32>
    %119 = arith.addf %118, %0 : vector<16x32xf32>
    %120 = vector.extract_strided_slice %11 {offsets = [0, 0], sizes = [1, 32], strides = [1, 1]} : vector<4x32xf32> to vector<1x32xf32>
    %121 = vector.broadcast %120 : vector<1x32xf32> to vector<16x32xf32>
    %122 = arith.mulf %119, %121 : vector<16x32xf32>
    %123 = vector.extract_strided_slice %12 {offsets = [0, 0], sizes = [1, 32], strides = [1, 1]} : vector<4x32xf32> to vector<1x32xf32>
    %124 = vector.broadcast %123 : vector<1x32xf32> to vector<16x32xf32>
    %125 = arith.addf %122, %124 : vector<16x32xf32>
    %c0_48 = arith.constant 0 : index
    %c0_49 = arith.constant 0 : index
    %126 = vector.load %arg8[%c0_48, %c0_49] : memref<32x32xf32, #tpu.memory_space<vmem>>, vector<32x32xf32>
    %cst_50 = arith.constant dense<0.000000e+00> : vector<16x32xf32>
    %127 = tpu.matmul %125, %126, %cst_50 {dimension_numbers = #tpu.dot_dimension_numbers<[1], [0], [0], [1], [0, 0, 1, 1], [], []>} : vector<16x32xf32>, vector<32x32xf32>, vector<16x32xf32> -> vector<16x32xf32>
    %128 = vector.broadcast %5 : vector<1x32xf32> to vector<16x32xf32>
    %129 = arith.addf %127, %128 : vector<16x32xf32>
    %cst_51 = arith.constant 0.000000e+00 : f32
    %130 = vector.broadcast %cst_51 : f32 to vector<16x32xf32>
    %131 = arith.maximumf %129, %130 : vector<16x32xf32>
    %c0_52 = arith.constant 0 : index
    %c0_53 = arith.constant 0 : index
    %132 = vector.load %arg9[%c0_52, %c0_53] : memref<32x32xf32, #tpu.memory_space<vmem>>, vector<32x32xf32>
    %cst_54 = arith.constant dense<0.000000e+00> : vector<16x32xf32>
    %133 = tpu.matmul %131, %132, %cst_54 {dimension_numbers = #tpu.dot_dimension_numbers<[1], [0], [0], [1], [0, 0, 1, 1], [], []>} : vector<16x32xf32>, vector<32x32xf32>, vector<16x32xf32> -> vector<16x32xf32>
    %134 = vector.broadcast %6 : vector<1x32xf32> to vector<16x32xf32>
    %135 = arith.addf %133, %134 : vector<16x32xf32>
    %136 = arith.addf %125, %135 : vector<16x32xf32>
    %137 = vector.extract_strided_slice %11 {offsets = [1, 0], sizes = [1, 32], strides = [1, 1]} : vector<4x32xf32> to vector<1x32xf32>
    %138 = vector.broadcast %137 : vector<1x32xf32> to vector<16x32xf32>
    %139 = arith.mulf %136, %138 : vector<16x32xf32>
    %140 = vector.extract_strided_slice %12 {offsets = [1, 0], sizes = [1, 32], strides = [1, 1]} : vector<4x32xf32> to vector<1x32xf32>
    %141 = vector.broadcast %140 : vector<1x32xf32> to vector<16x32xf32>
    %142 = arith.addf %139, %141 : vector<16x32xf32>
    %c0_55 = arith.constant 0 : index
    %c0_56 = arith.constant 0 : index
    %143 = vector.load %arg17[%c0_55, %c0_56] : memref<16x32xf32, #tpu.memory_space<vmem>>, vector<16x32xf32>
    tpu.vector_store %arg17[%c0_55, %c0_56], %142 {strides = array<i32>} : memref<16x32xf32, #tpu.memory_space<vmem>>, vector<16x32xf32>,
    %c0_57 = arith.constant 0 : index
    %c0_58 = arith.constant 0 : index
    %144 = vector.load %arg4[%c0_57, %c0_58] : memref<32x16xf32, #tpu.memory_space<vmem>>, vector<32x16xf32>
    %cst_59 = arith.constant dense<0.000000e+00> : vector<32x32xf32>
    %145 = tpu.matmul %144, %15, %cst_59 {dimension_numbers = #tpu.dot_dimension_numbers<[1], [0], [0], [1], [0, 0, 1, 1], [], []>} : vector<32x16xf32>, vector<16x32xf32>, vector<32x32xf32> -> vector<32x32xf32>
    %c0_60 = arith.constant 0 : index
    %c0_61 = arith.constant 0 : index
    %146 = vector.load %arg5[%c0_60, %c0_61] : memref<32x16xf32, #tpu.memory_space<vmem>>, vector<32x16xf32>
    %cst_62 = arith.constant dense<0.000000e+00> : vector<32x32xf32>
    %147 = tpu.matmul %146, %16, %cst_62 {dimension_numbers = #tpu.dot_dimension_numbers<[1], [0], [0], [1], [0, 0, 1, 1], [], []>} : vector<32x16xf32>, vector<16x32xf32>, vector<32x32xf32> -> vector<32x32xf32>
    %c0_63 = arith.constant 0 : index
    %c0_64 = arith.constant 0 : index
    %148 = vector.load %arg10[%c0_63, %c0_64] : memref<32x32xf32, #tpu.memory_space<vmem>>, vector<32x32xf32>
    %cst_65 = arith.constant dense<0.000000e+00> : vector<32x32xf32>
    %149 = tpu.matmul %1, %148, %cst_65 {dimension_numbers = #tpu.dot_dimension_numbers<[1], [0], [0], [1], [0, 0, 1, 1], [], []>} : vector<32x32xf32>, vector<32x32xf32>, vector<32x32xf32> -> vector<32x32xf32>
    %150 = vector.broadcast %7 : vector<1x32xf32> to vector<32x32xf32>
    %151 = arith.addf %149, %150 : vector<32x32xf32>
    %152 = arith.mulf %145, %147 : vector<32x32xf32>
    %153 = arith.mulf %151, %152 : vector<32x32xf32>
    %cst_66 = arith.constant 0.353553385 : f32
    %154 = vector.broadcast %cst_66 : f32 to vector<32x32xf32>
    %155 = arith.mulf %153, %154 : vector<32x32xf32>
    %c0_67 = arith.constant 0 : index
    %c0_68 = arith.constant 0 : index
    %156 = vector.load %arg11[%c0_67, %c0_68] : memref<32x32xf32, #tpu.memory_space<vmem>>, vector<32x32xf32>
    %cst_69 = arith.constant dense<0.000000e+00> : vector<32x32xf32>
    %157 = tpu.matmul %155, %156, %cst_69 {dimension_numbers = #tpu.dot_dimension_numbers<[1], [0], [0], [1], [0, 0, 1, 1], [], []>} : vector<32x32xf32>, vector<32x32xf32>, vector<32x32xf32> -> vector<32x32xf32>
    %158 = vector.broadcast %8 : vector<1x32xf32> to vector<32x32xf32>
    %159 = arith.addf %157, %158 : vector<32x32xf32>
    %160 = arith.addf %159, %1 : vector<32x32xf32>
    %161 = vector.extract_strided_slice %11 {offsets = [2, 0], sizes = [1, 32], strides = [1, 1]} : vector<4x32xf32> to vector<1x32xf32>
    %162 = vector.broadcast %161 : vector<1x32xf32> to vector<32x32xf32>
    %163 = arith.mulf %160, %162 : vector<32x32xf32>
    %164 = vector.extract_strided_slice %12 {offsets = [2, 0], sizes = [1, 32], strides = [1, 1]} : vector<4x32xf32> to vector<1x32xf32>
    %165 = vector.broadcast %164 : vector<1x32xf32> to vector<32x32xf32>
    %166 = arith.addf %163, %165 : vector<32x32xf32>
    %c0_70 = arith.constant 0 : index
    %c0_71 = arith.constant 0 : index
    %167 = vector.load %arg12[%c0_70, %c0_71] : memref<32x32xf32, #tpu.memory_space<vmem>>, vector<32x32xf32>
    %cst_72 = arith.constant dense<0.000000e+00> : vector<32x32xf32>
    %168 = tpu.matmul %166, %167, %cst_72 {dimension_numbers = #tpu.dot_dimension_numbers<[1], [0], [0], [1], [0, 0, 1, 1], [], []>} : vector<32x32xf32>, vector<32x32xf32>, vector<32x32xf32> -> vector<32x32xf32>
    %169 = vector.broadcast %9 : vector<1x32xf32> to vector<32x32xf32>
    %170 = arith.addf %168, %169 : vector<32x32xf32>
    %cst_73 = arith.constant 0.000000e+00 : f32
    %171 = vector.broadcast %cst_73 : f32 to vector<32x32xf32>
    %172 = arith.maximumf %170, %171 : vector<32x32xf32>
    %c0_74 = arith.constant 0 : index
    %c0_75 = arith.constant 0 : index
    %173 = vector.load %arg13[%c0_74, %c0_75] : memref<32x32xf32, #tpu.memory_space<vmem>>, vector<32x32xf32>
    %cst_76 = arith.constant dense<0.000000e+00> : vector<32x32xf32>
    %174 = tpu.matmul %172, %173, %cst_76 {dimension_numbers = #tpu.dot_dimension_numbers<[1], [0], [0], [1], [0, 0, 1, 1], [], []>} : vector<32x32xf32>, vector<32x32xf32>, vector<32x32xf32> -> vector<32x32xf32>
    %175 = vector.broadcast %10 : vector<1x32xf32> to vector<32x32xf32>
    %176 = arith.addf %174, %175 : vector<32x32xf32>
    %177 = arith.addf %166, %176 : vector<32x32xf32>
    %178 = vector.extract_strided_slice %11 {offsets = [3, 0], sizes = [1, 32], strides = [1, 1]} : vector<4x32xf32> to vector<1x32xf32>
    %179 = vector.broadcast %178 : vector<1x32xf32> to vector<32x32xf32>
    %180 = arith.mulf %177, %179 : vector<32x32xf32>
    %181 = vector.extract_strided_slice %12 {offsets = [3, 0], sizes = [1, 32], strides = [1, 1]} : vector<4x32xf32> to vector<1x32xf32>
    %182 = vector.broadcast %181 : vector<1x32xf32> to vector<32x32xf32>
    %183 = arith.addf %180, %182 : vector<32x32xf32>
    %c0_77 = arith.constant 0 : index
    %c0_78 = arith.constant 0 : index
    %184 = vector.load %arg18[%c0_77, %c0_78] : memref<32x32xf32, #tpu.memory_space<vmem>>, vector<32x32xf32>
    tpu.vector_store %arg18[%c0_77, %c0_78], %183 {strides = array<i32>} : memref<32x32xf32, #tpu.memory_space<vmem>>, vector<32x32xf32>,
    return
  }
  func.func @transform_0(%arg0: i32) -> (i32, i32) {
    %c0_i32 = arith.constant 0 : i32
    %c0_i32_0 = arith.constant 0 : i32
    %c0_i32_1 = arith.constant 0 : i32
    return %c0_i32, %c0_i32_0 : i32, i32
  }
  func.func @transform_1(%arg0: i32) -> (i32, i32) {
    %c0_i32 = arith.constant 0 : i32
    %c0_i32_0 = arith.constant 0 : i32
    %c0_i32_1 = arith.constant 0 : i32
    return %c0_i32, %c0_i32_0 : i32, i32
  }
  func.func @transform_2(%arg0: i32) -> (i32, i32) {
    %c0_i32 = arith.constant 0 : i32
    %c0_i32_0 = arith.constant 0 : i32
    %c0_i32_1 = arith.constant 0 : i32
    return %c0_i32, %c0_i32_0 : i32, i32
  }
  func.func @transform_3(%arg0: i32) -> (i32, i32) {
    %c0_i32 = arith.constant 0 : i32
    %c0_i32_0 = arith.constant 0 : i32
    %c0_i32_1 = arith.constant 0 : i32
    return %c0_i32, %c0_i32_0 : i32, i32
  }
  func.func @transform_4(%arg0: i32) -> (i32, i32) {
    %c0_i32 = arith.constant 0 : i32
    %c0_i32_0 = arith.constant 0 : i32
    %c0_i32_1 = arith.constant 0 : i32
    return %c0_i32, %c0_i32_0 : i32, i32
  }
  func.func @transform_5(%arg0: i32) -> (i32, i32) {
    %c0_i32 = arith.constant 0 : i32
    %c0_i32_0 = arith.constant 0 : i32
    %c0_i32_1 = arith.constant 0 : i32
    return %c0_i32, %c0_i32_0 : i32, i32
  }
  func.func @transform_6(%arg0: i32) -> (i32, i32) {
    %c0_i32 = arith.constant 0 : i32
    %c0_i32_0 = arith.constant 0 : i32
    %c0_i32_1 = arith.constant 0 : i32
    return %c0_i32, %c0_i32_0 : i32, i32
  }
  func.func @transform_7(%arg0: i32) -> (i32, i32) {
    %c0_i32 = arith.constant 0 : i32
    %c0_i32_0 = arith.constant 0 : i32
    %c0_i32_1 = arith.constant 0 : i32
    return %c0_i32, %c0_i32_0 : i32, i32
  }
  func.func @transform_8(%arg0: i32) -> (i32, i32) {
    %c0_i32 = arith.constant 0 : i32
    %c0_i32_0 = arith.constant 0 : i32
    %c0_i32_1 = arith.constant 0 : i32
    return %c0_i32, %c0_i32_0 : i32, i32
  }
  func.func @transform_9(%arg0: i32) -> (i32, i32) {
    %c0_i32 = arith.constant 0 : i32
    %c0_i32_0 = arith.constant 0 : i32
    %c0_i32_1 = arith.constant 0 : i32
    return %c0_i32, %c0_i32_0 : i32, i32
  }
  func.func @transform_10(%arg0: i32) -> (i32, i32) {
    %c0_i32 = arith.constant 0 : i32
    %c0_i32_0 = arith.constant 0 : i32
    %c0_i32_1 = arith.constant 0 : i32
    return %c0_i32, %c0_i32_0 : i32, i32
  }
  func.func @transform_11(%arg0: i32) -> (i32, i32) {
    %c0_i32 = arith.constant 0 : i32
    %c0_i32_0 = arith.constant 0 : i32
    %c0_i32_1 = arith.constant 0 : i32
    return %c0_i32, %c0_i32_0 : i32, i32
  }
  func.func @transform_12(%arg0: i32) -> (i32, i32) {
    %c0_i32 = arith.constant 0 : i32
    %c0_i32_0 = arith.constant 0 : i32
    %c0_i32_1 = arith.constant 0 : i32
    return %c0_i32, %c0_i32_0 : i32, i32
  }
  func.func @transform_13(%arg0: i32) -> (i32, i32) {
    %c0_i32 = arith.constant 0 : i32
    %c0_i32_0 = arith.constant 0 : i32
    %c0_i32_1 = arith.constant 0 : i32
    return %c0_i32, %c0_i32_0 : i32, i32
  }
  func.func @transform_14(%arg0: i32) -> (i32, i32) {
    %c0_i32 = arith.constant 0 : i32
    %c0_i32_0 = arith.constant 0 : i32
    %c0_i32_1 = arith.constant 0 : i32
    return %c0_i32, %c0_i32_0 : i32, i32
  }
  func.func @transform_15(%arg0: i32) -> (i32, i32) {
    %c0_i32 = arith.constant 0 : i32
    %c0_i32_0 = arith.constant 0 : i32
    %c0_i32_1 = arith.constant 0 : i32
    return %c0_i32, %c0_i32_0 : i32, i32
  }
  func.func @transform_16(%arg0: i32) -> (i32, i32) {
    %c0_i32 = arith.constant 0 : i32
    %c0_i32_0 = arith.constant 0 : i32
    %c0_i32_1 = arith.constant 0 : i32
    return %c0_i32, %c0_i32_0 : i32, i32
  }
  func.func @transform_17(%arg0: i32) -> (i32, i32) {
    %c0_i32 = arith.constant 0 : i32
    %c0_i32_0 = arith.constant 0 : i32
    %c0_i32_1 = arith.constant 0 : i32
    return %c0_i32, %c0_i32_0 : i32, i32
  }
}

</mosaic_0001>

<bundles_post_ra>
// kernel: graph_transformer_forward.4
= control target key start
LH: loop header
LB: loop body
LE: loop exit
PB: predicated region body
PF: predicated region fallthrough
CT: control target
= control target key end

     0   :  { %vm125_vm0 = vcmask 1043456   ;;  %vm112_vm1 = vcmask 31744   ;;  %vm22_vm2 = vcmask 64512   ;;  %vm104_vm3 = vcmask 261120   ;;  %s330_s3 = inlined_call_operand.vmem [shape: f32[4,32], index: 3, kind: input, shape index: {}]   ;;  %s331_s2 = inlined_call_operand.vmem [shape: f32[32,4], index: 2, kind: input, shape index: {}]   ;;  %s332_s1 = inlined_call_operand.vmem [shape: f32[8,32], index: 1, kind: input, shape index: {}]   ;;  %s333_s0 = inlined_call_operand.vmem [shape: f32[16,8], index: 0, kind: input, shape index: {}]   ;;  %s334_s5 = inlined_call_operand.vmem [shape: f32[32,32], index: 5, kind: output, shape index: {1}]   ;;  %s335_s4 = inlined_call_operand.vmem [shape: f32[16,32], index: 4, kind: output, shape index: {0}]  }
   0x1   :  { %v111_v0 = vld [vmem:[%s330_s3] sm:$0xf]  ;;  %v108_v2 = vld [vmem:[%s331_s2 + $0x8] sm:$0xff]  ;;  %v109_v6 = vld [vmem:[%s331_s2 + $0x10] sm:$0xff] }
   0x2   :  { %v107_v1 = vld [vmem:[%s331_s2] sm:$0xff]  ;;  %246 = vmatprep.subr.msk.mxu1 %vm125_vm0, %v111_v0  ;;  %v20_v5 = vld [vmem:[%s333_s0 + $0x8] sm:$0xff]  ;;  %v110_v7 = vld [vmem:[%s331_s2 + $0x18] sm:$0xff] }
   0x3   :  { %248 = vmatprep.mubr.msk.f32.mxu1 %vm112_vm1, %v107_v1  ;;  %v21_v3 = vld [vmem:[%s332_s1] sm:$0xff]  ;;  %247 = vmatpush3.msk.msra.mxu1 %vm125_vm0, %v111_v0 }
   0x4   :  { %v19_v4 = vld [vmem:[%s333_s0] sm:$0xff]  ;;  %241 = vmatprep.subr.mxu0 %v21_v3  ;;  %249 = vmatmul.mubr.msk.f32.vlgmr.msra.gmra.mrb[0].mxu1 %vm112_vm1, %v108_v2 }
   0x5   :  { %242 = vmatpush3.msra.mxu0 %v21_v3  ;;  %243 = vmatprep.mubr.msk.f32.mxu0 %vm22_vm2, %v19_v4 }
   0x6   :  { %251 = vmatprep.mubr.msk.f32.mxu1 %vm112_vm1, %v109_v6  ;;  %244 = vmatmul.mubr.msk.f32.vlgmr.msra.gmra.mrb[0].mxu0 %vm22_vm2, %v20_v5 }
   0x8   :  { %252 = vmatmul.mubr.msk.f32.gmra.mrb[2].mxu1 %vm112_vm1, %v110_v7 }
  0xd7   :  { %v250_v8 = vpop.f32.mrb[0].mxu1 }
  0xd8   :  { %215 = vst.msk [vmem:[%s334_s5 + $0x8] sm:$0xff] %vm104_vm3, %v250_v8  ;;  %v195_v9 = vpop.f32.mrb[1].mxu1 }
  0xd9   :  { %214 = vst.msk [vmem:[%s334_s5] sm:$0xff] %vm104_vm3, %v195_v9  ;;  %v245_v10 = vpop.f32.mrb[0].mxu0 }
  0xda   :  { %106 = vst.msk [vmem:[%s335_s4 + $0x8] sm:$0xff] %vm104_vm3, %v245_v10  ;;  %v95_v11 = vpop.f32.mrb[1].mxu0 }
  0xdb   :  { %105 = vst.msk [vmem:[%s335_s4] sm:$0xff] %vm104_vm3, %v95_v11  ;;  %v253_v12 = vpop.f32.mrb[2].mxu1 }
  0xdc   :  { %217 = vst.msk [vmem:[%s334_s5 + $0x18] sm:$0xff] %vm104_vm3, %v253_v12  ;;  %v205_v13 = vpop.f32.mrb[3].mxu1 }
  0xdd   :  { %216 = vst.msk [vmem:[%s334_s5 + $0x10] sm:$0xff] %vm104_vm3, %v205_v13 }

// kernel: graph_transformer_forward.7
= control target key start
LH: loop header
LB: loop body
LE: loop exit
PB: predicated region body
PF: predicated region fallthrough
CT: control target
= control target key end

     0   :  { %v343_v0 = vmov 0.0|0.0   ;;  %vm344_vm0 = vmmov 0   ;;  %v345_v3 = vmov 0.0   ;;  %vm28_vm1 = vcmask 130048   ;;  %s428_s1 = inlined_call_operand.vmem [shape: f32[16,32], index: 1, kind: input, shape index: {}]   ;;  %s429_s2 = inlined_call_operand.vmem [shape: f32[32,32], index: 2, kind: input, shape index: {}]   ;;  %s430_s0 = inlined_call_operand.vmem [shape: f32[2,16], index: 0, kind: input, shape index: {}]   ;;  %s431_s4 = inlined_call_operand.vmem [shape: f32[32,1], index: 4, kind: input, shape index: {}]   ;;  %s432_s5 = inlined_call_operand.<no memory space> [shape: f32[1,1], index: 5, kind: input, shape index: {}]   ;;  %s433_s3 = inlined_call_operand.vmem [shape: f32[1,32], index: 3, kind: input, shape index: {}]   ;;  %s434_s6 = inlined_call_operand.vmem [shape: f32[2,1], index: 6, kind: output, shape index: {}]  }
   0x1   :  { %325 = vmatprep.subr.bf16.mxu0 %v343_v0  ;;  %v26_v1 = vld [vmem:[%s428_s1] sm:$0xff]  ;;  %v27_v2 = vld [vmem:[%s428_s1 + $0x8] sm:$0xff]  ;;  %300 = vmatprep.mubr.msk.f32.mxu0 %vm344_vm0, %v345_v3  ;;  %v104_v7 = vld [vmem:[%s429_s2 + $0x10] sm:$0xff]  ;;  %vm113_vm2 = vcmask 261120   ;;  %v11_v20 = vstv %s432_s5  ;;  %vm272_vm3 = vcmask 1024  }
   0x2   :  { %v326_v4 = vpack.c.bf16 %v27_v2, %v26_v1  ;;  %328 = vmatprep.subr.bf16.mxu1 %v343_v0  ;;  %v102_v5 = vld [vmem:[%s429_s2] sm:$0xff]  ;;  %v103_v6 = vld [vmem:[%s429_s2 + $0x8] sm:$0xff]  ;;  %311 = vmatprep.mubr.msk.f32.mxu1 %vm344_vm0, %v345_v3  ;;  %v105_v9 = vld [vmem:[%s429_s2 + $0x18] sm:$0xff]  ;;  %12 = vst [vmem:[#allocation2] sm:$0x1] %v11_v20 }
   0x3   :  { %v329_v8 = vpack.c.bf16 %v103_v6, %v102_v5  ;;  %v25_v10 = vld [vmem:[%s430_s0] sm:$0x3]  ;;  %v332_v11 = vpack.c.bf16 %v105_v9, %v104_v7  ;;  %v189_v13 = vld [vmem:[%s431_s4 + $0x8] sm:$0xff]  ;;  %v190_v17 = vld [vmem:[%s431_s4 + $0x10] sm:$0xff] }
   0x4   :  { %327 = vmatpush3.bf16.msra.mxu0 %v326_v4  ;;  %v188_v12 = vld [vmem:[%s431_s4] sm:$0xff]  ;;  %v191_v18 = vld [vmem:[%s431_s4 + $0x18] sm:$0xff] }
   0x5   :  { %330 = vmatpush3.bf16.msra.mxu1 %v329_v8  ;;  %334 = vmatprep.subr.bf16.mxu0 %v343_v0  ;;  %v335_v14 = vpack.c.bf16 %v189_v13, %v188_v12  ;;  %v338_v19 = vpack.c.bf16 %v191_v18, %v190_v17  ;;  %v279_v21 = vld [vmem:[%s433_s3] ss:$0 sm:$0xff] }
   0x6   :  { %331 = vmatprep.subr.bf16.mxu1 %v343_v0 }
   0x7   :  { %301 = vmatmul.mubr.msk.f32.vlgmr.msra.gmra.mrb[0].mxu0 %vm28_vm1, %v25_v10 }
   0x8   :  { %322 = vmatprep.mubr.msk.f32.mxu0 %vm344_vm0, %v345_v3  ;;  %336 = vmatpush3.bf16.msra.mxu0 %v335_v14 }
   0x9   :  { %333 = vmatpush3.bf16.msra.mxu1 %v332_v11  ;;  %337 = vmatprep.subr.bf16.mxu0 %v343_v0  ;;  %v281_v26 = vld [vmem:[#allocation2] ss:$0 sm:$0xff] }
   0xc   :  { %339 = vmatpush3.bf16.msra.mxu0 %v338_v19 }
  0xda   :  { %v98_v15 = vpop.f32.mrb[0].mxu0 }
  0xdb   :  { %v302_v16 = vpop.f32.mrb[1].mxu0  ;;  %312 = vmatmul.mubr.msk.f32.vlgmr.msra.gmra.mrb[0].mxu1 %vm113_vm2, %v98_v15 }
 0x1ae   :  { %v183_v22 = vpop.f32.mrb[0].mxu1 }
 0x1af   :  { %v184_v23 = vadd.f32 %v279_v21, %v183_v22  ;;  %v313_v24 = vpop.f32.mrb[1].mxu1 }
 0x1b1   :  { %v187_v25 = vmax.f32 %v184_v23, 0.0 }
 0x1b3   :  { %323 = vmatmul.mubr.msk.f32.vlgmr.msra.gmra.mrb[2].mxu0 %vm113_vm2, %v187_v25 }
 0x286   :  { %v268_v27 = vpop.f32.mrb[2].mxu0 }
 0x287   :  { %v269_v28 = vadd.f32 %v281_v26, %v268_v27  ;;  %v324_v29 = vpop.f32.mrb[3].mxu0 }
 0x289   :  { %273 = vst.msk [vmem:[%s434_s6] sm:$0x3] %vm272_vm3, %v269_v28 }

// kernel: graph_transformer_forward.6
= control target key start
LH: loop header
LB: loop body
LE: loop exit
PB: predicated region body
PF: predicated region fallthrough
CT: control target
= control target key end

     0   :  { %s3103_s0 = inlined_call_operand.vmem [shape: f32[16,32], index: 0, kind: input, shape index: {}]   ;;  %s3104_s1 = inlined_call_operand.vmem [shape: f32[32,32], index: 1, kind: input, shape index: {}]   ;;  %s3105_s2 = inlined_call_operand.vmem [shape: f32[16,16], index: 2, kind: input, shape index: {}]   ;;  %s3106_s3 = inlined_call_operand.vmem [shape: f32[32,16], index: 3, kind: input, shape index: {}]   ;;  %s3107_s4 = inlined_call_operand.vmem [shape: f32[32,16], index: 4, kind: input, shape index: {}]   ;;  %s3108_s5 = inlined_call_operand.vmem [shape: f32[32,96], index: 5, kind: input, shape index: {}]   ;;  %s3109_s6 = inlined_call_operand.vmem [shape: f32[32,32], index: 6, kind: input, shape index: {}]   ;;  %s3110_s7 = inlined_call_operand.vmem [shape: f32[32,32], index: 7, kind: input, shape index: {}]   ;;  %s3111_s8 = inlined_call_operand.vmem [shape: f32[32,32], index: 8, kind: input, shape index: {}]   ;;  %s3112_s9 = inlined_call_operand.vmem [shape: f32[32,32], index: 9, kind: input, shape index: {}]   ;;  %s3113_s10 = inlined_call_operand.vmem [shape: f32[32,32], index: 10, kind: input, shape index: {}]   ;;  %s3114_s11 = inlined_call_operand.vmem [shape: f32[32,32], index: 11, kind: input, shape index: {}]   ;;  %s3115_s12 = inlined_call_operand.vmem [shape: f32[32,32], index: 12, kind: input, shape index: {}]   ;;  %s3116_s13 = inlined_call_operand.vmem [shape: f32[8,32], index: 13, kind: input, shape index: {}]   ;;  %s3117_s14 = inlined_call_operand.vmem [shape: f32[4,32], index: 14, kind: input, shape index: {}]   ;;  %s3118_s15 = inlined_call_operand.vmem [shape: f32[4,32], index: 15, kind: input, shape index: {}]   ;;  %s3119_s16 = inlined_call_operand.vmem [shape: f32[16,32], index: 16, kind: output, shape index: {0}]   ;;  %s3120_s17 = inlined_call_operand.hbm [shape: f32[32,32], index: 17, kind: output, shape index: {1}]  }
   0x1   :  { %3123 = sst [smem:[#allocation5_spill]] %s3103_s0 }
   0x2   :  { %3124 = sst [smem:[#allocation6_spill]] %s3104_s1 }
   0x3   :  { %v67_v0 = vld [vmem:[%s3108_s5] sm:$0xff]  ;;  %v68_v1 = vld [vmem:[%s3108_s5 + $0x8] sm:$0xff]  ;;  %v69_v2 = vld [vmem:[%s3108_s5 + $0x10] sm:$0xff]  ;;  %vm71_vm0 = vcmask 261120   ;;  %s3125_s1 = sld [smem:[#allocation5_spill]] }
   0x4   :  { %v2353_v3 = vpack.c.bf16 %v68_v1, %v67_v0  ;;  %v70_v4 = vld [vmem:[%s3108_s5 + $0x18] sm:$0xff] }
   0x5   :  { %v2357_v6 = vpack.c.bf16 %v70_v4, %v69_v2 }
   0x9   :  { %v2698_v5 = vld [vmem:[%s3125_s1] sm:$0xff] }
   0xa   :  { %2185 = vmatprep.mubr.msk.f32.mxu0 %vm71_vm0, %v2698_v5 }
   0xb   :  { %23 = vsyncpa [#allocation3], 0  ;;  %2354 = vmatprep.subr.bf16.mxu0 %v2353_v3  ;;  %v2705_v7 = vld [vmem:[%s3125_s1 + $0x8] sm:$0xff]  ;;  %vm159_vm1 = vcmask 64512   ;;  %s2577_s5 = smov 96   ;;  %v2748_v18 = vld [vmem:[%s3105_s2] sm:$0xff] }
   0xc   :  { %2356 = vmatpush3.bf16.msra.mxu0 %v2353_v3  ;;  %vm2726_vm2 = vmpackc.low %vm159_vm1, %vm159_vm1  ;;  %v2743_v17 = vld [vmem:[%s3105_s2 + $0x8] sm:$0xff]  ;;  %vm249_vm4 = vcmask 130048   ;;  %vm245_vm5 = vcmp.gt.f32.partialorder %v2748_v18, 0.0  ;;  %s2578_s2 = smov 64   ;;  %s2579_s26 = smov 88   ;;  %vm1015_vm6 = vcmask 195584  }
   0xd   :  { %2358 = vmatprep.subr.bf16.mxu0 %v2357_v6  ;;  %vm246_vm3 = vcmp.gt.f32.partialorder %v2743_v17, 0.0  ;;  %s2580_s27 = smov 120   ;;  %s2581_s28 = smov 56  }
   0xe   :  { %s2582_s29 = smov 80   ;;  %s2583_s0 = smov 112  }
   0xf   :  { %s2584_s30 = smov 72   ;;  %s2585_s18 = smov 104  }
  0x10   :  { %2360 = vmatpush3.bf16.msra.mxu0 %v2357_v6  ;;  %s2586_s19 = smov 48   ;;  %s2590_s23 = smov 24  }
  0x13   :  { %2186 = vmatmul.mubr.msk.f32.vlgmr.msra.gmra.mrb[0].mxu0 %vm71_vm0, %v2705_v7 }
  0xe6   :  { %v2709_v8 = vpop.f32.mrb[0].mxu0 }
  0xe7   :  { %v2711_v9 = vpop.f32.mrb[1].mxu0 }
  0xe8   :  { %2192 = vmatprep.mubr.msk.f32.mxu1 %vm159_vm1, %v2711_v9  ;;  %v2717_v10 = vpack.i.bf16 %v2709_v8, %v2711_v9  ;;  %v2721_v11 = vpack.c.bf16 %v2709_v8, %v2711_v9 }
  0xea   :  { %2482 = vrot.lane.b32.xlu0 %v2717_v10, %s2577_s5 }
 0x15c   :  { %v2483_v12 = vpop.permute.xlu0 %2482 }
 0x15d   :  { %v2485_v13 = vunpack.i.h.bf16 %v2483_v12  ;;  %v2484_v14 = vunpack.i.l.bf16 %v2483_v12 }
 0x15f   :  { %v2730_v16 = vpack.c.bf16 %v2485_v13, %v2484_v14 }
 0x161   :  { %2363 = vmatprep.subr.msk.bf16.mxu1 %vm2726_vm2, %v2730_v16 }
 0x162   :  { %2366 = vmatpush3.bf16.xpose.msk.msra.mxu1 %vm2726_vm2, %v2730_v16 }
 0x169   :  { %2193 = vmatmul.mubr.msk.f32.vlgmr.msra.gmra.mrb[0].mxu1 %vm159_vm1, %v2709_v8 }
 0x23c   :  { %v2194_v19 = vpop.f32.mrb[0].mxu1 }
 0x23d   :  { %v244_v20 = vmul.f32 0.35355338, %v2194_v19  ;;  %v234_v21 = vpop.f32.mrb[1].mxu1 }
 0x23e   :  { %v243_v22 = vmul.f32 0.35355338, %v234_v21 }
 0x23f   :  { %v248_v23 = vsel %vm246_vm3, %v244_v20, -1e+30 }
 0x240   :  { %v253_v24 = vsel %vm249_vm4, %v248_v23, -inf  ;;  %v247_v25 = vsel %vm245_vm5, %v243_v22, -1e+30 }
 0x241   :  { %254 = vmax.xlane.f32.xlu1 %v253_v24  ;;  %v250_v26 = vsel %vm249_vm4, %v247_v25, -inf }
 0x242   :  { %251 = vmax.xlane.f32.xlu0 %v250_v26 }
 0x252   :  { %2487 = vrot.lane.b32.xlu1 %v2717_v10, %s2578_s2  ;;  %s2588_s2 = smov 40  }
 0x256   :  { %2492 = vrot.lane.b32.xlu1 %v2717_v10, %s2579_s26  ;;  %s2589_s26 = smov 16  }
 0x258   :  { %365 = vrot.lane.b32.xlu0 %v2709_v8, %s2580_s27 }
 0x2ce   :  { %v255_v27 = vpop.xlane.xlu1 %254 }
 0x2cf   :  { %v257_v28 = vsub.f32 %v248_v23, %v255_v27  ;;  %v252_v29 = vpop.xlane.xlu0 %251 }
 0x2d0   :  { %v256_v30 = vsub.f32 %v247_v25, %v252_v29 }
 0x2d1   :  { %v260_v31 = vmul.f32 1.442695, %v257_v28 }
 0x2d2   :  { %v258_v32 = vmul.f32 1.442695, %v256_v30  ;;  %v2488_v33 = vpop.permute.xlu1 %2487 }
 0x2d3   :  { %2521 = vpow2.f32 %v260_v31  ;;  %v2490_v34 = vunpack.i.h.bf16 %v2488_v33  ;;  %v2489_v35 = vunpack.i.l.bf16 %v2488_v33  ;;  %v366_v56 = vpop.permute.xlu0 %365 }
 0x2d4   :  { %2523 = vpow2.f32 %v258_v32 }
 0x2d5   :  { %v2367_v36 = vpack.c.bf16 %v2490_v34, %v2489_v35 }
 0x2d6   :  { %v2493_v37 = vpop.permute.xlu1 %2492 }
 0x2d7   :  { %v2495_v38 = vunpack.i.h.bf16 %v2493_v37  ;;  %v2494_v39 = vunpack.i.l.bf16 %v2493_v37  ;;  %2368 = vmatprep.subr.bf16.mxu1 %v2367_v36 }
 0x2d8   :  { %2370 = vmatpush3.bf16.msra.mxu1 %v2367_v36 }
 0x2d9   :  { %v2371_v40 = vpack.c.bf16 %v2495_v38, %v2494_v39 }
 0x2db   :  { %2373 = vmatprep.subr.msk.bf16.mxu1 %vm2726_vm2, %v2371_v40 }
 0x2dd   :  { %v2522_v41 = vpop.eup %2521 }
 0x2de   :  { %v2524_v42 = vpop.eup %2523  ;;  %v263_v43 = vmul.f32 %v2522_v41, %v2743_v17 }
 0x2df   :  { %v262_v45 = vmul.f32 %v2524_v42, %v2748_v18 }
 0x2e0   :  { %v267_v44 = vsel %vm249_vm4, %v263_v43, 0.0 }
 0x2e1   :  { %268 = vadd.xlane.f32.xlu1 %v267_v44  ;;  %v264_v46 = vsel %vm249_vm4, %v262_v45, 0.0 }
 0x2e5   :  { %265 = vadd.xlane.f32.xlu1 %v264_v46 }
 0x2f6   :  { %363 = vrot.lane.b32.xlu1 %v2711_v9, %s2580_s27  ;;  %s3128_s27 = sld [smem:[#allocation6_spill]] }
 0x36e   :  { %v269_v47 = vpop.xlane.xlu1 %268 }
 0x36f   :  { %v271_v48 = vmax.f32 %v269_v47, 1e-30 }
 0x371   :  { %2525 = vrcp.f32 %v271_v48 }
 0x372   :  { %v266_v49 = vpop.xlane.xlu1 %265 }
 0x373   :  { %v270_v50 = vmax.f32 %v266_v49, 1e-30 }
 0x375   :  { %2527 = vrcp.f32 %v270_v50 }
 0x376   :  { %v364_v55 = vpop.permute.xlu1 %363 }
 0x37b   :  { %v2526_v51 = vpop.eup %2525 }
 0x37c   :  { %v275_v54 = vmul.f32 %v2526_v51, %v263_v43 }
 0x37f   :  { %v2528_v52 = vpop.eup %2527 }
 0x380   :  { %v274_v53 = vmul.f32 %v2528_v52, %v262_v45 }
 0x382   :  { %2199 = vmatprep.mubr.msk.f32.mxu1 %vm249_vm4, %v274_v53 }
 0x383   :  { %2200 = vmatmul.mubr.msk.f32.vlgmr.msra.gmra.mrb[2].mxu1 %vm249_vm4, %v275_v54 }
 0x384   :  { %2376 = vmatpush3.bf16.xpose.msk.msra.mxu1 %vm2726_vm2, %v2371_v40  ;;  %2206 = vmatprep.mubr.msk.f32.mxu1 %vm159_vm1, %v364_v55 }
 0x38b   :  { %2207 = vmatmul.mubr.msk.f32.vlgmr.msra.gmra.mrb[4].mxu1 %vm159_vm1, %v366_v56 }
 0x456   :  { %v2774_v57 = vpop.f32.mrb[2].mxu1 }
 0x457   :  { %v2776_v58 = vpop.f32.mrb[3].mxu1 }
 0x45e   :  { %v2208_v59 = vpop.f32.mrb[4].mxu1 }
 0x45f   :  { %v455_v60 = vmul.f32 0.35355338, %v2208_v59  ;;  %v445_v61 = vpop.f32.mrb[5].mxu1 }
 0x460   :  { %v454_v62 = vmul.f32 0.35355338, %v445_v61 }
 0x461   :  { %v457_v63 = vsel %vm246_vm3, %v455_v60, -1e+30 }
 0x462   :  { %v461_v0 = vsel %vm249_vm4, %v457_v63, -inf  ;;  %v456_v1 = vsel %vm245_vm5, %v454_v62, -1e+30 }
 0x463   :  { %462 = vmax.xlane.f32.xlu0 %v461_v0  ;;  %v458_v2 = vsel %vm249_vm4, %v456_v1, -inf }
 0x464   :  { %459 = vmax.xlane.f32.xlu1 %v458_v2 }
 0x475   :  { %2497 = vrot.lane.b32.xlu1 %v2717_v10, %s2581_s28 }
 0x479   :  { %2502 = vrot.lane.b32.xlu0 %v2717_v10, %s2582_s29 }
 0x4f0   :  { %v463_v3 = vpop.xlane.xlu0 %462 }
 0x4f1   :  { %v465_v4 = vsub.f32 %v457_v63, %v463_v3  ;;  %v460_v6 = vpop.xlane.xlu1 %459 }
 0x4f2   :  { %v464_v12 = vsub.f32 %v456_v1, %v460_v6 }
 0x4f3   :  { %v468_v13 = vmul.f32 1.442695, %v465_v4 }
 0x4f4   :  { %v466_v14 = vmul.f32 1.442695, %v464_v12  ;;  %v2503_v19 = vpop.permute.xlu0 %2502 }
 0x4f5   :  { %2529 = vpow2.f32 %v468_v13  ;;  %v2505_v20 = vunpack.i.h.bf16 %v2503_v19  ;;  %v2498_v21 = vpop.permute.xlu1 %2497  ;;  %v2504_v22 = vunpack.i.l.bf16 %v2503_v19 }
 0x4f6   :  { %2531 = vpow2.f32 %v466_v14  ;;  %v2500_v23 = vunpack.i.h.bf16 %v2498_v21  ;;  %v2499_v24 = vunpack.i.l.bf16 %v2498_v21 }
 0x4f7   :  { %v2381_v26 = vpack.c.bf16 %v2505_v20, %v2504_v22 }
 0x4f8   :  { %v2377_v25 = vpack.c.bf16 %v2500_v23, %v2499_v24 }
 0x4fa   :  { %2378 = vmatprep.subr.bf16.mxu0 %v2377_v25 }
 0x4fb   :  { %2380 = vmatpush3.bf16.msra.mxu0 %v2377_v25  ;;  %v1121_v25 = vld [vmem:[%s3110_s7] sm:$0xff] }
 0x4fc   :  { %2383 = vmatprep.subr.msk.bf16.mxu0 %vm2726_vm2, %v2381_v26 }
 0x4ff   :  { %v2530_v27 = vpop.eup %2529 }
 0x500   :  { %v2532_v28 = vpop.eup %2531  ;;  %v471_v29 = vmul.f32 %v2530_v27, %v2743_v17 }
 0x501   :  { %v470_v31 = vmul.f32 %v2532_v28, %v2748_v18 }
 0x502   :  { %v475_v30 = vsel %vm249_vm4, %v471_v29, 0.0 }
 0x503   :  { %476 = vadd.xlane.f32.xlu1 %v475_v30  ;;  %v472_v32 = vsel %vm249_vm4, %v470_v31, 0.0 }
 0x507   :  { %473 = vadd.xlane.f32.xlu1 %v472_v32  ;;  %v1124_v32 = vld [vmem:[%s3110_s7 + $0x18] sm:$0xff] }
 0x518   :  { %571 = vrot.lane.b32.xlu1 %v2711_v9, %s2583_s0 }
 0x51c   :  { %573 = vrot.lane.b32.xlu1 %v2709_v8, %s2583_s0 }
 0x590   :  { %v477_v33 = vpop.xlane.xlu1 %476 }
 0x591   :  { %v479_v34 = vmax.f32 %v477_v33, 1e-30 }
 0x593   :  { %2533 = vrcp.f32 %v479_v34 }
 0x594   :  { %v474_v35 = vpop.xlane.xlu1 %473 }
 0x595   :  { %v478_v36 = vmax.f32 %v474_v35, 1e-30 }
 0x597   :  { %2535 = vrcp.f32 %v478_v36 }
 0x598   :  { %v572_v41 = vpop.permute.xlu1 %571 }
 0x59c   :  { %v574_v42 = vpop.permute.xlu1 %573 }
 0x59d   :  { %v2534_v37 = vpop.eup %2533 }
 0x59e   :  { %v483_v40 = vmul.f32 %v2534_v37, %v471_v29 }
 0x5a1   :  { %v2536_v38 = vpop.eup %2535 }
 0x5a2   :  { %v482_v39 = vmul.f32 %v2536_v38, %v470_v31  ;;  %v1123_v31 = vld [vmem:[%s3110_s7 + $0x10] sm:$0xff] }
 0x5a3   :  { %v2413_v33 = vpack.c.bf16 %v1124_v32, %v1123_v31 }
 0x5a4   :  { %2213 = vmatprep.mubr.msk.f32.mxu0 %vm249_vm4, %v482_v39 }
 0x5a5   :  { %2214 = vmatmul.mubr.msk.f32.vlgmr.msra.gmra.mrb[2].mxu0 %vm249_vm4, %v483_v40 }
 0x5a6   :  { %2386 = vmatpush3.bf16.xpose.msk.msra.mxu0 %vm2726_vm2, %v2381_v26  ;;  %2220 = vmatprep.mubr.msk.f32.mxu0 %vm159_vm1, %v572_v41  ;;  %v1122_v26 = vld [vmem:[%s3110_s7 + $0x8] sm:$0xff]  ;;  %s2587_s7 = smov 8  }
 0x5a7   :  { %v2409_v29 = vpack.c.bf16 %v1122_v26, %v1121_v25  ;;  %v1214_v26 = vld [vmem:[%s3111_s8 + $0x10] sm:$0xff] }
 0x5ad   :  { %2221 = vmatmul.mubr.msk.f32.vlgmr.msra.gmra.mrb[4].mxu0 %vm159_vm1, %v574_v42 }
 0x678   :  { %v2800_v43 = vpop.f32.mrb[2].mxu0 }
 0x679   :  { %v2802_v44 = vpop.f32.mrb[3].mxu0 }
 0x680   :  { %v2222_v45 = vpop.f32.mrb[4].mxu0 }
 0x681   :  { %v663_v46 = vmul.f32 0.35355338, %v2222_v45  ;;  %v653_v47 = vpop.f32.mrb[5].mxu0 }
 0x682   :  { %v662_v48 = vmul.f32 0.35355338, %v653_v47 }
 0x683   :  { %v665_v49 = vsel %vm246_vm3, %v663_v46, -1e+30 }
 0x684   :  { %v669_v50 = vsel %vm249_vm4, %v665_v49, -inf  ;;  %v664_v51 = vsel %vm245_vm5, %v662_v48, -1e+30 }
 0x685   :  { %670 = vmax.xlane.f32.xlu0 %v669_v50  ;;  %v666_v52 = vsel %vm249_vm4, %v664_v51, -inf }
 0x686   :  { %667 = vmax.xlane.f32.xlu1 %v666_v52 }
 0x712   :  { %v671_v53 = vpop.xlane.xlu0 %670 }
 0x713   :  { %v673_v54 = vsub.f32 %v665_v49, %v671_v53  ;;  %v668_v55 = vpop.xlane.xlu1 %667 }
 0x714   :  { %v672_v56 = vsub.f32 %v664_v51, %v668_v55 }
 0x715   :  { %v676_v59 = vmul.f32 1.442695, %v673_v54 }
 0x716   :  { %v674_v60 = vmul.f32 1.442695, %v672_v56 }
 0x717   :  { %2537 = vpow2.f32 %v676_v59 }
 0x718   :  { %2539 = vpow2.f32 %v674_v60 }
 0x721   :  { %v2538_v61 = vpop.eup %2537 }
 0x722   :  { %v2540_v62 = vpop.eup %2539  ;;  %v679_v63 = vmul.f32 %v2538_v61, %v2743_v17 }
 0x723   :  { %v678_v0 = vmul.f32 %v2540_v62, %v2748_v18 }
 0x724   :  { %v683_v1 = vsel %vm249_vm4, %v679_v63, 0.0 }
 0x725   :  { %684 = vadd.xlane.f32.xlu1 %v683_v1  ;;  %v680_v2 = vsel %vm249_vm4, %v678_v0, 0.0 }
 0x726   :  { %681 = vadd.xlane.f32.xlu0 %v680_v2 }
 0x736   :  { %2512 = vrot.lane.b32.xlu1 %v2717_v10, %s2584_s30 }
 0x73a   :  { %779 = vrot.lane.b32.xlu1 %v2711_v9, %s2585_s18 }
 0x73c   :  { %2507 = vrot.lane.b32.xlu0 %v2717_v10, %s2586_s19 }
 0x740   :  { %781 = vrot.lane.b32.xlu0 %v2709_v8, %s2585_s18 }
 0x7b2   :  { %v685_v3 = vpop.xlane.xlu1 %684 }
 0x7b3   :  { %v687_v4 = vmax.f32 %v685_v3, 1e-30  ;;  %v682_v6 = vpop.xlane.xlu0 %681 }
 0x7b4   :  { %v686_v12 = vmax.f32 %v682_v6, 1e-30  ;;  %v1020_v6 = vld [vmem:[%s3109_s6 + $0x10] sm:$0xff] }
 0x7b5   :  { %2541 = vrcp.f32 %v687_v4  ;;  %v1019_v4 = vld [vmem:[%s3109_s6 + $0x8] sm:$0xff] }
 0x7b6   :  { %2543 = vrcp.f32 %v686_v12  ;;  %v2513_v13 = vpop.permute.xlu1 %2512 }
 0x7b7   :  { %v2508_v14 = vpop.permute.xlu0 %2507  ;;  %v2515_v19 = vunpack.i.h.bf16 %v2513_v13  ;;  %v2514_v20 = vunpack.i.l.bf16 %v2513_v13  ;;  %v1021_v13 = vld [vmem:[%s3109_s6 + $0x18] sm:$0xff] }
 0x7b8   :  { %v2510_v21 = vunpack.i.h.bf16 %v2508_v14  ;;  %v2509_v22 = vunpack.i.l.bf16 %v2508_v14  ;;  %v2405_v14 = vpack.c.bf16 %v1021_v13, %v1020_v6  ;;  %v1418_v13 = vld [vmem:[%s3107_s4] sm:$0xff] }
 0x7b9   :  { %v2391_v24 = vpack.c.bf16 %v2515_v19, %v2514_v20  ;;  %v1212_v19 = vld [vmem:[%s3111_s8] sm:$0xff]  ;;  %v1213_v20 = vld [vmem:[%s3111_s8 + $0x8] sm:$0xff] }
 0x7ba   :  { %v2387_v23 = vpack.c.bf16 %v2510_v21, %v2509_v22  ;;  %v780_v30 = vpop.permute.xlu1 %779  ;;  %v2417_v21 = vpack.c.bf16 %v1213_v20, %v1212_v19  ;;  %v1420_v19 = vld [vmem:[%s3107_s4 + $0x10] sm:$0xff]  ;;  %v1421_v20 = vld [vmem:[%s3107_s4 + $0x18] sm:$0xff] }
 0x7bb   :  { %v782_v34 = vpop.permute.xlu0 %781 }
 0x7bc   :  { %2388 = vmatprep.subr.bf16.mxu1 %v2387_v23 }
 0x7bd   :  { %2390 = vmatpush3.bf16.msra.mxu1 %v2387_v23 }
 0x7be   :  { %2393 = vmatprep.subr.msk.bf16.mxu1 %vm2726_vm2, %v2391_v24 }
 0x7bf   :  { %v2542_v8 = vpop.eup %2541 }
 0x7c0   :  { %v2544_v9 = vpop.eup %2543  ;;  %v691_v28 = vmul.f32 %v2542_v8, %v679_v63 }
 0x7c1   :  { %v690_v27 = vmul.f32 %v2544_v9, %v678_v0 }
 0x7c3   :  { %2227 = vmatprep.mubr.msk.f32.mxu1 %vm249_vm4, %v690_v27  ;;  %v1215_v27 = vld [vmem:[%s3111_s8 + $0x18] sm:$0xff] }
 0x7c4   :  { %2228 = vmatmul.mubr.msk.f32.vlgmr.msra.gmra.mrb[6].mxu1 %vm249_vm4, %v691_v28 }
 0x7c5   :  { %2234 = vmatprep.mubr.msk.f32.mxu1 %vm159_vm1, %v780_v30 }
 0x7c6   :  { %2396 = vmatpush3.bf16.xpose.msk.msra.mxu1 %vm2726_vm2, %v2391_v24 }
 0x7c7   :  { %2410 = vmatprep.subr.bf16.mxu1 %v2409_v29 }
 0x7cd   :  { %2235 = vmatmul.mubr.msk.f32.vlgmr.msra.gmra.mrb[8].mxu1 %vm159_vm1, %v782_v34 }
 0x7ce   :  { %2412 = vmatpush3.bf16.msra.mxu1 %v2409_v29 }
 0x7cf   :  { %2414 = vmatprep.subr.bf16.mxu1 %v2413_v33 }
 0x7d2   :  { %2416 = vmatpush3.bf16.msra.mxu1 %v2413_v33 }
 0x7d3   :  { %2426 = vmatprep.subr.bf16.mxu1 %v2721_v11 }
 0x897   :  { %v2229_v15 = vpop.f32.mrb[6].mxu1 }
 0x898   :  { %v770_v35 = vpop.f32.mrb[7].mxu1 }
 0x8a0   :  { %v2236_v36 = vpop.f32.mrb[8].mxu1 }
 0x8a1   :  { %v871_v37 = vmul.f32 0.35355338, %v2236_v36  ;;  %v861_v38 = vpop.f32.mrb[9].mxu1 }
 0x8a2   :  { %v870_v39 = vmul.f32 0.35355338, %v861_v38 }
 0x8a3   :  { %v873_v40 = vsel %vm246_vm3, %v871_v37, -1e+30  ;;  %v2895_v37 = vld [vmem:[%s3116_s13] sm:$0xff] }
 0x8a4   :  { %v877_v41 = vsel %vm249_vm4, %v873_v40, -inf  ;;  %v872_v42 = vsel %vm245_vm5, %v870_v39, -1e+30  ;;  %v2901_v39 = vld [vmem:[%s3117_s14] sm:$0xf] }
 0x8a5   :  { %878 = vmax.xlane.f32.xlu0 %v877_v41  ;;  %v874_v45 = vsel %vm249_vm4, %v872_v42, -inf  ;;  %v2906_v41 = vld [vmem:[%s3118_s15] sm:$0xf] }
 0x8a6   :  { %875 = vmax.xlane.f32.xlu1 %v874_v45 }
 0x932   :  { %v879_v46 = vpop.xlane.xlu0 %878 }
 0x933   :  { %v881_v47 = vsub.f32 %v873_v40, %v879_v46  ;;  %v876_v48 = vpop.xlane.xlu1 %875 }
 0x934   :  { %v880_v49 = vsub.f32 %v872_v42, %v876_v48 }
 0x935   :  { %v884_v50 = vmul.f32 1.442695, %v881_v47 }
 0x936   :  { %v882_v51 = vmul.f32 1.442695, %v880_v49 }
 0x937   :  { %2545 = vpow2.f32 %v884_v50 }
 0x938   :  { %2547 = vpow2.f32 %v882_v51 }
 0x941   :  { %v2546_v52 = vpop.eup %2545 }
 0x942   :  { %v2548_v53 = vpop.eup %2547  ;;  %v887_v54 = vmul.f32 %v2546_v52, %v2743_v17 }
 0x943   :  { %v886_v55 = vmul.f32 %v2548_v53, %v2748_v18 }
 0x944   :  { %v891_v56 = vsel %vm249_vm4, %v887_v54, 0.0 }
 0x945   :  { %892 = vadd.xlane.f32.xlu1 %v891_v56  ;;  %v888_v59 = vsel %vm249_vm4, %v886_v55, 0.0 }
 0x946   :  { %889 = vadd.xlane.f32.xlu0 %v888_v59  ;;  %v1318_v59 = vld [vmem:[%s3106_s3 + $0x8] sm:$0xff] }
 0x956   :  { %989 = vrot.lane.b32.xlu1 %v2802_v44, %s2587_s7 }
 0x95a   :  { %991 = vrot.lane.b32.xlu1 %v2800_v43, %s2587_s7 }
 0x95c   :  { %2517 = vrot.lane.b32.xlu0 %v2717_v10, %s2588_s2  ;;  %v1018_v10 = vld [vmem:[%s3109_s6] sm:$0xff] }
 0x95d   :  { %v2401_v12 = vpack.c.bf16 %v1019_v4, %v1018_v10 }
 0x95e   :  { %999 = vrot.lane.b32.xlu1 %v2229_v15, %s2589_s26  ;;  %v2421_v15 = vpack.c.bf16 %v1215_v27, %v1214_v26  ;;  %v1640_v27 = vld [vmem:[%s3113_s10 + $0x10] sm:$0xff] }
 0x960   :  { %997 = vrot.lane.b32.xlu0 %v770_v35, %s2589_s26 }
 0x9d2   :  { %v893_v17 = vpop.xlane.xlu1 %892 }
 0x9d3   :  { %v895_v18 = vmax.f32 %v893_v17, 1e-30  ;;  %v890_v60 = vpop.xlane.xlu0 %889  ;;  %v1523_v17 = vld [vmem:[%s3112_s9 + $0x10] sm:$0xff] }
 0x9d4   :  { %v894_v61 = vmax.f32 %v890_v60, 1e-30 }
 0x9d5   :  { %2549 = vrcp.f32 %v895_v18  ;;  %v1524_v18 = vld [vmem:[%s3112_s9 + $0x18] sm:$0xff] }
 0x9d6   :  { %2551 = vrcp.f32 %v894_v61  ;;  %v990_v24 = vpop.permute.xlu1 %989  ;;  %v2437_v60 = vpack.c.bf16 %v1524_v18, %v1523_v17  ;;  %v1320_v61 = vld [vmem:[%s3106_s3 + $0x18] sm:$0xff] }
 0x9d7   :  { %v2518_v62 = vpop.permute.xlu0 %2517  ;;  %v1011_v28 = vsel %vm159_vm1, %v2776_v58, %v990_v24  ;;  %v1022_v58 = vlaneseq  ;;  %v1638_v24 = vld [vmem:[%s3113_s10] sm:$0xff] }
 0x9d8   :  { %v2520_v63 = vunpack.i.h.bf16 %v2518_v62  ;;  %v2519_v0 = vunpack.i.l.bf16 %v2518_v62  ;;  %v2952_v62 = vld [vmem:[%s3128_s27] sm:$0xff] }
 0x9d9   :  { %v2889_v36 = vshrl.u32 %v1022_v58, 7 }
 0x9da   :  { %v2397_v1 = vpack.c.bf16 %v2520_v63, %v2519_v0  ;;  %v992_v8 = vpop.permute.xlu1 %991  ;;  %v2957_v63 = vld [vmem:[%s3128_s27 + $0x8] sm:$0xff]  ;;  %v2966_v0 = vld [vmem:[%s3128_s27 + $0x10] sm:$0xff] }
 0x9db   :  { %v998_v25 = vpop.permute.xlu0 %997  ;;  %v1012_v30 = vsel %vm159_vm1, %v2774_v57, %v992_v8  ;;  %v1024_v57 = vsub.s32 0, %v2889_v36  ;;  %v1639_v8 = vld [vmem:[%s3113_s10 + $0x8] sm:$0xff] }
 0x9dc   :  { %2398 = vmatprep.subr.bf16.mxu0 %v2397_v1  ;;  %v1013_v31 = vsel %vm249_vm4, %v1011_v28, %v998_v25  ;;  %v2441_v25 = vpack.c.bf16 %v1639_v8, %v1638_v24  ;;  %v1641_v28 = vld [vmem:[%s3113_s10 + $0x18] sm:$0xff] }
 0x9dd   :  { %2400 = vmatpush3.bf16.msra.mxu0 %v2397_v1  ;;  %v1025_v38 = vrot.slane %v2895_v37, %v1024_v57  ;;  %v1112_v45 = vrot.slane %v2901_v39, %v1024_v57  ;;  %v1118_v49 = vrot.slane %v2906_v41, %v1024_v57  ;;  %v2973_v1 = vld [vmem:[%s3128_s27 + $0x18] sm:$0xff] }
 0x9de   :  { %2402 = vmatprep.subr.bf16.mxu0 %v2401_v12  ;;  %v1000_v9 = vpop.permute.xlu1 %999 }
 0x9df   :  { %v2550_v44 = vpop.eup %2549  ;;  %v1014_v33 = vsel %vm249_vm4, %v1012_v30, %v1000_v9  ;;  %v2445_v30 = vpack.c.bf16 %v1641_v28, %v1640_v27 }
 0x9e0   :  { %v2552_v43 = vpop.eup %2551  ;;  %v899_v3 = vmul.f32 %v2550_v44, %v887_v54  ;;  %v1127_v44 = vsub.s32 1, %v2889_v36 }
 0x9e1   :  { %v898_v2 = vmul.f32 %v2552_v43, %v886_v55  ;;  %v1317_v55 = vld [vmem:[%s3106_s3] sm:$0xff] }
 0x9e2   :  { %v1128_v43 = vrot.slane %v2895_v37, %v1127_v44  ;;  %v1306_v57 = vrot.slane %v2901_v39, %v1127_v44 }
 0x9e3   :  { %2241 = vmatprep.mubr.msk.f32.mxu0 %vm249_vm4, %v898_v2 }
 0x9e4   :  { %2242 = vmatmul.mubr.msk.f32.vlgmr.msra.gmra.mrb[6].mxu0 %vm249_vm4, %v899_v3 }
 0x9e5   :  { %2404 = vmatpush3.bf16.msra.mxu0 %v2401_v12 }
 0x9e6   :  { %2406 = vmatprep.subr.bf16.mxu0 %v2405_v14 }
 0x9e9   :  { %2408 = vmatpush3.bf16.msra.mxu0 %v2405_v14  ;;  %v1419_v14 = vld [vmem:[%s3107_s4 + $0x8] sm:$0xff] }
 0x9ea   :  { %2418 = vmatprep.subr.bf16.mxu0 %v2417_v21 }
 0xab7   :  { %v2243_v22 = vpop.f32.mrb[6].mxu0 }
 0xab8   :  { %1007 = vrot.lane.b32.xlu1 %v2243_v22, %s2590_s23  ;;  %v978_v23 = vpop.f32.mrb[7].mxu0 }
 0xab9   :  { %1005 = vrot.lane.b32.xlu0 %v978_v23, %s2590_s23 }
 0xb2a   :  { %v1008_v29 = vpop.permute.xlu1 %1007 }
 0xb2b   :  { %v1006_v32 = vpop.permute.xlu0 %1005  ;;  %v1017_v35 = vsel %vm1015_vm6, %v1014_v33, %v1008_v29  ;;  %v3014_v33 = vsub.s32 3, %v2889_v36 }
 0xb2c   :  { %v1016_v34 = vsel %vm1015_vm6, %v1013_v31, %v1006_v32  ;;  %v3011_v32 = vsub.s32 2, %v2889_v36 }
 0xb2d   :  { %2252 = vmatprep.mubr.msk.f32.mxu0 %vm71_vm0, %v1016_v34 }
 0xb2e   :  { %2253 = vmatmul.mubr.msk.f32.vlgmr.msra.gmra.mrb[8].mxu0 %vm71_vm0, %v1017_v35  ;;  %v1219_v34 = vrot.slane %v2895_v37, %v3011_v32 }
 0xb2f   :  { %2420 = vmatpush3.bf16.msra.mxu0 %v2417_v21 }
 0xb30   :  { %2422 = vmatprep.subr.bf16.mxu0 %v2421_v15 }
 0xb33   :  { %2424 = vmatpush3.bf16.msra.mxu0 %v2421_v15  ;;  %v1528_v15 = vrot.slane %v2895_v37, %v3014_v33 }
 0xb34   :  { %2430 = vmatprep.subr.bf16.mxu0 %v2730_v16 }
 0xc01   :  { %v2254_v40 = vpop.f32.mrb[8].mxu0 }
 0xc02   :  { %v1104_v42 = vadd.f32 %v2254_v40, %v1025_v38  ;;  %v1098_v46 = vpop.f32.mrb[9].mxu0 }
 0xc03   :  { %v1099_v47 = vadd.f32 %v1098_v46, %v1025_v38 }
 0xc04   :  { %v1108_v48 = vadd.f32 %v1104_v42, %v2705_v7  ;;  %v1521_v7 = vld [vmem:[%s3112_s9] sm:$0xff] }
 0xc05   :  { %v1107_v50 = vadd.f32 %v1099_v47, %v2698_v5  ;;  %v1522_v5 = vld [vmem:[%s3112_s9 + $0x8] sm:$0xff] }
 0xc06   :  { %v1114_v51 = vmul.f32 %v1112_v45, %v1108_v48  ;;  %v2433_v56 = vpack.c.bf16 %v1522_v5, %v1521_v7 }
 0xc07   :  { %v1113_v52 = vmul.f32 %v1112_v45, %v1107_v50  ;;  %v1312_v45 = vrot.slane %v2906_v41, %v1127_v44 }
 0xc08   :  { %v2914_v54 = vadd.f32 %v1118_v49, %v1114_v51 }
 0xc09   :  { %v2912_v53 = vadd.f32 %v1118_v49, %v1113_v52 }
 0xc0b   :  { %2263 = vmatprep.mubr.msk.f32.mxu1 %vm71_vm0, %v2912_v53 }
 0xc0c   :  { %2264 = vmatmul.mubr.msk.f32.vlgmr.msra.gmra.mrb[10].mxu1 %vm71_vm0, %v2914_v54 }
 0xc0d   :  { %2428 = vmatpush3.bf16.msra.mxu1 %v2721_v11  ;;  %2281 = vmatprep.mubr.msk.f32.mxu1 %vm249_vm4, %v1317_v55  ;;  %v1319_v11 = vld [vmem:[%s3106_s3 + $0x10] sm:$0xff] }
 0xc0e   :  { %2434 = vmatprep.subr.bf16.mxu1 %v2433_v56 }
 0xc10   :  { %2282 = vmatmul.mubr.msk.f32.vlgmr.msra.gmra.mrb[12].mxu1 %vm249_vm4, %v1318_v59 }
 0xc11   :  { %2436 = vmatpush3.bf16.msra.mxu1 %v2433_v56  ;;  %2284 = vmatprep.mubr.msk.f32.mxu1 %vm249_vm4, %v1319_v11 }
 0xc12   :  { %2438 = vmatprep.subr.bf16.mxu1 %v2437_v60 }
 0xc14   :  { %2285 = vmatmul.mubr.msk.f32.gmra.mrb[14].mxu1 %vm249_vm4, %v1320_v61 }
 0xc15   :  { %2440 = vmatpush3.bf16.msra.mxu1 %v2437_v60  ;;  %2305 = vmatprep.mubr.msk.f32.mxu1 %vm71_vm0, %v2952_v62 }
 0xc18   :  { %2306 = vmatmul.mubr.msk.f32.vlgmr.msra.gmra.mrb[16].mxu1 %vm71_vm0, %v2957_v63 }
 0xc19   :  { %2308 = vmatprep.mubr.msk.f32.mxu1 %vm71_vm0, %v2966_v0 }
 0xc1c   :  { %2309 = vmatmul.mubr.msk.f32.gmra.mrb[18].mxu1 %vm71_vm0, %v2973_v1 }
 0xcdf   :  { %v2265_v2 = vpop.f32.mrb[10].mxu1 }
 0xce0   :  { %v1207_v3 = vadd.f32 %v2265_v2, %v1128_v43  ;;  %v1201_v10 = vpop.f32.mrb[11].mxu1 }
 0xce1   :  { %v1202_v4 = vadd.f32 %v1201_v10, %v1128_v43 }
 0xce2   :  { %v1211_v12 = vmax.f32 %v1207_v3, 0.0 }
 0xce3   :  { %v1210_v6 = vmax.f32 %v1202_v4, 0.0 }
 0xce5   :  { %2274 = vmatprep.mubr.msk.f32.mxu0 %vm71_vm0, %v1210_v6  ;;  %v1763_v6 = vld [vmem:[%s3114_s11] sm:$0xff] }
 0xce6   :  { %2275 = vmatmul.mubr.msk.f32.vlgmr.msra.gmra.mrb[10].mxu0 %vm71_vm0, %v1211_v12  ;;  %v1764_v12 = vld [vmem:[%s3114_s11 + $0x8] sm:$0xff] }
 0xce7   :  { %2432 = vmatpush3.bf16.msra.mxu0 %v2730_v16  ;;  %2291 = vmatprep.mubr.msk.f32.mxu0 %vm249_vm4, %v1418_v13  ;;  %v2283_v16 = vpop.f32.mrb[12].mxu1  ;;  %v2449_v13 = vpack.c.bf16 %v1764_v12, %v1763_v6 }
 0xce8   :  { %v1399_v21 = vpop.f32.mrb[13].mxu1  ;;  %2442 = vmatprep.subr.bf16.mxu0 %v2441_v25 }
 0xce9   :  { %v2286_v22 = vpop.f32.mrb[14].mxu1  ;;  %2450 = vmatprep.subr.bf16.mxu1 %v2449_v13 }
 0xcea   :  { %2292 = vmatmul.mubr.msk.f32.vlgmr.msra.gmra.mrb[12].mxu0 %vm249_vm4, %v1419_v14  ;;  %v1409_v23 = vpop.f32.mrb[15].mxu1  ;;  %2452 = vmatpush3.bf16.msra.mxu1 %v2449_v13  ;;  %v1765_v14 = vld [vmem:[%s3114_s11 + $0x10] sm:$0xff] }
 0xceb   :  { %2294 = vmatprep.mubr.msk.f32.mxu0 %vm249_vm4, %v1420_v19  ;;  %v2307_v9 = vpop.f32.mrb[16].mxu1  ;;  %2444 = vmatpush3.bf16.msra.mxu0 %v2441_v25  ;;  %v1766_v19 = vld [vmem:[%s3114_s11 + $0x18] sm:$0xff] }
 0xcec   :  { %v1607_v26 = vpop.f32.mrb[17].mxu1  ;;  %2446 = vmatprep.subr.bf16.mxu0 %v2445_v30  ;;  %v1613_v46 = vadd.f32 %v2307_v9, %v1528_v15  ;;  %v1750_v9 = vrot.slane %v2901_v39, %v3011_v32 }
 0xced   :  { %v1608_v49 = vadd.f32 %v1607_v26, %v1528_v15 }
 0xcee   :  { %2295 = vmatmul.mubr.msk.f32.gmra.mrb[14].mxu0 %vm249_vm4, %v1421_v20  ;;  %v2453_v20 = vpack.c.bf16 %v1766_v19, %v1765_v14 }
 0xcef   :  { %v2310_v29 = vpop.f32.mrb[18].mxu1  ;;  %2448 = vmatpush3.bf16.msra.mxu0 %v2445_v30 }
 0xcf0   :  { %v1617_v31 = vpop.f32.mrb[19].mxu1  ;;  %v1623_v59 = vadd.f32 %v2310_v29, %v1528_v15  ;;  %2454 = vmatprep.subr.bf16.mxu1 %v2453_v20  ;;  %v1758_v29 = vrot.slane %v2906_v41, %v3011_v32 }
 0xcf1   :  { %v1618_v60 = vadd.f32 %v1617_v31, %v1528_v15  ;;  %2456 = vmatpush3.bf16.msra.mxu1 %v2453_v20 }
 0xdb9   :  { %v2276_v35 = vpop.f32.mrb[10].mxu0 }
 0xdba   :  { %v1298_v58 = vadd.f32 %v2276_v35, %v1219_v34  ;;  %v1292_v38 = vpop.f32.mrb[11].mxu0 }
 0xdbb   :  { %v1293_v40 = vadd.f32 %v1292_v38, %v1219_v34 }
 0xdbc   :  { %v1302_v42 = vadd.f32 %v1298_v58, %v2914_v54 }
 0xdbd   :  { %v1301_v47 = vadd.f32 %v1293_v40, %v2912_v53  ;;  %v2293_v48 = vpop.f32.mrb[12].mxu0 }
 0xdbe   :  { %v1308_v50 = vmul.f32 %v1306_v57, %v1302_v42  ;;  %v1627_v51 = vmul.f32 %v2293_v48, %v2283_v16  ;;  %v1502_v52 = vpop.f32.mrb[13].mxu0  ;;  %v1872_v16 = vld [vmem:[%s3115_s12] sm:$0xff]  ;;  %v1769_v48 = vsub.s32 5, %v2889_v36 }
 0xdbf   :  { %v1307_v7 = vmul.f32 %v1306_v57, %v1301_v47  ;;  %v1626_v5 = vmul.f32 %v1502_v52, %v1399_v21  ;;  %v1873_v21 = vld [vmem:[%s3115_s12 + $0x8] sm:$0xff] }
 0xdc0   :  { %v1314_v55 = vadd.f32 %v1312_v45, %v1308_v50  ;;  %v1631_v56 = vmul.f32 %v1627_v51, %v1613_v46 }
 0xdc1   :  { %v1313_v11 = vadd.f32 %v1312_v45, %v1307_v7  ;;  %v1630_v17 = vmul.f32 %v1626_v5, %v1608_v49  ;;  %v2296_v18 = vpop.f32.mrb[14].mxu0  ;;  %v1770_v49 = vrot.slane %v2895_v37, %v1769_v48 }
 0xdc2   :  { %1316 = vst.msk [vmem:[%s3119_s16 + $0x8] sm:$0xff] %vm71_vm0, %v1314_v55  ;;  %v1629_v53 = vmul.f32 %v2296_v18, %v2286_v22  ;;  %v1512_v54 = vpop.f32.mrb[15].mxu0  ;;  %v1635_v43 = vmul.f32 0.35355338, %v1631_v56  ;;  %v2457_v22 = vpack.c.bf16 %v1873_v21, %v1872_v16 }
 0xdc3   :  { %1315 = vst.msk [vmem:[%s3119_s16] sm:$0xff] %vm71_vm0, %v1313_v11  ;;  %v1634_v61 = vmul.f32 0.35355338, %v1630_v17  ;;  %v1628_v44 = vmul.f32 %v1512_v54, %v1409_v23  ;;  %v1644_v23 = vsub.s32 4, %v2889_v36 }
 0xdc4   :  { %v1633_v2 = vmul.f32 %v1629_v53, %v1623_v59  ;;  %2458 = vmatprep.subr.bf16.mxu0 %v2457_v22  ;;  %v1878_v53 = vsub.s32 6, %v2889_v36 }
 0xdc5   :  { %v1632_v3 = vmul.f32 %v1628_v44, %v1618_v60  ;;  %2319 = vmatprep.mubr.msk.f32.mxu0 %vm71_vm0, %v1634_v61  ;;  %v1645_v24 = vrot.slane %v2895_v37, %v1644_v23 }
 0xdc6   :  { %2320 = vmatmul.mubr.msk.f32.vlgmr.msra.gmra.mrb[16].mxu0 %vm71_vm0, %v1635_v43  ;;  %v1637_v4 = vmul.f32 0.35355338, %v1633_v2  ;;  %v1879_v54 = vrot.slane %v2895_v37, %v1878_v53  ;;  %v1984_v43 = vrot.slane %v2901_v39, %v3014_v33 }
 0xdc7   :  { %v1636_v10 = vmul.f32 0.35355338, %v1632_v3  ;;  %2460 = vmatpush3.bf16.msra.mxu0 %v2457_v22 }
 0xdc9   :  { %2322 = vmatprep.mubr.msk.f32.mxu0 %vm71_vm0, %v1636_v10 }
 0xdca   :  { %2323 = vmatmul.mubr.msk.f32.gmra.mrb[18].mxu0 %vm71_vm0, %v1637_v4  ;;  %v1992_v4 = vrot.slane %v2906_v41, %v3014_v33 }
 0xe99   :  { %v2321_v8 = vpop.f32.mrb[16].mxu0 }
 0xe9a   :  { %v1730_v25 = vadd.f32 %v2321_v8, %v1645_v24  ;;  %v1724_v26 = vpop.f32.mrb[17].mxu0 }
 0xe9b   :  { %v1725_v27 = vadd.f32 %v1724_v26, %v1645_v24 }
 0xe9c   :  { %v1744_v28 = vadd.f32 %v1730_v25, %v2957_v63 }
 0xe9d   :  { %v1743_v30 = vadd.f32 %v1725_v27, %v2952_v62  ;;  %v2324_v31 = vpop.f32.mrb[18].mxu0 }
 0xe9e   :  { %v1752_v34 = vmul.f32 %v1750_v9, %v1744_v28  ;;  %v1740_v15 = vadd.f32 %v2324_v31, %v1645_v24  ;;  %v1734_v35 = vpop.f32.mrb[19].mxu0 }
 0xe9f   :  { %v1751_v58 = vmul.f32 %v1750_v9, %v1743_v30  ;;  %v1735_v57 = vadd.f32 %v1734_v35, %v1645_v24 }
 0xea0   :  { %v1746_v38 = vadd.f32 %v1740_v15, %v2973_v1  ;;  %v1760_v45 = vadd.f32 %v1758_v29, %v1752_v34  ;;  %v1874_v1 = vld [vmem:[%s3115_s12 + $0x10] sm:$0xff] }
 0xea1   :  { %v1759_v40 = vadd.f32 %v1758_v29, %v1751_v58  ;;  %v1745_v42 = vadd.f32 %v1735_v57, %v2966_v0  ;;  %v1875_v0 = vld [vmem:[%s3115_s12 + $0x18] sm:$0xff]  ;;  %s2591_s12 = smov [#allocation2]  }
 0xea2   :  { %v1754_v46 = vmul.f32 %v1750_v9, %v1746_v38  ;;  %v2461_v32 = vpack.c.bf16 %v1875_v0, %v1874_v1  ;;  %s2008_s5 = sshll.u32 %s2591_s12, 4  ;;  %s2009_s5 = int_to_ptr.vmem [resolvable:$true] %s2008_s5 }
 0xea3   :  { %v1753_v47 = vmul.f32 %v1750_v9, %v1745_v42  ;;  %2333 = vmatprep.mubr.msk.f32.mxu1 %vm71_vm0, %v1759_v40  ;;  %s2553_s22 = scalar_lea.vmem %s2009_s5, 512  ;;  %p2558_p1 = scmp.lt.s32.totalorder %s2009_s5, %s2009_s5 }
 0xea4   :  { %2334 = vmatmul.mubr.msk.f32.vlgmr.msra.gmra.mrb[20].mxu1 %vm71_vm0, %v1760_v45  ;;  %v1762_v62 = vadd.f32 %v1758_v29, %v1754_v46  ;;  %2462 = vmatprep.subr.bf16.mxu0 %v2461_v32  ;;  %p2554_p0 = scmp.ne.s32.totalorder %s2009_s5, %s2553_s22  ;;  %p2559_p2 = scmp.lt.s32.totalorder %s2553_s22, %s2553_s22 }
 0xea5   :  { %v1761_v63 = vadd.f32 %v1758_v29, %v1753_v47  ;;  %2464 = vmatpush3.bf16.msra.mxu0 %v2461_v32 }
 0xea6   :  { %p2560_p3 = por %p2559_p2, %p2558_p1 }
 0xea7   :  { %2336 = vmatprep.mubr.msk.f32.mxu1 %vm71_vm0, %v1761_v63 }
 0xea8   :  { %2337 = vmatmul.mubr.msk.f32.gmra.mrb[22].mxu1 %vm71_vm0, %v1762_v62  ;;  %p2561_p4 = pnand %p2560_p3, %p2554_p0 }
 0xf77   :  { %v2335_v50 = vpop.f32.mrb[20].mxu1 }
 0xf78   :  { %v1855_v51 = vadd.f32 %v2335_v50, %v1770_v49  ;;  %v1849_v52 = vpop.f32.mrb[21].mxu1 }
 0xf79   :  { %v1850_v7 = vadd.f32 %v1849_v52, %v1770_v49 }
 0xf7a   :  { %v1869_v56 = vmax.f32 %v1855_v51, 0.0 }
 0xf7b   :  { %v1868_v5 = vmax.f32 %v1850_v7, 0.0  ;;  %v2338_v55 = vpop.f32.mrb[22].mxu1 }
 0xf7c   :  { %v1865_v59 = vadd.f32 %v2338_v55, %v1770_v49  ;;  %v1859_v11 = vpop.f32.mrb[23].mxu1 }
 0xf7d   :  { %v1860_v17 = vadd.f32 %v1859_v11, %v1770_v49  ;;  %2347 = vmatprep.mubr.msk.f32.mxu0 %vm71_vm0, %v1868_v5 }
 0xf7e   :  { %2348 = vmatmul.mubr.msk.f32.vlgmr.msra.gmra.mrb[20].mxu0 %vm71_vm0, %v1869_v56  ;;  %v1871_v60 = vmax.f32 %v1865_v59, 0.0 }
 0xf7f   :  { %v1870_v18 = vmax.f32 %v1860_v17, 0.0 }
 0xf81   :  { %2350 = vmatprep.mubr.msk.f32.mxu0 %vm71_vm0, %v1870_v18 }
 0xf82   :  { %2351 = vmatmul.mubr.msk.f32.gmra.mrb[22].mxu0 %vm71_vm0, %v1871_v60 }
0x1051   :  { %v2349_v61 = vpop.f32.mrb[20].mxu0 }
0x1052   :  { %v1964_v44 = vadd.f32 %v2349_v61, %v1879_v54  ;;  %v1958_v2 = vpop.f32.mrb[21].mxu0 }
0x1053   :  { %v1959_v3 = vadd.f32 %v1958_v2, %v1879_v54 }
0x1054   :  { %v1978_v10 = vadd.f32 %v1964_v44, %v1760_v45 }
0x1055   :  { %v1977_v6 = vadd.f32 %v1959_v3, %v1759_v40  ;;  %v2352_v12 = vpop.f32.mrb[22].mxu0 }
0x1056   :  { %v1986_v13 = vmul.f32 %v1984_v43, %v1978_v10  ;;  %v1974_v14 = vadd.f32 %v2352_v12, %v1879_v54  ;;  %v1968_v19 = vpop.f32.mrb[23].mxu0 }
0x1057   :  { %v1985_v20 = vmul.f32 %v1984_v43, %v1977_v6  ;;  %v1969_v36 = vadd.f32 %v1968_v19, %v1879_v54 }
0x1058   :  { %v1994_v16 = vadd.f32 %v1992_v4, %v1986_v13  ;;  %v1980_v37 = vadd.f32 %v1974_v14, %v1762_v62 }
0x1059   :  { %v1993_v21 = vadd.f32 %v1992_v4, %v1985_v20  ;;  %v1979_v22 = vadd.f32 %v1969_v36, %v1761_v63 }
0x105a   :  { %1998 = vst.msk [vmem:[#allocation2 + $0x8] sm:$0xff] %vm71_vm0, %v1994_v16  ;;  %v1988_v39 = vmul.f32 %v1984_v43, %v1980_v37 }
0x105b   :  { %1997 = vst.msk [vmem:[#allocation2] sm:$0xff] %vm71_vm0, %v1993_v21  ;;  %v1987_v23 = vmul.f32 %v1984_v43, %v1979_v22 }
0x105c   :  { %v1996_v41 = vadd.f32 %v1992_v4, %v1988_v39 }
0x105d   :  { %v1995_v33 = vadd.f32 %v1992_v4, %v1987_v23 }
0x105e   :  { %2000 = vst.msk [vmem:[#allocation2 + $0x18] sm:$0xff] %vm71_vm0, %v1996_v41 }
0x105f   :  { %1999 = vst.msk [vmem:[#allocation2 + $0x10] sm:$0xff] %vm71_vm0, %v1995_v33 }
0x1060   :  { %2564 = shalt.err (!%p2561_p4)
}
0x1061   :  { %s2565_s4 = scalar_lea.hbm %s3120_s17, 512 }
0x1062   :  { %p2566_p5 = scmp.ne.s32.totalorder %s3120_s17, %s2565_s4  ;;  %p2569_p6 = scmp.lt.u32.totalorder %s2565_s4, %s3120_s17 }
0x1064   :  { %p2571_p7 = pnand %p2569_p6, %p2566_p5 }
0x1066   :  { %2574 = shalt.err (!%p2571_p7)
}
0x1067   :  { %s2592_s8 = smov 128  }
0x1068   :  { %2014 = dma.vmem_to_hbm [thread:$0]  %s2009_s5, 512, %s3120_s17, [#allocation3], %s2592_s8, %s2592_s8, %s2587_s7  }
0x1069   :  { %2575 = dma.done.wait [#allocation3], 512  }
0x106a   :  { %2576 = vsyncadd [#allocation3], 4294966784 }
0x106b   :  { %2020 = vsyncpa [#allocation3], 1 }

// kernel: graph_transformer_forward.5
= control target key start
LH: loop header
LB: loop body
LE: loop exit
PB: predicated region body
PF: predicated region fallthrough
CT: control target
= control target key end

     0   :  { %s3199_s0 = inlined_call_operand.vmem [shape: f32[16,32], index: 0, kind: input, shape index: {}]   ;;  %s3200_s1 = inlined_call_operand.vmem [shape: f32[32,32], index: 1, kind: input, shape index: {}]   ;;  %s3201_s2 = inlined_call_operand.vmem [shape: f32[16,16], index: 2, kind: input, shape index: {}]   ;;  %s3202_s3 = inlined_call_operand.vmem [shape: f32[32,16], index: 3, kind: input, shape index: {}]   ;;  %s3203_s4 = inlined_call_operand.vmem [shape: f32[32,16], index: 4, kind: input, shape index: {}]   ;;  %s3204_s5 = inlined_call_operand.vmem [shape: f32[32,96], index: 5, kind: input, shape index: {}]   ;;  %s3205_s6 = inlined_call_operand.vmem [shape: f32[32,32], index: 6, kind: input, shape index: {}]   ;;  %s3206_s7 = inlined_call_operand.vmem [shape: f32[32,32], index: 7, kind: input, shape index: {}]   ;;  %s3207_s8 = inlined_call_operand.vmem [shape: f32[32,32], index: 8, kind: input, shape index: {}]   ;;  %s3208_s9 = inlined_call_operand.vmem [shape: f32[32,32], index: 9, kind: input, shape index: {}]   ;;  %s3209_s10 = inlined_call_operand.vmem [shape: f32[32,32], index: 10, kind: input, shape index: {}]   ;;  %s3210_s11 = inlined_call_operand.vmem [shape: f32[32,32], index: 11, kind: input, shape index: {}]   ;;  %s3211_s12 = inlined_call_operand.vmem [shape: f32[32,32], index: 12, kind: input, shape index: {}]   ;;  %s3212_s13 = inlined_call_operand.hbm [shape: f32[8,32], index: 13, kind: input, shape index: {}]   ;;  %s3213_s14 = inlined_call_operand.hbm [shape: f32[4,32], index: 14, kind: input, shape index: {}]   ;;  %s3214_s15 = inlined_call_operand.hbm [shape: f32[4,32], index: 15, kind: input, shape index: {}]   ;;  %s3215_s16 = inlined_call_operand.vmem [shape: f32[16,32], index: 16, kind: output, shape index: {0}]   ;;  %s3216_s17 = inlined_call_operand.vmem [shape: f32[32,32], index: 17, kind: output, shape index: {1}]  }
   0x1   :  { %3219 = sst [smem:[#allocation9_spill]] %s3199_s0 }
   0x2   :  { %3220 = sst [smem:[#allocation10_spill]] %s3200_s1 }
   0x3   :  { %23 = vsyncpa [#allocation3], 0 }
   0x4   :  { %24 = vsyncpa [#allocation5], 0  ;;  %s2648_s24 = smov [#allocation4]   ;;  %s2649_s26 = smov [#allocation2]  }
   0x5   :  { %s67_s25 = sshll.u32 %s2648_s24, 4  ;;  %s57_s27 = sshll.u32 %s2649_s26, 4  ;;  %s68_s25 = int_to_ptr.vmem [resolvable:$true] %s67_s25  ;;  %s58_s27 = int_to_ptr.vmem [resolvable:$true] %s57_s27 }
   0x6   :  { %s2578_s0 = scalar_lea.hbm %s3213_s14, 64 }
   0x7   :  { %p2579_p0 = scmp.ne.s32.totalorder %s3213_s14, %s2578_s0  ;;  %p2582_p1 = scmp.lt.u32.totalorder %s2578_s0, %s3213_s14 }
   0x9   :  { %p2584_p2 = pnand %p2582_p1, %p2579_p0 }
   0xb   :  { %2587 = shalt.err (!%p2584_p2)
}
   0xc   :  { %s2588_s20 = scalar_lea.vmem %s68_s25, 64  ;;  %p2593_p4 = scmp.lt.s32.totalorder %s68_s25, %s68_s25 }
   0xd   :  { %p2589_p3 = scmp.ne.s32.totalorder %s68_s25, %s2588_s20  ;;  %p2594_p5 = scmp.lt.s32.totalorder %s2588_s20, %s2588_s20 }
   0xf   :  { %p2595_p6 = por %p2594_p5, %p2593_p4 }
  0x11   :  { %p2596_p7 = pnand %p2595_p6, %p2589_p3 }
  0x13   :  { %2599 = shalt.err (!%p2596_p7)
}
  0x14   :  { %70 = dma.hbm_to_vmem [thread:$0]  %s3213_s14, 64, %s68_s25, [#allocation5]  }
  0x15   :  { %s2600_s26 = scalar_lea.hbm %s3212_s13, 128 }
  0x16   :  { %p2601_p8 = scmp.ne.s32.totalorder %s3212_s13, %s2600_s26  ;;  %p2604_p9 = scmp.lt.u32.totalorder %s2600_s26, %s3212_s13 }
  0x18   :  { %p2606_p10 = pnand %p2604_p9, %p2601_p8 }
  0x1a   :  { %2609 = shalt.err (!%p2606_p10)
}
  0x1b   :  { %s2610_s18 = scalar_lea.vmem %s58_s27, 128  ;;  %p2615_p12 = scmp.lt.s32.totalorder %s58_s27, %s58_s27 }
  0x1c   :  { %p2611_p11 = scmp.ne.s32.totalorder %s58_s27, %s2610_s18  ;;  %p2616_p13 = scmp.lt.s32.totalorder %s2610_s18, %s2610_s18 }
  0x1e   :  { %p2617_p0 = por %p2616_p13, %p2615_p12 }
  0x20   :  { %p2618_p1 = pnand %p2617_p0, %p2611_p11 }
  0x22   :  { %2621 = shalt.err (!%p2618_p1)
}
  0x23   :  { %60 = dma.hbm_to_vmem [thread:$0]  %s3212_s13, 128, %s58_s27, [#allocation3]  }
  0x24   :  { %s2650_s19 = smov [#allocation6]   ;;  %s2622_s22 = scalar_lea.hbm %s3214_s15, 64 }
  0x25   :  { %s77_s1 = sshll.u32 %s2650_s19, 4  ;;  %p2623_p2 = scmp.ne.s32.totalorder %s3214_s15, %s2622_s22  ;;  %s78_s1 = int_to_ptr.vmem [resolvable:$true] %s77_s1 }
  0x26   :  { %p2626_p3 = scmp.lt.u32.totalorder %s2622_s22, %s3214_s15 }
  0x28   :  { %p2628_p4 = pnand %p2626_p3, %p2623_p2 }
  0x2a   :  { %2631 = shalt.err (!%p2628_p4)
}
  0x2b   :  { %s2632_s29 = scalar_lea.vmem %s78_s1, 64  ;;  %p2637_p6 = scmp.lt.s32.totalorder %s78_s1, %s78_s1 }
  0x2c   :  { %p2633_p5 = scmp.ne.s32.totalorder %s78_s1, %s2632_s29  ;;  %p2638_p7 = scmp.lt.s32.totalorder %s2632_s29, %s2632_s29 }
  0x2e   :  { %p2639_p8 = por %p2638_p7, %p2637_p6 }
  0x30   :  { %p2640_p9 = pnand %p2639_p8, %p2633_p5 }
  0x32   :  { %2643 = shalt.err (!%p2640_p9)
}
  0x33   :  { %80 = dma.hbm_to_vmem [thread:$0]  %s3214_s15, 64, %s78_s1, [#allocation5]  }
  0x34   :  { %2644 = dma.done.wait [#allocation3], 128  }
  0x35   :  { %2645 = vsyncadd [#allocation3], 4294967168 }
  0x36   :  { %2646 = dma.done.wait [#allocation5], 128  }
  0x37   :  { %2647 = vsyncadd [#allocation5], 4294967168  ;;  %vm105_vm0 = vcmask 261120   ;;  %v101_v0 = vld [vmem:[%s3204_s5] sm:$0xff]  ;;  %v102_v1 = vld [vmem:[%s3204_s5 + $0x8] sm:$0xff]  ;;  %s3221_s22 = sld [smem:[#allocation9_spill]] }
  0x38   :  { %v103_v2 = vld [vmem:[%s3204_s5 + $0x10] sm:$0xff]  ;;  %v2377_v3 = vpack.c.bf16 %v102_v1, %v101_v0  ;;  %v104_v4 = vld [vmem:[%s3204_s5 + $0x18] sm:$0xff]  ;;  %vm193_vm1 = vcmask 64512   ;;  %s2651_s5 = smov 96   ;;  %v2851_v17 = vld [vmem:[%s3201_s2 + $0x8] sm:$0xff]  ;;  %vm283_vm4 = vcmask 130048  }
  0x39   :  { %v2381_v6 = vpack.c.bf16 %v104_v4, %v103_v2  ;;  %vm2834_vm2 = vmpackc.low %vm193_vm1, %vm193_vm1  ;;  %v2856_v18 = vld [vmem:[%s3201_s2] sm:$0xff]  ;;  %vm280_vm3 = vcmp.gt.f32.partialorder %v2851_v17, 0.0  ;;  %s2652_s2 = smov 64   ;;  %s2653_s27 = smov 88   ;;  %vm1049_vm6 = vcmask 195584  }
  0x3a   :  { %2378 = vmatprep.subr.bf16.mxu0 %v2377_v3  ;;  %vm279_vm5 = vcmp.gt.f32.partialorder %v2856_v18, 0.0  ;;  %s2654_s0 = smov 120   ;;  %s2655_s30 = smov 56  }
  0x3b   :  { %2380 = vmatpush3.bf16.msra.mxu0 %v2377_v3  ;;  %s2656_s18 = smov 80   ;;  %s2657_s14 = smov 112  }
  0x3c   :  { %2382 = vmatprep.subr.bf16.mxu0 %v2381_v6  ;;  %s2658_s25 = smov 72   ;;  %s2659_s19 = smov 104  }
  0x3d   :  { %v2806_v5 = vld [vmem:[%s3221_s22] sm:$0xff]  ;;  %v2813_v7 = vld [vmem:[%s3221_s22 + $0x8] sm:$0xff]  ;;  %s2660_s20 = smov 48   ;;  %s2662_s28 = smov 40  }
  0x3e   :  { %2209 = vmatprep.mubr.msk.f32.mxu0 %vm105_vm0, %v2806_v5  ;;  %s2663_s29 = smov 16   ;;  %s2664_s21 = smov 24  }
  0x3f   :  { %2384 = vmatpush3.bf16.msra.mxu0 %v2381_v6 }
  0x42   :  { %2210 = vmatmul.mubr.msk.f32.vlgmr.msra.gmra.mrb[0].mxu0 %vm105_vm0, %v2813_v7 }
 0x115   :  { %v2817_v8 = vpop.f32.mrb[0].mxu0 }
 0x116   :  { %v2819_v9 = vpop.f32.mrb[1].mxu0 }
 0x117   :  { %2216 = vmatprep.mubr.msk.f32.mxu1 %vm193_vm1, %v2819_v9  ;;  %v2825_v10 = vpack.i.bf16 %v2817_v8, %v2819_v9  ;;  %v2829_v11 = vpack.c.bf16 %v2817_v8, %v2819_v9 }
 0x119   :  { %2507 = vrot.lane.b32.xlu0 %v2825_v10, %s2651_s5 }
 0x18b   :  { %v2508_v12 = vpop.permute.xlu0 %2507 }
 0x18c   :  { %v2510_v13 = vunpack.i.h.bf16 %v2508_v12  ;;  %v2509_v14 = vunpack.i.l.bf16 %v2508_v12 }
 0x18e   :  { %v2838_v16 = vpack.c.bf16 %v2510_v13, %v2509_v14 }
 0x190   :  { %2387 = vmatprep.subr.msk.bf16.mxu1 %vm2834_vm2, %v2838_v16 }
 0x191   :  { %2390 = vmatpush3.bf16.xpose.msk.msra.mxu1 %vm2834_vm2, %v2838_v16 }
 0x198   :  { %2217 = vmatmul.mubr.msk.f32.vlgmr.msra.gmra.mrb[0].mxu1 %vm193_vm1, %v2817_v8 }
 0x26b   :  { %v2218_v19 = vpop.f32.mrb[0].mxu1 }
 0x26c   :  { %v278_v20 = vmul.f32 0.35355338, %v2218_v19  ;;  %v268_v21 = vpop.f32.mrb[1].mxu1 }
 0x26d   :  { %v277_v22 = vmul.f32 0.35355338, %v268_v21 }
 0x26e   :  { %v282_v23 = vsel %vm280_vm3, %v278_v20, -1e+30 }
 0x26f   :  { %v287_v24 = vsel %vm283_vm4, %v282_v23, -inf  ;;  %v281_v25 = vsel %vm279_vm5, %v277_v22, -1e+30 }
 0x270   :  { %288 = vmax.xlane.f32.xlu1 %v287_v24  ;;  %v284_v26 = vsel %vm283_vm4, %v281_v25, -inf }
 0x271   :  { %285 = vmax.xlane.f32.xlu0 %v284_v26 }
 0x281   :  { %2512 = vrot.lane.b32.xlu1 %v2825_v10, %s2652_s2 }
 0x285   :  { %2517 = vrot.lane.b32.xlu1 %v2825_v10, %s2653_s27 }
 0x287   :  { %399 = vrot.lane.b32.xlu0 %v2817_v8, %s2654_s0 }
 0x2fd   :  { %v289_v27 = vpop.xlane.xlu1 %288 }
 0x2fe   :  { %v291_v28 = vsub.f32 %v282_v23, %v289_v27  ;;  %v286_v29 = vpop.xlane.xlu0 %285 }
 0x2ff   :  { %v290_v30 = vsub.f32 %v281_v25, %v286_v29 }
 0x300   :  { %v294_v31 = vmul.f32 1.442695, %v291_v28 }
 0x301   :  { %v292_v32 = vmul.f32 1.442695, %v290_v30  ;;  %v2513_v33 = vpop.permute.xlu1 %2512 }
 0x302   :  { %2546 = vpow2.f32 %v294_v31  ;;  %v2515_v34 = vunpack.i.h.bf16 %v2513_v33  ;;  %v2514_v35 = vunpack.i.l.bf16 %v2513_v33  ;;  %v400_v56 = vpop.permute.xlu0 %399 }
 0x303   :  { %2548 = vpow2.f32 %v292_v32 }
 0x304   :  { %v2391_v36 = vpack.c.bf16 %v2515_v34, %v2514_v35 }
 0x305   :  { %v2518_v37 = vpop.permute.xlu1 %2517 }
 0x306   :  { %v2520_v38 = vunpack.i.h.bf16 %v2518_v37  ;;  %v2519_v39 = vunpack.i.l.bf16 %v2518_v37  ;;  %2392 = vmatprep.subr.bf16.mxu1 %v2391_v36 }
 0x307   :  { %2394 = vmatpush3.bf16.msra.mxu1 %v2391_v36 }
 0x308   :  { %v2395_v40 = vpack.c.bf16 %v2520_v38, %v2519_v39 }
 0x30a   :  { %2397 = vmatprep.subr.msk.bf16.mxu1 %vm2834_vm2, %v2395_v40 }
 0x30c   :  { %v2547_v41 = vpop.eup %2546 }
 0x30d   :  { %v2549_v42 = vpop.eup %2548  ;;  %v297_v43 = vmul.f32 %v2547_v41, %v2851_v17 }
 0x30e   :  { %v296_v45 = vmul.f32 %v2549_v42, %v2856_v18 }
 0x30f   :  { %v301_v44 = vsel %vm283_vm4, %v297_v43, 0.0 }
 0x310   :  { %302 = vadd.xlane.f32.xlu1 %v301_v44  ;;  %v298_v46 = vsel %vm283_vm4, %v296_v45, 0.0 }
 0x314   :  { %299 = vadd.xlane.f32.xlu1 %v298_v46 }
 0x325   :  { %397 = vrot.lane.b32.xlu1 %v2819_v9, %s2654_s0 }
 0x39d   :  { %v303_v47 = vpop.xlane.xlu1 %302 }
 0x39e   :  { %v305_v48 = vmax.f32 %v303_v47, 1e-30 }
 0x3a0   :  { %2550 = vrcp.f32 %v305_v48 }
 0x3a1   :  { %v300_v49 = vpop.xlane.xlu1 %299 }
 0x3a2   :  { %v304_v50 = vmax.f32 %v300_v49, 1e-30 }
 0x3a4   :  { %2552 = vrcp.f32 %v304_v50 }
 0x3a5   :  { %v398_v55 = vpop.permute.xlu1 %397 }
 0x3aa   :  { %v2551_v51 = vpop.eup %2550 }
 0x3ab   :  { %v309_v54 = vmul.f32 %v2551_v51, %v297_v43 }
 0x3ae   :  { %v2553_v52 = vpop.eup %2552 }
 0x3af   :  { %v308_v53 = vmul.f32 %v2553_v52, %v296_v45 }
 0x3b1   :  { %2223 = vmatprep.mubr.msk.f32.mxu1 %vm283_vm4, %v308_v53 }
 0x3b2   :  { %2224 = vmatmul.mubr.msk.f32.vlgmr.msra.gmra.mrb[2].mxu1 %vm283_vm4, %v309_v54 }
 0x3b3   :  { %2400 = vmatpush3.bf16.xpose.msk.msra.mxu1 %vm2834_vm2, %v2395_v40  ;;  %2230 = vmatprep.mubr.msk.f32.mxu1 %vm193_vm1, %v398_v55 }
 0x3ba   :  { %2231 = vmatmul.mubr.msk.f32.vlgmr.msra.gmra.mrb[4].mxu1 %vm193_vm1, %v400_v56 }
 0x485   :  { %v2882_v57 = vpop.f32.mrb[2].mxu1 }
 0x486   :  { %v2884_v58 = vpop.f32.mrb[3].mxu1 }
 0x48d   :  { %v2232_v59 = vpop.f32.mrb[4].mxu1 }
 0x48e   :  { %v489_v60 = vmul.f32 0.35355338, %v2232_v59  ;;  %v479_v61 = vpop.f32.mrb[5].mxu1 }
 0x48f   :  { %v488_v62 = vmul.f32 0.35355338, %v479_v61 }
 0x490   :  { %v491_v63 = vsel %vm280_vm3, %v489_v60, -1e+30 }
 0x491   :  { %v495_v0 = vsel %vm283_vm4, %v491_v63, -inf  ;;  %v490_v1 = vsel %vm279_vm5, %v488_v62, -1e+30 }
 0x492   :  { %496 = vmax.xlane.f32.xlu0 %v495_v0  ;;  %v492_v2 = vsel %vm283_vm4, %v490_v1, -inf }
 0x493   :  { %493 = vmax.xlane.f32.xlu1 %v492_v2 }
 0x4a4   :  { %2522 = vrot.lane.b32.xlu1 %v2825_v10, %s2655_s30 }
 0x4a8   :  { %2527 = vrot.lane.b32.xlu0 %v2825_v10, %s2656_s18 }
 0x51f   :  { %v497_v3 = vpop.xlane.xlu0 %496 }
 0x520   :  { %v499_v4 = vsub.f32 %v491_v63, %v497_v3  ;;  %v494_v6 = vpop.xlane.xlu1 %493 }
 0x521   :  { %v498_v12 = vsub.f32 %v490_v1, %v494_v6 }
 0x522   :  { %v502_v13 = vmul.f32 1.442695, %v499_v4 }
 0x523   :  { %v500_v14 = vmul.f32 1.442695, %v498_v12  ;;  %v2528_v19 = vpop.permute.xlu0 %2527 }
 0x524   :  { %2554 = vpow2.f32 %v502_v13  ;;  %v2530_v20 = vunpack.i.h.bf16 %v2528_v19  ;;  %v2523_v21 = vpop.permute.xlu1 %2522  ;;  %v2529_v22 = vunpack.i.l.bf16 %v2528_v19 }
 0x525   :  { %2556 = vpow2.f32 %v500_v14  ;;  %v2525_v23 = vunpack.i.h.bf16 %v2523_v21  ;;  %v2524_v24 = vunpack.i.l.bf16 %v2523_v21 }
 0x526   :  { %v2405_v26 = vpack.c.bf16 %v2530_v20, %v2529_v22 }
 0x527   :  { %v2401_v25 = vpack.c.bf16 %v2525_v23, %v2524_v24 }
 0x529   :  { %2402 = vmatprep.subr.bf16.mxu0 %v2401_v25 }
 0x52a   :  { %2404 = vmatpush3.bf16.msra.mxu0 %v2401_v25  ;;  %v1155_v25 = vld [vmem:[%s3206_s7] sm:$0xff] }
 0x52b   :  { %2407 = vmatprep.subr.msk.bf16.mxu0 %vm2834_vm2, %v2405_v26 }
 0x52e   :  { %v2555_v27 = vpop.eup %2554 }
 0x52f   :  { %v2557_v28 = vpop.eup %2556  ;;  %v505_v29 = vmul.f32 %v2555_v27, %v2851_v17 }
 0x530   :  { %v504_v31 = vmul.f32 %v2557_v28, %v2856_v18 }
 0x531   :  { %v509_v30 = vsel %vm283_vm4, %v505_v29, 0.0 }
 0x532   :  { %510 = vadd.xlane.f32.xlu1 %v509_v30  ;;  %v506_v32 = vsel %vm283_vm4, %v504_v31, 0.0 }
 0x536   :  { %507 = vadd.xlane.f32.xlu1 %v506_v32  ;;  %v1158_v32 = vld [vmem:[%s3206_s7 + $0x18] sm:$0xff] }
 0x547   :  { %605 = vrot.lane.b32.xlu1 %v2819_v9, %s2657_s14 }
 0x54b   :  { %607 = vrot.lane.b32.xlu1 %v2817_v8, %s2657_s14 }
 0x5bf   :  { %v511_v33 = vpop.xlane.xlu1 %510 }
 0x5c0   :  { %v513_v34 = vmax.f32 %v511_v33, 1e-30 }
 0x5c2   :  { %2558 = vrcp.f32 %v513_v34 }
 0x5c3   :  { %v508_v35 = vpop.xlane.xlu1 %507 }
 0x5c4   :  { %v512_v36 = vmax.f32 %v508_v35, 1e-30 }
 0x5c6   :  { %2560 = vrcp.f32 %v512_v36 }
 0x5c7   :  { %v606_v41 = vpop.permute.xlu1 %605 }
 0x5cb   :  { %v608_v42 = vpop.permute.xlu1 %607 }
 0x5cc   :  { %v2559_v37 = vpop.eup %2558 }
 0x5cd   :  { %v517_v40 = vmul.f32 %v2559_v37, %v505_v29 }
 0x5d0   :  { %v2561_v38 = vpop.eup %2560 }
 0x5d1   :  { %v516_v39 = vmul.f32 %v2561_v38, %v504_v31  ;;  %v1157_v31 = vld [vmem:[%s3206_s7 + $0x10] sm:$0xff] }
 0x5d2   :  { %v2437_v33 = vpack.c.bf16 %v1158_v32, %v1157_v31 }
 0x5d3   :  { %2237 = vmatprep.mubr.msk.f32.mxu0 %vm283_vm4, %v516_v39 }
 0x5d4   :  { %2238 = vmatmul.mubr.msk.f32.vlgmr.msra.gmra.mrb[2].mxu0 %vm283_vm4, %v517_v40 }
 0x5d5   :  { %2410 = vmatpush3.bf16.xpose.msk.msra.mxu0 %vm2834_vm2, %v2405_v26  ;;  %2244 = vmatprep.mubr.msk.f32.mxu0 %vm193_vm1, %v606_v41  ;;  %v1156_v26 = vld [vmem:[%s3206_s7 + $0x8] sm:$0xff]  ;;  %s2661_s7 = smov 8  }
 0x5d6   :  { %v2433_v29 = vpack.c.bf16 %v1156_v26, %v1155_v25  ;;  %v1248_v26 = vld [vmem:[%s3207_s8 + $0x10] sm:$0xff] }
 0x5dc   :  { %2245 = vmatmul.mubr.msk.f32.vlgmr.msra.gmra.mrb[4].mxu0 %vm193_vm1, %v608_v42 }
 0x6a7   :  { %v2908_v43 = vpop.f32.mrb[2].mxu0 }
 0x6a8   :  { %v2910_v44 = vpop.f32.mrb[3].mxu0 }
 0x6af   :  { %v2246_v45 = vpop.f32.mrb[4].mxu0 }
 0x6b0   :  { %v697_v46 = vmul.f32 0.35355338, %v2246_v45  ;;  %v687_v47 = vpop.f32.mrb[5].mxu0 }
 0x6b1   :  { %v696_v48 = vmul.f32 0.35355338, %v687_v47 }
 0x6b2   :  { %v699_v49 = vsel %vm280_vm3, %v697_v46, -1e+30 }
 0x6b3   :  { %v703_v50 = vsel %vm283_vm4, %v699_v49, -inf  ;;  %v698_v51 = vsel %vm279_vm5, %v696_v48, -1e+30 }
 0x6b4   :  { %704 = vmax.xlane.f32.xlu0 %v703_v50  ;;  %v700_v52 = vsel %vm283_vm4, %v698_v51, -inf }
 0x6b5   :  { %701 = vmax.xlane.f32.xlu1 %v700_v52 }
 0x741   :  { %v705_v53 = vpop.xlane.xlu0 %704 }
 0x742   :  { %v707_v54 = vsub.f32 %v699_v49, %v705_v53  ;;  %v702_v55 = vpop.xlane.xlu1 %701 }
 0x743   :  { %v706_v56 = vsub.f32 %v698_v51, %v702_v55 }
 0x744   :  { %v710_v59 = vmul.f32 1.442695, %v707_v54 }
 0x745   :  { %v708_v60 = vmul.f32 1.442695, %v706_v56 }
 0x746   :  { %2562 = vpow2.f32 %v710_v59 }
 0x747   :  { %2564 = vpow2.f32 %v708_v60 }
 0x750   :  { %v2563_v61 = vpop.eup %2562 }
 0x751   :  { %v2565_v62 = vpop.eup %2564  ;;  %v713_v63 = vmul.f32 %v2563_v61, %v2851_v17 }
 0x752   :  { %v712_v0 = vmul.f32 %v2565_v62, %v2856_v18 }
 0x753   :  { %v717_v1 = vsel %vm283_vm4, %v713_v63, 0.0 }
 0x754   :  { %718 = vadd.xlane.f32.xlu1 %v717_v1  ;;  %v714_v2 = vsel %vm283_vm4, %v712_v0, 0.0 }
 0x755   :  { %715 = vadd.xlane.f32.xlu0 %v714_v2 }
 0x765   :  { %2537 = vrot.lane.b32.xlu1 %v2825_v10, %s2658_s25 }
 0x769   :  { %813 = vrot.lane.b32.xlu1 %v2819_v9, %s2659_s19 }
 0x76b   :  { %2532 = vrot.lane.b32.xlu0 %v2825_v10, %s2660_s20 }
 0x76f   :  { %815 = vrot.lane.b32.xlu0 %v2817_v8, %s2659_s19 }
 0x7e1   :  { %v719_v3 = vpop.xlane.xlu1 %718 }
 0x7e2   :  { %v721_v4 = vmax.f32 %v719_v3, 1e-30  ;;  %v716_v6 = vpop.xlane.xlu0 %715 }
 0x7e3   :  { %v720_v12 = vmax.f32 %v716_v6, 1e-30  ;;  %v1054_v6 = vld [vmem:[%s3205_s6 + $0x10] sm:$0xff] }
 0x7e4   :  { %2566 = vrcp.f32 %v721_v4  ;;  %v1053_v4 = vld [vmem:[%s3205_s6 + $0x8] sm:$0xff] }
 0x7e5   :  { %2568 = vrcp.f32 %v720_v12  ;;  %v2538_v13 = vpop.permute.xlu1 %2537 }
 0x7e6   :  { %v2533_v14 = vpop.permute.xlu0 %2532  ;;  %v2540_v19 = vunpack.i.h.bf16 %v2538_v13  ;;  %v2539_v20 = vunpack.i.l.bf16 %v2538_v13  ;;  %v1055_v13 = vld [vmem:[%s3205_s6 + $0x18] sm:$0xff] }
 0x7e7   :  { %v2535_v21 = vunpack.i.h.bf16 %v2533_v14  ;;  %v2534_v22 = vunpack.i.l.bf16 %v2533_v14  ;;  %v2429_v14 = vpack.c.bf16 %v1055_v13, %v1054_v6  ;;  %v1452_v13 = vld [vmem:[%s3203_s4] sm:$0xff] }
 0x7e8   :  { %v2415_v24 = vpack.c.bf16 %v2540_v19, %v2539_v20  ;;  %v1246_v19 = vld [vmem:[%s3207_s8] sm:$0xff]  ;;  %v1247_v20 = vld [vmem:[%s3207_s8 + $0x8] sm:$0xff] }
 0x7e9   :  { %v2411_v23 = vpack.c.bf16 %v2535_v21, %v2534_v22  ;;  %v814_v30 = vpop.permute.xlu1 %813  ;;  %v2441_v21 = vpack.c.bf16 %v1247_v20, %v1246_v19  ;;  %v1454_v19 = vld [vmem:[%s3203_s4 + $0x10] sm:$0xff]  ;;  %v1455_v20 = vld [vmem:[%s3203_s4 + $0x18] sm:$0xff] }
 0x7ea   :  { %v816_v34 = vpop.permute.xlu0 %815 }
 0x7eb   :  { %2412 = vmatprep.subr.bf16.mxu1 %v2411_v23 }
 0x7ec   :  { %2414 = vmatpush3.bf16.msra.mxu1 %v2411_v23 }
 0x7ed   :  { %2417 = vmatprep.subr.msk.bf16.mxu1 %vm2834_vm2, %v2415_v24 }
 0x7ee   :  { %v2567_v8 = vpop.eup %2566 }
 0x7ef   :  { %v2569_v9 = vpop.eup %2568  ;;  %v725_v28 = vmul.f32 %v2567_v8, %v713_v63 }
 0x7f0   :  { %v724_v27 = vmul.f32 %v2569_v9, %v712_v0 }
 0x7f2   :  { %2251 = vmatprep.mubr.msk.f32.mxu1 %vm283_vm4, %v724_v27  ;;  %v1249_v27 = vld [vmem:[%s3207_s8 + $0x18] sm:$0xff] }
 0x7f3   :  { %2252 = vmatmul.mubr.msk.f32.vlgmr.msra.gmra.mrb[6].mxu1 %vm283_vm4, %v725_v28 }
 0x7f4   :  { %2258 = vmatprep.mubr.msk.f32.mxu1 %vm193_vm1, %v814_v30 }
 0x7f5   :  { %2420 = vmatpush3.bf16.xpose.msk.msra.mxu1 %vm2834_vm2, %v2415_v24 }
 0x7f6   :  { %2434 = vmatprep.subr.bf16.mxu1 %v2433_v29 }
 0x7fc   :  { %2259 = vmatmul.mubr.msk.f32.vlgmr.msra.gmra.mrb[8].mxu1 %vm193_vm1, %v816_v34 }
 0x7fd   :  { %2436 = vmatpush3.bf16.msra.mxu1 %v2433_v29 }
 0x7fe   :  { %2438 = vmatprep.subr.bf16.mxu1 %v2437_v33 }
 0x801   :  { %2440 = vmatpush3.bf16.msra.mxu1 %v2437_v33 }
 0x802   :  { %2450 = vmatprep.subr.bf16.mxu1 %v2829_v11 }
 0x8c6   :  { %v2253_v15 = vpop.f32.mrb[6].mxu1 }
 0x8c7   :  { %v804_v35 = vpop.f32.mrb[7].mxu1 }
 0x8cf   :  { %v2260_v36 = vpop.f32.mrb[8].mxu1 }
 0x8d0   :  { %v905_v37 = vmul.f32 0.35355338, %v2260_v36  ;;  %v895_v38 = vpop.f32.mrb[9].mxu1 }
 0x8d1   :  { %v904_v39 = vmul.f32 0.35355338, %v895_v38 }
 0x8d2   :  { %v907_v40 = vsel %vm280_vm3, %v905_v37, -1e+30  ;;  %v2998_v37 = vld [vmem:[#allocation2] sm:$0xff] }
 0x8d3   :  { %v911_v41 = vsel %vm283_vm4, %v907_v40, -inf  ;;  %v906_v42 = vsel %vm279_vm5, %v904_v39, -1e+30  ;;  %v3001_v39 = vld [vmem:[#allocation4] sm:$0xf] }
 0x8d4   :  { %912 = vmax.xlane.f32.xlu0 %v911_v41  ;;  %v908_v45 = vsel %vm283_vm4, %v906_v42, -inf  ;;  %v3003_v41 = vld [vmem:[#allocation6] sm:$0xf] }
 0x8d5   :  { %909 = vmax.xlane.f32.xlu1 %v908_v45 }
 0x961   :  { %v913_v46 = vpop.xlane.xlu0 %912 }
 0x962   :  { %v915_v47 = vsub.f32 %v907_v40, %v913_v46  ;;  %v910_v48 = vpop.xlane.xlu1 %909 }
 0x963   :  { %v914_v49 = vsub.f32 %v906_v42, %v910_v48 }
 0x964   :  { %v918_v50 = vmul.f32 1.442695, %v915_v47 }
 0x965   :  { %v916_v51 = vmul.f32 1.442695, %v914_v49 }
 0x966   :  { %2570 = vpow2.f32 %v918_v50 }
 0x967   :  { %2572 = vpow2.f32 %v916_v51 }
 0x970   :  { %v2571_v52 = vpop.eup %2570 }
 0x971   :  { %v2573_v53 = vpop.eup %2572  ;;  %v921_v54 = vmul.f32 %v2571_v52, %v2851_v17 }
 0x972   :  { %v920_v55 = vmul.f32 %v2573_v53, %v2856_v18 }
 0x973   :  { %v925_v56 = vsel %vm283_vm4, %v921_v54, 0.0 }
 0x974   :  { %926 = vadd.xlane.f32.xlu1 %v925_v56  ;;  %v922_v59 = vsel %vm283_vm4, %v920_v55, 0.0 }
 0x975   :  { %923 = vadd.xlane.f32.xlu0 %v922_v59  ;;  %v1352_v59 = vld [vmem:[%s3202_s3 + $0x8] sm:$0xff] }
 0x985   :  { %1023 = vrot.lane.b32.xlu1 %v2910_v44, %s2661_s7 }
 0x989   :  { %1025 = vrot.lane.b32.xlu1 %v2908_v43, %s2661_s7 }
 0x98b   :  { %2542 = vrot.lane.b32.xlu0 %v2825_v10, %s2662_s28  ;;  %v1052_v10 = vld [vmem:[%s3205_s6] sm:$0xff] }
 0x98c   :  { %v2425_v12 = vpack.c.bf16 %v1053_v4, %v1052_v10 }
 0x98d   :  { %1033 = vrot.lane.b32.xlu1 %v2253_v15, %s2663_s29  ;;  %v2445_v15 = vpack.c.bf16 %v1249_v27, %v1248_v26  ;;  %v1674_v27 = vld [vmem:[%s3209_s10 + $0x10] sm:$0xff] }
 0x98f   :  { %1031 = vrot.lane.b32.xlu0 %v804_v35, %s2663_s29 }
 0xa01   :  { %v927_v17 = vpop.xlane.xlu1 %926 }
 0xa02   :  { %v929_v60 = vmax.f32 %v927_v17, 1e-30  ;;  %v924_v18 = vpop.xlane.xlu0 %923  ;;  %v1557_v17 = vld [vmem:[%s3208_s9 + $0x10] sm:$0xff] }
 0xa03   :  { %v928_v61 = vmax.f32 %v924_v18, 1e-30 }
 0xa04   :  { %2574 = vrcp.f32 %v929_v60  ;;  %v1558_v60 = vld [vmem:[%s3208_s9 + $0x18] sm:$0xff] }
 0xa05   :  { %2576 = vrcp.f32 %v928_v61  ;;  %v1024_v24 = vpop.permute.xlu1 %1023  ;;  %v2461_v18 = vpack.c.bf16 %v1558_v60, %v1557_v17  ;;  %v1354_v61 = vld [vmem:[%s3202_s3 + $0x18] sm:$0xff] }
 0xa06   :  { %v2543_v62 = vpop.permute.xlu0 %2542  ;;  %v1045_v28 = vsel %vm193_vm1, %v2884_v58, %v1024_v24  ;;  %v1056_v58 = vlaneseq  ;;  %v1672_v24 = vld [vmem:[%s3209_s10] sm:$0xff] }
 0xa07   :  { %v2545_v63 = vunpack.i.h.bf16 %v2543_v62  ;;  %v2544_v0 = vunpack.i.l.bf16 %v2543_v62 }
 0xa08   :  { %v2995_v36 = vshrl.u32 %v1056_v58, 7 }
 0xa09   :  { %v2421_v1 = vpack.c.bf16 %v2545_v63, %v2544_v0  ;;  %v1026_v8 = vpop.permute.xlu1 %1025 }
 0xa0a   :  { %v1032_v25 = vpop.permute.xlu0 %1031  ;;  %v1046_v30 = vsel %vm193_vm1, %v2882_v57, %v1026_v8  ;;  %v1058_v57 = vsub.s32 0, %v2995_v36  ;;  %v1673_v8 = vld [vmem:[%s3209_s10 + $0x8] sm:$0xff] }
 0xa0b   :  { %2422 = vmatprep.subr.bf16.mxu0 %v2421_v1  ;;  %v1047_v31 = vsel %vm283_vm4, %v1045_v28, %v1032_v25  ;;  %v2465_v25 = vpack.c.bf16 %v1673_v8, %v1672_v24  ;;  %v1675_v28 = vld [vmem:[%s3209_s10 + $0x18] sm:$0xff] }
 0xa0c   :  { %2424 = vmatpush3.bf16.msra.mxu0 %v2421_v1  ;;  %v1059_v38 = vrot.slane %v2998_v37, %v1058_v57  ;;  %v1146_v45 = vrot.slane %v3001_v39, %v1058_v57  ;;  %v1152_v49 = vrot.slane %v3003_v41, %v1058_v57 }
 0xa0d   :  { %2426 = vmatprep.subr.bf16.mxu0 %v2425_v12  ;;  %v1034_v9 = vpop.permute.xlu1 %1033 }
 0xa0e   :  { %v2575_v44 = vpop.eup %2574  ;;  %v1048_v33 = vsel %vm283_vm4, %v1046_v30, %v1034_v9  ;;  %v2469_v30 = vpack.c.bf16 %v1675_v28, %v1674_v27 }
 0xa0f   :  { %v2577_v43 = vpop.eup %2576  ;;  %v933_v3 = vmul.f32 %v2575_v44, %v921_v54  ;;  %v1161_v44 = vsub.s32 1, %v2995_v36 }
 0xa10   :  { %v932_v2 = vmul.f32 %v2577_v43, %v920_v55  ;;  %v1351_v55 = vld [vmem:[%s3202_s3] sm:$0xff] }
 0xa11   :  { %v1162_v43 = vrot.slane %v2998_v37, %v1161_v44  ;;  %v1340_v57 = vrot.slane %v3001_v39, %v1161_v44 }
 0xa12   :  { %2265 = vmatprep.mubr.msk.f32.mxu0 %vm283_vm4, %v932_v2 }
 0xa13   :  { %2266 = vmatmul.mubr.msk.f32.vlgmr.msra.gmra.mrb[6].mxu0 %vm283_vm4, %v933_v3 }
 0xa14   :  { %2428 = vmatpush3.bf16.msra.mxu0 %v2425_v12 }
 0xa15   :  { %2430 = vmatprep.subr.bf16.mxu0 %v2429_v14 }
 0xa18   :  { %2432 = vmatpush3.bf16.msra.mxu0 %v2429_v14  ;;  %v1453_v14 = vld [vmem:[%s3203_s4 + $0x8] sm:$0xff] }
 0xa19   :  { %2442 = vmatprep.subr.bf16.mxu0 %v2441_v21 }
 0xae6   :  { %v2267_v22 = vpop.f32.mrb[6].mxu0 }
 0xae7   :  { %1041 = vrot.lane.b32.xlu1 %v2267_v22, %s2664_s21  ;;  %v1012_v23 = vpop.f32.mrb[7].mxu0 }
 0xae8   :  { %1039 = vrot.lane.b32.xlu0 %v1012_v23, %s2664_s21  ;;  %s3224_s21 = sld [smem:[#allocation10_spill]] }
 0xaee   :  { %v3049_v62 = vld [vmem:[%s3224_s21] sm:$0xff]  ;;  %v3054_v63 = vld [vmem:[%s3224_s21 + $0x8] sm:$0xff]  ;;  %v3063_v0 = vld [vmem:[%s3224_s21 + $0x10] sm:$0xff] }
 0xaef   :  { %v3070_v1 = vld [vmem:[%s3224_s21 + $0x18] sm:$0xff] }
 0xb59   :  { %v1042_v29 = vpop.permute.xlu1 %1041 }
 0xb5a   :  { %v1040_v32 = vpop.permute.xlu0 %1039  ;;  %v1051_v35 = vsel %vm1049_vm6, %v1048_v33, %v1042_v29  ;;  %v3111_v33 = vsub.s32 3, %v2995_v36 }
 0xb5b   :  { %v1050_v34 = vsel %vm1049_vm6, %v1047_v31, %v1040_v32  ;;  %v3108_v32 = vsub.s32 2, %v2995_v36 }
 0xb5c   :  { %2276 = vmatprep.mubr.msk.f32.mxu0 %vm105_vm0, %v1050_v34 }
 0xb5d   :  { %2277 = vmatmul.mubr.msk.f32.vlgmr.msra.gmra.mrb[8].mxu0 %vm105_vm0, %v1051_v35  ;;  %v1253_v34 = vrot.slane %v2998_v37, %v3108_v32 }
 0xb5e   :  { %2444 = vmatpush3.bf16.msra.mxu0 %v2441_v21 }
 0xb5f   :  { %2446 = vmatprep.subr.bf16.mxu0 %v2445_v15 }
 0xb62   :  { %2448 = vmatpush3.bf16.msra.mxu0 %v2445_v15  ;;  %v1562_v15 = vrot.slane %v2998_v37, %v3111_v33 }
 0xb63   :  { %2454 = vmatprep.subr.bf16.mxu0 %v2838_v16 }
 0xc30   :  { %v2278_v40 = vpop.f32.mrb[8].mxu0 }
 0xc31   :  { %v1138_v42 = vadd.f32 %v2278_v40, %v1059_v38  ;;  %v1132_v46 = vpop.f32.mrb[9].mxu0 }
 0xc32   :  { %v1133_v47 = vadd.f32 %v1132_v46, %v1059_v38 }
 0xc33   :  { %v1142_v48 = vadd.f32 %v1138_v42, %v2813_v7  ;;  %v1555_v7 = vld [vmem:[%s3208_s9] sm:$0xff] }
 0xc34   :  { %v1141_v50 = vadd.f32 %v1133_v47, %v2806_v5  ;;  %v1556_v5 = vld [vmem:[%s3208_s9 + $0x8] sm:$0xff] }
 0xc35   :  { %v1148_v51 = vmul.f32 %v1146_v45, %v1142_v48  ;;  %v2457_v56 = vpack.c.bf16 %v1556_v5, %v1555_v7 }
 0xc36   :  { %v1147_v52 = vmul.f32 %v1146_v45, %v1141_v50  ;;  %v1346_v45 = vrot.slane %v3003_v41, %v1161_v44 }
 0xc37   :  { %v3011_v54 = vadd.f32 %v1152_v49, %v1148_v51 }
 0xc38   :  { %v3009_v53 = vadd.f32 %v1152_v49, %v1147_v52 }
 0xc3a   :  { %2287 = vmatprep.mubr.msk.f32.mxu1 %vm105_vm0, %v3009_v53 }
 0xc3b   :  { %2288 = vmatmul.mubr.msk.f32.vlgmr.msra.gmra.mrb[10].mxu1 %vm105_vm0, %v3011_v54 }
 0xc3c   :  { %2452 = vmatpush3.bf16.msra.mxu1 %v2829_v11  ;;  %2305 = vmatprep.mubr.msk.f32.mxu1 %vm283_vm4, %v1351_v55  ;;  %v1353_v11 = vld [vmem:[%s3202_s3 + $0x10] sm:$0xff] }
 0xc3d   :  { %2458 = vmatprep.subr.bf16.mxu1 %v2457_v56 }
 0xc3f   :  { %2306 = vmatmul.mubr.msk.f32.vlgmr.msra.gmra.mrb[12].mxu1 %vm283_vm4, %v1352_v59 }
 0xc40   :  { %2460 = vmatpush3.bf16.msra.mxu1 %v2457_v56  ;;  %2308 = vmatprep.mubr.msk.f32.mxu1 %vm283_vm4, %v1353_v11 }
 0xc41   :  { %2462 = vmatprep.subr.bf16.mxu1 %v2461_v18 }
 0xc43   :  { %2309 = vmatmul.mubr.msk.f32.gmra.mrb[14].mxu1 %vm283_vm4, %v1354_v61 }
 0xc44   :  { %2464 = vmatpush3.bf16.msra.mxu1 %v2461_v18  ;;  %2329 = vmatprep.mubr.msk.f32.mxu1 %vm105_vm0, %v3049_v62 }
 0xc47   :  { %2330 = vmatmul.mubr.msk.f32.vlgmr.msra.gmra.mrb[16].mxu1 %vm105_vm0, %v3054_v63 }
 0xc48   :  { %2332 = vmatprep.mubr.msk.f32.mxu1 %vm105_vm0, %v3063_v0 }
 0xc4b   :  { %2333 = vmatmul.mubr.msk.f32.gmra.mrb[18].mxu1 %vm105_vm0, %v3070_v1 }
 0xd0e   :  { %v2289_v2 = vpop.f32.mrb[10].mxu1 }
 0xd0f   :  { %v1241_v3 = vadd.f32 %v2289_v2, %v1162_v43  ;;  %v1235_v10 = vpop.f32.mrb[11].mxu1 }
 0xd10   :  { %v1236_v4 = vadd.f32 %v1235_v10, %v1162_v43 }
 0xd11   :  { %v1245_v12 = vmax.f32 %v1241_v3, 0.0 }
 0xd12   :  { %v1244_v6 = vmax.f32 %v1236_v4, 0.0 }
 0xd14   :  { %2298 = vmatprep.mubr.msk.f32.mxu0 %vm105_vm0, %v1244_v6  ;;  %v1797_v6 = vld [vmem:[%s3210_s11] sm:$0xff] }
 0xd15   :  { %2299 = vmatmul.mubr.msk.f32.vlgmr.msra.gmra.mrb[10].mxu0 %vm105_vm0, %v1245_v12  ;;  %v1798_v12 = vld [vmem:[%s3210_s11 + $0x8] sm:$0xff] }
 0xd16   :  { %2456 = vmatpush3.bf16.msra.mxu0 %v2838_v16  ;;  %2315 = vmatprep.mubr.msk.f32.mxu0 %vm283_vm4, %v1452_v13  ;;  %v2307_v16 = vpop.f32.mrb[12].mxu1  ;;  %v2473_v13 = vpack.c.bf16 %v1798_v12, %v1797_v6 }
 0xd17   :  { %v1433_v21 = vpop.f32.mrb[13].mxu1  ;;  %2466 = vmatprep.subr.bf16.mxu0 %v2465_v25 }
 0xd18   :  { %v2310_v22 = vpop.f32.mrb[14].mxu1  ;;  %2474 = vmatprep.subr.bf16.mxu1 %v2473_v13 }
 0xd19   :  { %2316 = vmatmul.mubr.msk.f32.vlgmr.msra.gmra.mrb[12].mxu0 %vm283_vm4, %v1453_v14  ;;  %v1443_v23 = vpop.f32.mrb[15].mxu1  ;;  %2476 = vmatpush3.bf16.msra.mxu1 %v2473_v13  ;;  %v1799_v14 = vld [vmem:[%s3210_s11 + $0x10] sm:$0xff] }
 0xd1a   :  { %2318 = vmatprep.mubr.msk.f32.mxu0 %vm283_vm4, %v1454_v19  ;;  %v2331_v9 = vpop.f32.mrb[16].mxu1  ;;  %2468 = vmatpush3.bf16.msra.mxu0 %v2465_v25  ;;  %v1800_v19 = vld [vmem:[%s3210_s11 + $0x18] sm:$0xff] }
 0xd1b   :  { %v1641_v26 = vpop.f32.mrb[17].mxu1  ;;  %2470 = vmatprep.subr.bf16.mxu0 %v2469_v30  ;;  %v1647_v46 = vadd.f32 %v2331_v9, %v1562_v15  ;;  %v1784_v9 = vrot.slane %v3001_v39, %v3108_v32 }
 0xd1c   :  { %v1642_v49 = vadd.f32 %v1641_v26, %v1562_v15 }
 0xd1d   :  { %2319 = vmatmul.mubr.msk.f32.gmra.mrb[14].mxu0 %vm283_vm4, %v1455_v20  ;;  %v2477_v20 = vpack.c.bf16 %v1800_v19, %v1799_v14 }
 0xd1e   :  { %v2334_v29 = vpop.f32.mrb[18].mxu1  ;;  %2472 = vmatpush3.bf16.msra.mxu0 %v2469_v30 }
 0xd1f   :  { %v1651_v31 = vpop.f32.mrb[19].mxu1  ;;  %v1657_v59 = vadd.f32 %v2334_v29, %v1562_v15  ;;  %2478 = vmatprep.subr.bf16.mxu1 %v2477_v20  ;;  %v1792_v29 = vrot.slane %v3003_v41, %v3108_v32 }
 0xd20   :  { %v1652_v18 = vadd.f32 %v1651_v31, %v1562_v15  ;;  %2480 = vmatpush3.bf16.msra.mxu1 %v2477_v20 }
 0xde8   :  { %v2300_v35 = vpop.f32.mrb[10].mxu0 }
 0xde9   :  { %v1332_v58 = vadd.f32 %v2300_v35, %v1253_v34  ;;  %v1326_v38 = vpop.f32.mrb[11].mxu0 }
 0xdea   :  { %v1327_v40 = vadd.f32 %v1326_v38, %v1253_v34 }
 0xdeb   :  { %v1336_v42 = vadd.f32 %v1332_v58, %v3011_v54 }
 0xdec   :  { %v1335_v47 = vadd.f32 %v1327_v40, %v3009_v53  ;;  %v2317_v48 = vpop.f32.mrb[12].mxu0 }
 0xded   :  { %v1342_v50 = vmul.f32 %v1340_v57, %v1336_v42  ;;  %v1661_v51 = vmul.f32 %v2317_v48, %v2307_v16  ;;  %v1536_v52 = vpop.f32.mrb[13].mxu0  ;;  %v1906_v16 = vld [vmem:[%s3211_s12] sm:$0xff]  ;;  %v1803_v48 = vsub.s32 5, %v2995_v36 }
 0xdee   :  { %v1341_v7 = vmul.f32 %v1340_v57, %v1335_v47  ;;  %v1660_v5 = vmul.f32 %v1536_v52, %v1433_v21  ;;  %v1907_v21 = vld [vmem:[%s3211_s12 + $0x8] sm:$0xff] }
 0xdef   :  { %v1348_v55 = vadd.f32 %v1346_v45, %v1342_v50  ;;  %v1665_v56 = vmul.f32 %v1661_v51, %v1647_v46 }
 0xdf0   :  { %v1347_v11 = vadd.f32 %v1346_v45, %v1341_v7  ;;  %v1664_v17 = vmul.f32 %v1660_v5, %v1642_v49  ;;  %v2320_v60 = vpop.f32.mrb[14].mxu0  ;;  %v1804_v49 = vrot.slane %v2998_v37, %v1803_v48 }
 0xdf1   :  { %1350 = vst.msk [vmem:[%s3215_s16 + $0x8] sm:$0xff] %vm105_vm0, %v1348_v55  ;;  %v1663_v53 = vmul.f32 %v2320_v60, %v2310_v22  ;;  %v1546_v54 = vpop.f32.mrb[15].mxu0  ;;  %v1669_v43 = vmul.f32 0.35355338, %v1665_v56  ;;  %v2481_v22 = vpack.c.bf16 %v1907_v21, %v1906_v16 }
 0xdf2   :  { %1349 = vst.msk [vmem:[%s3215_s16] sm:$0xff] %vm105_vm0, %v1347_v11  ;;  %v1668_v61 = vmul.f32 0.35355338, %v1664_v17  ;;  %v1662_v44 = vmul.f32 %v1546_v54, %v1443_v23  ;;  %v1678_v23 = vsub.s32 4, %v2995_v36 }
 0xdf3   :  { %v1667_v2 = vmul.f32 %v1663_v53, %v1657_v59  ;;  %2482 = vmatprep.subr.bf16.mxu0 %v2481_v22  ;;  %v1912_v53 = vsub.s32 6, %v2995_v36 }
 0xdf4   :  { %v1666_v3 = vmul.f32 %v1662_v44, %v1652_v18  ;;  %2343 = vmatprep.mubr.msk.f32.mxu0 %vm105_vm0, %v1668_v61  ;;  %v1679_v24 = vrot.slane %v2998_v37, %v1678_v23 }
 0xdf5   :  { %2344 = vmatmul.mubr.msk.f32.vlgmr.msra.gmra.mrb[16].mxu0 %vm105_vm0, %v1669_v43  ;;  %v1671_v4 = vmul.f32 0.35355338, %v1667_v2  ;;  %v1913_v54 = vrot.slane %v2998_v37, %v1912_v53  ;;  %v2018_v43 = vrot.slane %v3001_v39, %v3111_v33 }
 0xdf6   :  { %v1670_v10 = vmul.f32 0.35355338, %v1666_v3  ;;  %2484 = vmatpush3.bf16.msra.mxu0 %v2481_v22 }
 0xdf8   :  { %2346 = vmatprep.mubr.msk.f32.mxu0 %vm105_vm0, %v1670_v10 }
 0xdf9   :  { %2347 = vmatmul.mubr.msk.f32.gmra.mrb[18].mxu0 %vm105_vm0, %v1671_v4  ;;  %v2026_v4 = vrot.slane %v3003_v41, %v3111_v33 }
 0xec8   :  { %v2345_v8 = vpop.f32.mrb[16].mxu0 }
 0xec9   :  { %v1764_v25 = vadd.f32 %v2345_v8, %v1679_v24  ;;  %v1758_v26 = vpop.f32.mrb[17].mxu0 }
 0xeca   :  { %v1759_v27 = vadd.f32 %v1758_v26, %v1679_v24 }
 0xecb   :  { %v1778_v28 = vadd.f32 %v1764_v25, %v3054_v63 }
 0xecc   :  { %v1777_v30 = vadd.f32 %v1759_v27, %v3049_v62  ;;  %v2348_v31 = vpop.f32.mrb[18].mxu0 }
 0xecd   :  { %v1786_v34 = vmul.f32 %v1784_v9, %v1778_v28  ;;  %v1774_v15 = vadd.f32 %v2348_v31, %v1679_v24  ;;  %v1768_v35 = vpop.f32.mrb[19].mxu0 }
 0xece   :  { %v1785_v58 = vmul.f32 %v1784_v9, %v1777_v30  ;;  %v1769_v57 = vadd.f32 %v1768_v35, %v1679_v24 }
 0xecf   :  { %v1780_v38 = vadd.f32 %v1774_v15, %v3070_v1  ;;  %v1794_v45 = vadd.f32 %v1792_v29, %v1786_v34  ;;  %v1908_v1 = vld [vmem:[%s3211_s12 + $0x10] sm:$0xff] }
 0xed0   :  { %v1793_v40 = vadd.f32 %v1792_v29, %v1785_v58  ;;  %v1779_v42 = vadd.f32 %v1769_v57, %v3063_v0  ;;  %v1909_v0 = vld [vmem:[%s3211_s12 + $0x18] sm:$0xff] }
 0xed1   :  { %v1788_v46 = vmul.f32 %v1784_v9, %v1780_v38  ;;  %v2485_v32 = vpack.c.bf16 %v1909_v0, %v1908_v1 }
 0xed2   :  { %v1787_v47 = vmul.f32 %v1784_v9, %v1779_v42  ;;  %2357 = vmatprep.mubr.msk.f32.mxu1 %vm105_vm0, %v1793_v40 }
 0xed3   :  { %2358 = vmatmul.mubr.msk.f32.vlgmr.msra.gmra.mrb[20].mxu1 %vm105_vm0, %v1794_v45  ;;  %v1796_v62 = vadd.f32 %v1792_v29, %v1788_v46  ;;  %2486 = vmatprep.subr.bf16.mxu0 %v2485_v32 }
 0xed4   :  { %v1795_v63 = vadd.f32 %v1792_v29, %v1787_v47  ;;  %2488 = vmatpush3.bf16.msra.mxu0 %v2485_v32 }
 0xed6   :  { %2360 = vmatprep.mubr.msk.f32.mxu1 %vm105_vm0, %v1795_v63 }
 0xed7   :  { %2361 = vmatmul.mubr.msk.f32.gmra.mrb[22].mxu1 %vm105_vm0, %v1796_v62 }
 0xfa6   :  { %v2359_v50 = vpop.f32.mrb[20].mxu1 }
 0xfa7   :  { %v1889_v51 = vadd.f32 %v2359_v50, %v1804_v49  ;;  %v1883_v52 = vpop.f32.mrb[21].mxu1 }
 0xfa8   :  { %v1884_v7 = vadd.f32 %v1883_v52, %v1804_v49 }
 0xfa9   :  { %v1903_v56 = vmax.f32 %v1889_v51, 0.0 }
 0xfaa   :  { %v1902_v5 = vmax.f32 %v1884_v7, 0.0  ;;  %v2362_v55 = vpop.f32.mrb[22].mxu1 }
 0xfab   :  { %v1899_v59 = vadd.f32 %v2362_v55, %v1804_v49  ;;  %v1893_v11 = vpop.f32.mrb[23].mxu1 }
 0xfac   :  { %v1894_v17 = vadd.f32 %v1893_v11, %v1804_v49  ;;  %2371 = vmatprep.mubr.msk.f32.mxu0 %vm105_vm0, %v1902_v5 }
 0xfad   :  { %2372 = vmatmul.mubr.msk.f32.vlgmr.msra.gmra.mrb[20].mxu0 %vm105_vm0, %v1903_v56  ;;  %v1905_v18 = vmax.f32 %v1899_v59, 0.0 }
 0xfae   :  { %v1904_v60 = vmax.f32 %v1894_v17, 0.0 }
 0xfb0   :  { %2374 = vmatprep.mubr.msk.f32.mxu0 %vm105_vm0, %v1904_v60 }
 0xfb1   :  { %2375 = vmatmul.mubr.msk.f32.gmra.mrb[22].mxu0 %vm105_vm0, %v1905_v18 }
0x1080   :  { %v2373_v61 = vpop.f32.mrb[20].mxu0 }
0x1081   :  { %v1998_v44 = vadd.f32 %v2373_v61, %v1913_v54  ;;  %v1992_v2 = vpop.f32.mrb[21].mxu0 }
0x1082   :  { %v1993_v3 = vadd.f32 %v1992_v2, %v1913_v54 }
0x1083   :  { %v2012_v10 = vadd.f32 %v1998_v44, %v1794_v45 }
0x1084   :  { %v2011_v6 = vadd.f32 %v1993_v3, %v1793_v40  ;;  %v2376_v12 = vpop.f32.mrb[22].mxu0 }
0x1085   :  { %v2020_v13 = vmul.f32 %v2018_v43, %v2012_v10  ;;  %v2008_v14 = vadd.f32 %v2376_v12, %v1913_v54  ;;  %v2002_v19 = vpop.f32.mrb[23].mxu0 }
0x1086   :  { %v2019_v20 = vmul.f32 %v2018_v43, %v2011_v6  ;;  %v2003_v36 = vadd.f32 %v2002_v19, %v1913_v54 }
0x1087   :  { %v2028_v16 = vadd.f32 %v2026_v4, %v2020_v13  ;;  %v2014_v37 = vadd.f32 %v2008_v14, %v1796_v62 }
0x1088   :  { %v2027_v21 = vadd.f32 %v2026_v4, %v2019_v20  ;;  %v2013_v22 = vadd.f32 %v2003_v36, %v1795_v63 }
0x1089   :  { %2032 = vst.msk [vmem:[%s3216_s17 + $0x8] sm:$0xff] %vm105_vm0, %v2028_v16  ;;  %v2022_v39 = vmul.f32 %v2018_v43, %v2014_v37 }
0x108a   :  { %2031 = vst.msk [vmem:[%s3216_s17] sm:$0xff] %vm105_vm0, %v2027_v21  ;;  %v2021_v41 = vmul.f32 %v2018_v43, %v2013_v22 }
0x108b   :  { %v2030_v33 = vadd.f32 %v2026_v4, %v2022_v39 }
0x108c   :  { %v2029_v23 = vadd.f32 %v2026_v4, %v2021_v41 }
0x108d   :  { %2034 = vst.msk [vmem:[%s3216_s17 + $0x18] sm:$0xff] %vm105_vm0, %v2030_v33 }
0x108e   :  { %2033 = vst.msk [vmem:[%s3216_s17 + $0x10] sm:$0xff] %vm105_vm0, %v2029_v23 }
0x108f   :  { %2043 = vsyncpa [#allocation3], 1 }
0x1090   :  { %2044 = vsyncpa [#allocation5], 1 }

</bundles_post_ra>
